<compile_context>
chip_gen: v7x
topology: tpu7x:2x2x1
jax: 0.10.0
libtpu: 0.0.40
codegen_flags: <defaults>
</compile_context>

<pallas_src>
import math
import functools

import jax
import jax.numpy as jnp
from jax import lax
from jax.experimental import pallas as pl
from jax.experimental.pallas import tpu as pltpu


# ---------------------------------------------------------------------------
# Small helpers
# ---------------------------------------------------------------------------

_ROW_TILE_CAP = 512      # max rows per grid step (multiple of 8)
_ROW_SPLIT_MIN = 128     # split into >=2 row tiles above this (use both TCs on v7x)


def _round_up(x, m):
    return (x + m - 1) // m * m


def _row_tiles(m):
    """Pick (row_tile, num_tiles); ragged last tile is handled by Pallas."""
    if m < _ROW_SPLIT_MIN:
        return m, 1
    tm = min(_ROW_TILE_CAP, _round_up(pl.cdiv(m, 2), 8))
    return tm, pl.cdiv(m, tm)


# ---------------------------------------------------------------------------
# Pallas kernels
# ---------------------------------------------------------------------------

def _conv3x3_kernel(x_ref, w_ref, scale_ref, bias_ref, o_ref, *, img_w, nb, tm, ksize):
    """3x3 valid conv + folded-BN affine + ReLU; output lane-packed over batch.

      x_ref     : (B, rows, K*Cin)  bf16  horizontal taps pre-packed into lanes
      w_ref     : (K, K*Cin, Cout)  bf16
      scale/bias: (1, B*Cout)       f32   (tiled over batch, b-major)
      o_ref     : (tm, B*Cout)      f32   row-flattened with stride img_w; columns
                                          >= Wo of each spatial row are junk
    """
    row0 = pl.program_id(0) * tm
    if tm % 8 == 0:
        row0 = pl.multiple_of(row0, 8)
    cout = o_ref.shape[1] // nb
    per_batch = []
    for b in range(nb):                      # static loop; batch b -> lanes [b*cout, ...)
        acc = jnp.zeros((tm, cout), jnp.float32)
        for u in range(ksize):               # 3 MXU dots of contraction depth K*Cin
            lhs = x_ref[b, pl.ds(row0 + u * img_w, tm), :]
            acc = acc + jnp.dot(lhs, w_ref[u], preferred_element_type=jnp.float32)
        per_batch.append(acc)
    acc = per_batch[0] if nb == 1 else jnp.concatenate(per_batch, axis=-1)
    o_ref[...] = jnp.maximum(acc * scale_ref[...] + bias_ref[...], 0.0)


def _xcorr_head_kernel(s_ref, k_ref, w1_ref, s1_ref, b1_ref, w2_ref, b2_ref, o_ref,
                       *, ws, wz, hk, wk, tm):
    """Fused depthwise xcorr + both 1x1 head layers, all lanes = B*2h (b-major).

      s_ref : (rows_s, L)  search conv features, row-flattened stride ws (resident)
      k_ref : (rows_k, L)  template conv features, row-flattened stride wz (resident)
      w1_ref: (L, L)       bf16 batch/cls-loc block-diagonal head conv1 weight
      s1/b1 : (1, L)       f32  folded BN of head conv1
      w2_ref: (L, N2)      bf16 batch/cls-loc block-diagonal head conv2 weight
      b2    : (1, N2)      f32
      o_ref : (tm, N2)     f32  row-flattened xcorr-output rows (junk cols sliced later)
    """
    row0 = pl.program_id(0) * tm
    if tm % 8 == 0:
        row0 = pl.multiple_of(row0, 8)
    L = s_ref.shape[1]
    feat = jnp.zeros((tm, L), jnp.float32)          # f32 elementwise (v5e-friendly)
    for u in range(hk):
        base = row0 + u * ws
        for v in range(wk):
            t = u * wz + v
            feat = feat + s_ref[pl.ds(base + v, tm), :] * k_ref[t:t + 1, :]
    h = jnp.dot(feat.astype(jnp.bfloat16), w1_ref[...],
                preferred_element_type=jnp.float32)
    h = jnp.maximum(h * s1_ref[...] + b1_ref[...], 0.0)
    out = jnp.dot(h.astype(jnp.bfloat16), w2_ref[...],
                  preferred_element_type=jnp.float32)
    o_ref[...] = out + b2_ref[...]


# ---------------------------------------------------------------------------
# Pallas wrappers
# ---------------------------------------------------------------------------

def conv3x3_bn_relu(x_nhwc, w_taps, scale, bias, *, w_pad, extra_rows=0):
    """Fused (cls+loc) 3x3 valid conv + BN + ReLU.

    Returns a row-flattened, lane-packed (Ho*w_pad + extra_rows, B*Cout) f32 array with
    row stride w_pad (a multiple of 8); columns >= Wo of each spatial row are junk.
    """
    B, H, W, Cin = x_nhwc.shape
    K = 3
    Cout = w_taps.shape[-1]
    L = B * Cout
    assert scale.shape[-1] == L and bias.shape[-1] == L
    Ho = H - K + 1
    m_out = Ho * w_pad + extra_rows
    tm, nt = _row_tiles(m_out)

    # pad width so the flattened row stride is sublane (8) aligned
    if w_pad != W:
        x_nhwc = jnp.pad(x_nhwc, ((0, 0), (0, 0), (0, w_pad - W), (0, 0)))
    # row-flatten, pad rows so every (possibly ragged) tile's tap slices stay in bounds,
    # pre-pack the K horizontal taps into lanes and pre-cast to bf16 exactly once
    rows_xp = nt * tm + (K - 1) * w_pad
    x_flat = x_nhwc.reshape(B, H * w_pad, Cin)
    x_flat = jnp.pad(x_flat, ((0, 0), (0, rows_xp + K - 1 - H * w_pad), (0, 0)))
    xp = jnp.concatenate([x_flat[:, v:v + rows_xp, :] for v in range(K)],
                         axis=-1).astype(jnp.bfloat16)              # (B, rows_xp, K*Cin)

    kern = functools.partial(_conv3x3_kernel, img_w=w_pad, nb=B, tm=tm, ksize=K)
    return pl.pallas_call(
        kern,
        grid=(nt,),
        in_specs=[
            pl.BlockSpec((B, rows_xp, K * Cin), lambda i: (0, 0, 0)),   # resident
            pl.BlockSpec((K, K * Cin, Cout), lambda i: (0, 0, 0)),
            pl.BlockSpec((1, L), lambda i: (0, 0)),
            pl.BlockSpec((1, L), lambda i: (0, 0)),
        ],
        out_specs=pl.BlockSpec((tm, L), lambda i: (i, 0)),
        out_shape=jax.ShapeDtypeStruct((m_out, L), jnp.float32),
        compiler_params=pltpu.CompilerParams(dimension_semantics=("parallel",)),
        # NOTE: at scaled-up SiamRPN sizes also set vmem_limit_bytes here.
    )(xp, w_taps, scale, bias)


def xcorr_head(sfeat, kfeat, w1, s1, b1, w2, b2, *, ws, wz, hk, wk, m_out, tm, nt):
    """Fused depthwise xcorr + 1x1 head (conv-BN-ReLU-conv), row-tiled grid."""
    rows_s, L = sfeat.shape
    rows_k = kfeat.shape[0]
    assert kfeat.shape[1] == L and w1.shape == (L, L)
    n2 = w2.shape[1]
    kern = functools.partial(_xcorr_head_kernel, ws=ws, wz=wz, hk=hk, wk=wk, tm=tm)
    return pl.pallas_call(
        kern,
        grid=(nt,),
        in_specs=[
            pl.BlockSpec((rows_s, L), lambda i: (0, 0)),   # resident search features
            pl.BlockSpec((rows_k, L), lambda i: (0, 0)),   # resident template taps
            pl.BlockSpec((L, L), lambda i: (0, 0)),
            pl.BlockSpec((1, L), lambda i: (0, 0)),
            pl.BlockSpec((1, L), lambda i: (0, 0)),
            pl.BlockSpec((L, n2), lambda i: (0, 0)),
            pl.BlockSpec((1, n2), lambda i: (0, 0)),
        ],
        out_specs=pl.BlockSpec((tm, n2), lambda i: (i, 0)),
        out_shape=jax.ShapeDtypeStruct((m_out, n2), jnp.float32),
        compiler_params=pltpu.CompilerParams(dimension_semantics=("parallel",)),
    )(sfeat, kfeat, w1, s1, b1, w2, b2)


# ---------------------------------------------------------------------------
# Fused DepthwiseRPN forward
# ---------------------------------------------------------------------------

@functools.partial(jax.jit, static_argnames=("n_cls",))
def depthwise_rpn_forward(f, z_nchw, x_nchw, *, n_cls):
    z = jnp.transpose(z_nchw, (0, 2, 3, 1))          # NHWC
    x = jnp.transpose(x_nchw, (0, 2, 3, 1))
    B, Hz, Wz, _ = z.shape
    _, Hx, Wx, _ = x.shape
    K = 3
    hk, wk = Hz - K + 1, Wz - K + 1                  # template feature == xcorr kernel
    hs, ws = Hx - K + 1, Wx - K + 1                  # search feature
    ho, wo = hs - hk + 1, ws - wk + 1                # xcorr output
    Wz_p, Wx_p = _round_up(Wz, 8), _round_up(Wx, 8)  # sublane-aligned row strides

    # the fused xcorr+head row tiling decides how many extra (well-defined junk) rows
    # the search conv must emit so the last tile's tap slices stay in bounds
    m_x = ho * Wx_p
    tmx, ntx = _row_tiles(m_x)
    extra_s = ntx * tmx - m_x + wk - 1

    kfeat = conv3x3_bn_relu(z, f["ck_w"], f["ck_scale"], f["ck_bias"],
                            w_pad=Wz_p)                               # (hk*Wz_p, B*2h)
    sfeat = conv3x3_bn_relu(x, f["cs_w"], f["cs_scale"], f["cs_bias"],
                            w_pad=Wx_p, extra_rows=extra_s)           # (hs*Wx_p+ex, B*2h)

    out2d = xcorr_head(sfeat, kfeat, f["h1_w"], f["h1_scale"], f["h1_bias"],
                       f["h2_w"], f["h2_b"], ws=Wx_p, wz=Wz_p, hk=hk, wk=wk,
                       m_out=m_x, tm=tmx, nt=ntx)                     # (ho*Wx_p, B*n_out)

    n_out = f["h2_b"].shape[-1] // B
    out = out2d.reshape(ho, Wx_p, B, n_out)[:, :wo]                   # drop junk cols
    out = jnp.transpose(out, (2, 3, 0, 1))                            # (B, n_out, ho, wo)
    return out[:, :n_cls], out[:, n_cls:]


def fuse_branch_params(cls_p, loc_p, batch):
    """Fuse cls+loc branches (lane concat / block-diagonal) and pre-pack for the kernels."""
    def prep_conv(w):      # (Cout, Cin, 3, 3) -> (3, 3*Cin, Cout); lane index = v*Cin + ci
        co, ci = w.shape[0], w.shape[1]
        return jnp.transpose(w, (2, 3, 1, 0)).reshape(3, 3 * ci, co)

    def tile_b(v):         # per-channel vector -> (1, batch*len(v)), b-major lanes
        return jnp.tile(v, batch).reshape(1, -1)

    h = cls_p["h1_w"].shape[0]
    n_cls = cls_p["h2_w"].shape[1]
    n_loc = loc_p["h2_w"].shape[1]
    eye_b = jnp.eye(batch, dtype=jnp.float32)

    f = {}
    f["ck_w"] = jnp.concatenate([prep_conv(cls_p["ck_w"]), prep_conv(loc_p["ck_w"])],
                                axis=-1).astype(jnp.bfloat16)
    f["ck_scale"] = tile_b(jnp.concatenate([cls_p["ck_scale"], loc_p["ck_scale"]]))
    f["ck_bias"] = tile_b(jnp.concatenate([cls_p["ck_bias"], loc_p["ck_bias"]]))
    f["cs_w"] = jnp.concatenate([prep_conv(cls_p["cs_w"]), prep_conv(loc_p["cs_w"])],
                                axis=-1).astype(jnp.bfloat16)
    f["cs_scale"] = tile_b(jnp.concatenate([cls_p["cs_scale"], loc_p["cs_scale"]]))
    f["cs_bias"] = tile_b(jnp.concatenate([cls_p["cs_bias"], loc_p["cs_bias"]]))

    # head weights: cls/loc block-diagonal, then batch-block-diagonal over the
    # lane-packed (b-major) B*2h feature axis so the head runs inside the xcorr kernel
    w1 = jnp.zeros((2 * h, 2 * h), jnp.float32)
    w1 = w1.at[:h, :h].set(cls_p["h1_w"]).at[h:, h:].set(loc_p["h1_w"])
    f["h1_w"] = jnp.kron(eye_b, w1).astype(jnp.bfloat16)               # (B*2h, B*2h)
    f["h1_scale"] = tile_b(jnp.concatenate([cls_p["h1_scale"], loc_p["h1_scale"]]))
    f["h1_bias"] = tile_b(jnp.concatenate([cls_p["h1_bias"], loc_p["h1_bias"]]))
    w2 = jnp.zeros((2 * h, n_cls + n_loc), jnp.float32)
    w2 = w2.at[:h, :n_cls].set(cls_p["h2_w"]).at[h:, n_cls:].set(loc_p["h2_w"])
    f["h2_w"] = jnp.kron(eye_b, w2).astype(jnp.bfloat16)               # (B*2h, B*(nc+nl))
    f["h2_b"] = tile_b(jnp.concatenate([cls_p["h2_b"], loc_p["h2_b"]]))
    return f


# ---------------------------------------------------------------------------
# Deterministic parameter init (synthetic; BN folded to scale/bias, eval mode)
# ---------------------------------------------------------------------------

def init_xcorr_params(key, in_ch, hidden, out_ch):
    ks = jax.random.split(key, 17)

    def bn_fold(k0, k1, k2, k3, c):
        gamma = 1.0 + 0.1 * jax.random.normal(k0, (c,), jnp.float32)
        beta = 0.1 * jax.random.normal(k1, (c,), jnp.float32)
        mean = 0.1 * jax.random.normal(k2, (c,), jnp.float32)
        var = 1.0 + 0.2 * jax.random.uniform(k3, (c,), jnp.float32)
        scale = gamma / jnp.sqrt(var + 1e-5)
        return scale, beta - mean * scale

    p = {}
    p["ck_w"] = jax.random.normal(ks[0], (hidden, in_ch, 3, 3), jnp.float32) / math.sqrt(9 * in_ch)
    p["ck_scale"], p["ck_bias"] = bn_fold(ks[1], ks[2], ks[3], ks[4], hidden)
    p["cs_w"] = jax.random.normal(ks[5], (hidden, in_ch, 3, 3), jnp.float32) / math.sqrt(9 * in_ch)
    p["cs_scale"], p["cs_bias"] = bn_fold(ks[6], ks[7], ks[8], ks[9], hidden)
    p["h1_w"] = jax.random.normal(ks[10], (hidden, hidden), jnp.float32) / math.sqrt(hidden)
    p["h1_scale"], p["h1_bias"] = bn_fold(ks[11], ks[12], ks[13], ks[14], hidden)
    p["h2_w"] = jax.random.normal(ks[15], (hidden, out_ch), jnp.float32) / math.sqrt(hidden)
    p["h2_b"] = 0.1 * jax.random.normal(ks[16], (out_ch,), jnp.float32)
    return p


# ---------------------------------------------------------------------------
# Pure-JAX reference (bf16 matmul inputs / f32 accumulation, matching the kernels)
# ---------------------------------------------------------------------------

def _bf16(x):
    return x.astype(jnp.bfloat16)


def _ref_conv3x3_bn_relu(x, w_oihw, scale, bias):
    w_hwio = _bf16(jnp.transpose(w_oihw, (2, 3, 1, 0)))
    y = lax.conv_general_dilated(_bf16(x), w_hwio, (1, 1), "VALID",
                                 dimension_numbers=("NHWC", "HWIO", "NHWC"),
                                 preferred_element_type=jnp.float32)
    return jnp.maximum(y * scale + bias, 0.0)


def _ref_xcorr(search, kern):
    B, Hs, Ws, C = search.shape
    _, Hk, Wk, _ = kern.shape
    lhs = jnp.transpose(search, (1, 2, 0, 3)).reshape(1, Hs, Ws, B * C)
    rhs = jnp.transpose(kern, (1, 2, 0, 3)).reshape(Hk, Wk, 1, B * C)
    y = lax.conv_general_dilated(lhs, rhs, (1, 1), "VALID",
                                 dimension_numbers=("NHWC", "HWIO", "NHWC"),
                                 feature_group_count=B * C,
                                 precision=lax.Precision.HIGHEST)
    Ho, Wo = y.shape[1], y.shape[2]
    return jnp.transpose(y[0].reshape(Ho, Wo, B, C), (2, 0, 1, 3))


def _ref_branch(p, z_nhwc, x_nhwc):
    kf = _ref_conv3x3_bn_relu(z_nhwc, p["ck_w"], p["ck_scale"], p["ck_bias"])
    sf = _ref_conv3x3_bn_relu(x_nhwc, p["cs_w"], p["cs_scale"], p["cs_bias"])
    feat = _ref_xcorr(sf, kf)
    h = jnp.einsum("bhwc,cd->bhwd", _bf16(feat), _bf16(p["h1_w"]),
                   preferred_element_type=jnp.float32)
    h = jnp.maximum(h * p["h1_scale"] + p["h1_bias"], 0.0)
    out = jnp.einsum("bhwc,cd->bhwd", _bf16(h), _bf16(p["h2_w"]),
                     preferred_element_type=jnp.float32) + p["h2_b"]
    return out


@jax.jit
def depthwise_rpn_reference(cls_p, loc_p, z_nchw, x_nchw):
    z = jnp.transpose(z_nchw, (0, 2, 3, 1))
    x = jnp.transpose(x_nchw, (0, 2, 3, 1))
    cls = _ref_branch(cls_p, z, x)
    loc = _ref_branch(loc_p, z, x)
    return jnp.transpose(cls, (0, 3, 1, 2)), jnp.transpose(loc, (0, 3, 1, 2))


# ---------------------------------------------------------------------------
# Main
# ---------------------------------------------------------------------------

if __name__ == "__main__":
    # DepthwiseRPN(anchor_num, in_channels, out_channels) at small shapes:
    anchor_num = 2
    in_channels = 16
    hidden = 32            # "out_channels" of DepthwiseRPN = hidden width of each branch
    batch = 2

    key = jax.random.PRNGKey(0)
    kz, kx, kcls, kloc = jax.random.split(key, 4)

    z_f = jax.random.normal(kz, (batch, in_channels, 8, 8), jnp.float32)     # template (NCHW)
    x_f = jax.random.normal(kx, (batch, in_channels, 16, 16), jnp.float32)   # search   (NCHW)

    cls_params = init_xcorr_params(kcls, in_channels, hidden, 2 * anchor_num)
    loc_params = init_xcorr_params(kloc, in_channels, hidden, 4 * anchor_num)
    fused = fuse_branch_params(cls_params, loc_params, batch)

    cls_out, loc_out = depthwise_rpn_forward(fused, z_f, x_f, n_cls=2 * anchor_num)
    jax.block_until_ready((cls_out, loc_out))

    # Shape check: z 8->6, x 16->14, xcorr 14-6+1=9
    assert cls_out.shape == (batch, 2 * anchor_num, 9, 9), cls_out.shape
    assert loc_out.shape == (batch, 4 * anchor_num, 9, 9), loc_out.shape

    # Numerical check against a pure-JAX reference with matching bf16-matmul precision.
    cls_ref, loc_ref = depthwise_rpn_reference(cls_params, loc_params, z_f, x_f)
    assert jnp.allclose(cls_out, cls_ref, atol=3e-2, rtol=3e-2), \
        float(jnp.max(jnp.abs(cls_out - cls_ref)))
    assert jnp.allclose(loc_out, loc_ref, atol=3e-2, rtol=3e-2), \
        float(jnp.max(jnp.abs(loc_out - loc_ref)))

    print("KERNEL_OK")
</pallas_src>

<mosaic_0001>
module attributes {stable_mosaic.version = 11 : i64} {
  func.func @_conv3x3_kernel(%arg0: i32, %arg1: memref<2x272x48xbf16, #tpu.memory_space<vmem>>, %arg2: memref<3x48x64xbf16, #tpu.memory_space<vmem>>, %arg3: memref<1x128xf32, #tpu.memory_space<vmem>>, %arg4: memref<1x128xf32, #tpu.memory_space<vmem>>, %arg5: memref<120x128xf32, #tpu.memory_space<vmem>>) attributes {dimension_semantics = [#tpu.dimension_semantics<parallel>], iteration_bounds = array<i64: 2>, scalar_prefetch = 0 : i64, scratch_operands = 0 : i64, tpu.core_type = #tpu.core_type<tc>, window_params = [{pipeline_mode = #tpu.pipeline_mode<synchronous>, transform_indices = @transform_0, window_bounds = array<i64: 2, 272, 48>}, {pipeline_mode = #tpu.pipeline_mode<synchronous>, transform_indices = @transform_1, window_bounds = array<i64: 3, 48, 64>}, {pipeline_mode = #tpu.pipeline_mode<synchronous>, transform_indices = @transform_2, window_bounds = array<i64: 1, 128>}, {pipeline_mode = #tpu.pipeline_mode<synchronous>, transform_indices = @transform_3, window_bounds = array<i64: 1, 128>}, {transform_indices = @transform_4, window_bounds = array<i64: 120, 128>}]} {
    %c120_i32 = arith.constant 120 : i32
    %0 = arith.muli %arg0, %c120_i32 : i32
    %1 = tpu.assume_multiple %0, 8 : i32
    %cst = arith.constant 0.000000e+00 : f32
    %2 = vector.broadcast %cst : f32 to vector<120x64xf32>
    %c0_i32 = arith.constant 0 : i32
    %3 = arith.addi %1, %c0_i32 : i32
    %c0 = arith.constant 0 : index
    %4 = arith.index_cast %3 : i32 to index
    %c0_0 = arith.constant 0 : index
    %5 = vector.load %arg1[%c0, %4, %c0_0] : memref<2x272x48xbf16, #tpu.memory_space<vmem>>, vector<1x120x48xbf16>
    %6 = vector.shape_cast %5 : vector<1x120x48xbf16> to vector<120x48xbf16>
    %c0_1 = arith.constant 0 : index
    %c0_2 = arith.constant 0 : index
    %c0_3 = arith.constant 0 : index
    %7 = vector.load %arg2[%c0_1, %c0_2, %c0_3] : memref<3x48x64xbf16, #tpu.memory_space<vmem>>, vector<1x48x64xbf16>
    %8 = vector.shape_cast %7 : vector<1x48x64xbf16> to vector<48x64xbf16>
    %cst_4 = arith.constant dense<0.000000e+00> : vector<120x64xf32>
    %9 = tpu.matmul %6, %8, %cst_4 {dimension_numbers = #tpu.dot_dimension_numbers<[1], [0], [0], [1], [0, 0, 1, 1], [], []>} : vector<120x48xbf16>, vector<48x64xbf16>, vector<120x64xf32> -> vector<120x64xf32>
    %10 = arith.addf %2, %9 : vector<120x64xf32>
    %c16_i32 = arith.constant 16 : i32
    %11 = arith.addi %1, %c16_i32 : i32
    %c0_5 = arith.constant 0 : index
    %12 = arith.index_cast %11 : i32 to index
    %c0_6 = arith.constant 0 : index
    %13 = vector.load %arg1[%c0_5, %12, %c0_6] : memref<2x272x48xbf16, #tpu.memory_space<vmem>>, vector<1x120x48xbf16>
    %14 = vector.shape_cast %13 : vector<1x120x48xbf16> to vector<120x48xbf16>
    %c1 = arith.constant 1 : index
    %c0_7 = arith.constant 0 : index
    %c0_8 = arith.constant 0 : index
    %15 = vector.load %arg2[%c1, %c0_7, %c0_8] : memref<3x48x64xbf16, #tpu.memory_space<vmem>>, vector<1x48x64xbf16>
    %16 = vector.shape_cast %15 : vector<1x48x64xbf16> to vector<48x64xbf16>
    %cst_9 = arith.constant dense<0.000000e+00> : vector<120x64xf32>
    %17 = tpu.matmul %14, %16, %cst_9 {dimension_numbers = #tpu.dot_dimension_numbers<[1], [0], [0], [1], [0, 0, 1, 1], [], []>} : vector<120x48xbf16>, vector<48x64xbf16>, vector<120x64xf32> -> vector<120x64xf32>
    %18 = arith.addf %10, %17 : vector<120x64xf32>
    %c32_i32 = arith.constant 32 : i32
    %19 = arith.addi %1, %c32_i32 : i32
    %c0_10 = arith.constant 0 : index
    %20 = arith.index_cast %19 : i32 to index
    %c0_11 = arith.constant 0 : index
    %21 = vector.load %arg1[%c0_10, %20, %c0_11] : memref<2x272x48xbf16, #tpu.memory_space<vmem>>, vector<1x120x48xbf16>
    %22 = vector.shape_cast %21 : vector<1x120x48xbf16> to vector<120x48xbf16>
    %c2 = arith.constant 2 : index
    %c0_12 = arith.constant 0 : index
    %c0_13 = arith.constant 0 : index
    %23 = vector.load %arg2[%c2, %c0_12, %c0_13] : memref<3x48x64xbf16, #tpu.memory_space<vmem>>, vector<1x48x64xbf16>
    %24 = vector.shape_cast %23 : vector<1x48x64xbf16> to vector<48x64xbf16>
    %cst_14 = arith.constant dense<0.000000e+00> : vector<120x64xf32>
    %25 = tpu.matmul %22, %24, %cst_14 {dimension_numbers = #tpu.dot_dimension_numbers<[1], [0], [0], [1], [0, 0, 1, 1], [], []>} : vector<120x48xbf16>, vector<48x64xbf16>, vector<120x64xf32> -> vector<120x64xf32>
    %26 = arith.addf %18, %25 : vector<120x64xf32>
    %cst_15 = arith.constant 0.000000e+00 : f32
    %27 = vector.broadcast %cst_15 : f32 to vector<120x64xf32>
    %c0_i32_16 = arith.constant 0 : i32
    %28 = arith.addi %1, %c0_i32_16 : i32
    %c1_17 = arith.constant 1 : index
    %29 = arith.index_cast %28 : i32 to index
    %c0_18 = arith.constant 0 : index
    %30 = vector.load %arg1[%c1_17, %29, %c0_18] : memref<2x272x48xbf16, #tpu.memory_space<vmem>>, vector<1x120x48xbf16>
    %31 = vector.shape_cast %30 : vector<1x120x48xbf16> to vector<120x48xbf16>
    %c0_19 = arith.constant 0 : index
    %c0_20 = arith.constant 0 : index
    %c0_21 = arith.constant 0 : index
    %32 = vector.load %arg2[%c0_19, %c0_20, %c0_21] : memref<3x48x64xbf16, #tpu.memory_space<vmem>>, vector<1x48x64xbf16>
    %33 = vector.shape_cast %32 : vector<1x48x64xbf16> to vector<48x64xbf16>
    %cst_22 = arith.constant dense<0.000000e+00> : vector<120x64xf32>
    %34 = tpu.matmul %31, %33, %cst_22 {dimension_numbers = #tpu.dot_dimension_numbers<[1], [0], [0], [1], [0, 0, 1, 1], [], []>} : vector<120x48xbf16>, vector<48x64xbf16>, vector<120x64xf32> -> vector<120x64xf32>
    %35 = arith.addf %27, %34 : vector<120x64xf32>
    %c16_i32_23 = arith.constant 16 : i32
    %36 = arith.addi %1, %c16_i32_23 : i32
    %c1_24 = arith.constant 1 : index
    %37 = arith.index_cast %36 : i32 to index
    %c0_25 = arith.constant 0 : index
    %38 = vector.load %arg1[%c1_24, %37, %c0_25] : memref<2x272x48xbf16, #tpu.memory_space<vmem>>, vector<1x120x48xbf16>
    %39 = vector.shape_cast %38 : vector<1x120x48xbf16> to vector<120x48xbf16>
    %c1_26 = arith.constant 1 : index
    %c0_27 = arith.constant 0 : index
    %c0_28 = arith.constant 0 : index
    %40 = vector.load %arg2[%c1_26, %c0_27, %c0_28] : memref<3x48x64xbf16, #tpu.memory_space<vmem>>, vector<1x48x64xbf16>
    %41 = vector.shape_cast %40 : vector<1x48x64xbf16> to vector<48x64xbf16>
    %cst_29 = arith.constant dense<0.000000e+00> : vector<120x64xf32>
    %42 = tpu.matmul %39, %41, %cst_29 {dimension_numbers = #tpu.dot_dimension_numbers<[1], [0], [0], [1], [0, 0, 1, 1], [], []>} : vector<120x48xbf16>, vector<48x64xbf16>, vector<120x64xf32> -> vector<120x64xf32>
    %43 = arith.addf %35, %42 : vector<120x64xf32>
    %c32_i32_30 = arith.constant 32 : i32
    %44 = arith.addi %1, %c32_i32_30 : i32
    %c1_31 = arith.constant 1 : index
    %45 = arith.index_cast %44 : i32 to index
    %c0_32 = arith.constant 0 : index
    %46 = vector.load %arg1[%c1_31, %45, %c0_32] : memref<2x272x48xbf16, #tpu.memory_space<vmem>>, vector<1x120x48xbf16>
    %47 = vector.shape_cast %46 : vector<1x120x48xbf16> to vector<120x48xbf16>
    %c2_33 = arith.constant 2 : index
    %c0_34 = arith.constant 0 : index
    %c0_35 = arith.constant 0 : index
    %48 = vector.load %arg2[%c2_33, %c0_34, %c0_35] : memref<3x48x64xbf16, #tpu.memory_space<vmem>>, vector<1x48x64xbf16>
    %49 = vector.shape_cast %48 : vector<1x48x64xbf16> to vector<48x64xbf16>
    %cst_36 = arith.constant dense<0.000000e+00> : vector<120x64xf32>
    %50 = tpu.matmul %47, %49, %cst_36 {dimension_numbers = #tpu.dot_dimension_numbers<[1], [0], [0], [1], [0, 0, 1, 1], [], []>} : vector<120x48xbf16>, vector<48x64xbf16>, vector<120x64xf32> -> vector<120x64xf32>
    %51 = arith.addf %43, %50 : vector<120x64xf32>
    %52 = tpu.concatenate %26, %51 in 1 : vector<120x64xf32>, vector<120x64xf32> -> vector<120x128xf32>
    %c0_37 = arith.constant 0 : index
    %c0_38 = arith.constant 0 : index
    %53 = vector.load %arg3[%c0_37, %c0_38] : memref<1x128xf32, #tpu.memory_space<vmem>>, vector<1x128xf32>
    %54 = vector.broadcast %53 : vector<1x128xf32> to vector<120x128xf32>
    %55 = arith.mulf %52, %54 : vector<120x128xf32>
    %c0_39 = arith.constant 0 : index
    %c0_40 = arith.constant 0 : index
    %56 = vector.load %arg4[%c0_39, %c0_40] : memref<1x128xf32, #tpu.memory_space<vmem>>, vector<1x128xf32>
    %57 = vector.broadcast %56 : vector<1x128xf32> to vector<120x128xf32>
    %58 = arith.addf %55, %57 : vector<120x128xf32>
    %cst_41 = arith.constant 0.000000e+00 : f32
    %59 = vector.broadcast %cst_41 : f32 to vector<120x128xf32>
    %60 = arith.maximumf %58, %59 : vector<120x128xf32>
    %c0_42 = arith.constant 0 : index
    %c0_43 = arith.constant 0 : index
    %61 = vector.load %arg5[%c0_42, %c0_43] : memref<120x128xf32, #tpu.memory_space<vmem>>, vector<120x128xf32>
    tpu.vector_store %arg5[%c0_42, %c0_43], %60 {strides = array<i32>} : memref<120x128xf32, #tpu.memory_space<vmem>>, vector<120x128xf32>,
    return
  }
  func.func @transform_0(%arg0: i32) -> (i32, i32, i32) {
    %c0_i32 = arith.constant 0 : i32
    %c0_i32_0 = arith.constant 0 : i32
    %c0_i32_1 = arith.constant 0 : i32
    %c0_i32_2 = arith.constant 0 : i32
    return %c0_i32, %c0_i32_0, %c0_i32_1 : i32, i32, i32
  }
  func.func @transform_1(%arg0: i32) -> (i32, i32, i32) {
    %c0_i32 = arith.constant 0 : i32
    %c0_i32_0 = arith.constant 0 : i32
    %c0_i32_1 = arith.constant 0 : i32
    %c0_i32_2 = arith.constant 0 : i32
    return %c0_i32, %c0_i32_0, %c0_i32_1 : i32, i32, i32
  }
  func.func @transform_2(%arg0: i32) -> (i32, i32) {
    %c0_i32 = arith.constant 0 : i32
    %c0_i32_0 = arith.constant 0 : i32
    %c0_i32_1 = arith.constant 0 : i32
    return %c0_i32, %c0_i32_0 : i32, i32
  }
  func.func @transform_3(%arg0: i32) -> (i32, i32) {
    %c0_i32 = arith.constant 0 : i32
    %c0_i32_0 = arith.constant 0 : i32
    %c0_i32_1 = arith.constant 0 : i32
    return %c0_i32, %c0_i32_0 : i32, i32
  }
  func.func @transform_4(%arg0: i32) -> (i32, i32) {
    %c0_i32 = arith.constant 0 : i32
    %c0_i32_0 = arith.constant 0 : i32
    return %arg0, %c0_i32 : i32, i32
  }
}

module attributes {stable_mosaic.version = 11 : i64} {
  func.func @_conv3x3_kernel(%arg0: i32, %arg1: memref<2x64x48xbf16, #tpu.memory_space<vmem>>, %arg2: memref<3x48x64xbf16, #tpu.memory_space<vmem>>, %arg3: memref<1x128xf32, #tpu.memory_space<vmem>>, %arg4: memref<1x128xf32, #tpu.memory_space<vmem>>, %arg5: memref<48x128xf32, #tpu.memory_space<vmem>>) attributes {dimension_semantics = [#tpu.dimension_semantics<parallel>], iteration_bounds = array<i64: 1>, scalar_prefetch = 0 : i64, scratch_operands = 0 : i64, tpu.core_type = #tpu.core_type<tc>, window_params = [{pipeline_mode = #tpu.pipeline_mode<synchronous>, transform_indices = @transform_0, window_bounds = array<i64: 2, 64, 48>}, {pipeline_mode = #tpu.pipeline_mode<synchronous>, transform_indices = @transform_1, window_bounds = array<i64: 3, 48, 64>}, {pipeline_mode = #tpu.pipeline_mode<synchronous>, transform_indices = @transform_2, window_bounds = array<i64: 1, 128>}, {pipeline_mode = #tpu.pipeline_mode<synchronous>, transform_indices = @transform_3, window_bounds = array<i64: 1, 128>}, {transform_indices = @transform_4, window_bounds = array<i64: 48, 128>}]} {
    %c48_i32 = arith.constant 48 : i32
    %0 = arith.muli %arg0, %c48_i32 : i32
    %1 = tpu.assume_multiple %0, 8 : i32
    %cst = arith.constant 0.000000e+00 : f32
    %2 = vector.broadcast %cst : f32 to vector<48x64xf32>
    %c0_i32 = arith.constant 0 : i32
    %3 = arith.addi %1, %c0_i32 : i32
    %c0 = arith.constant 0 : index
    %4 = arith.index_cast %3 : i32 to index
    %c0_0 = arith.constant 0 : index
    %5 = vector.load %arg1[%c0, %4, %c0_0] : memref<2x64x48xbf16, #tpu.memory_space<vmem>>, vector<1x48x48xbf16>
    %6 = vector.shape_cast %5 : vector<1x48x48xbf16> to vector<48x48xbf16>
    %c0_1 = arith.constant 0 : index
    %c0_2 = arith.constant 0 : index
    %c0_3 = arith.constant 0 : index
    %7 = vector.load %arg2[%c0_1, %c0_2, %c0_3] : memref<3x48x64xbf16, #tpu.memory_space<vmem>>, vector<1x48x64xbf16>
    %8 = vector.shape_cast %7 : vector<1x48x64xbf16> to vector<48x64xbf16>
    %cst_4 = arith.constant dense<0.000000e+00> : vector<48x64xf32>
    %9 = tpu.matmul %6, %8, %cst_4 {dimension_numbers = #tpu.dot_dimension_numbers<[1], [0], [0], [1], [0, 0, 1, 1], [], []>} : vector<48x48xbf16>, vector<48x64xbf16>, vector<48x64xf32> -> vector<48x64xf32>
    %10 = arith.addf %2, %9 : vector<48x64xf32>
    %c8_i32 = arith.constant 8 : i32
    %11 = arith.addi %1, %c8_i32 : i32
    %c0_5 = arith.constant 0 : index
    %12 = arith.index_cast %11 : i32 to index
    %c0_6 = arith.constant 0 : index
    %13 = vector.load %arg1[%c0_5, %12, %c0_6] : memref<2x64x48xbf16, #tpu.memory_space<vmem>>, vector<1x48x48xbf16>
    %14 = vector.shape_cast %13 : vector<1x48x48xbf16> to vector<48x48xbf16>
    %c1 = arith.constant 1 : index
    %c0_7 = arith.constant 0 : index
    %c0_8 = arith.constant 0 : index
    %15 = vector.load %arg2[%c1, %c0_7, %c0_8] : memref<3x48x64xbf16, #tpu.memory_space<vmem>>, vector<1x48x64xbf16>
    %16 = vector.shape_cast %15 : vector<1x48x64xbf16> to vector<48x64xbf16>
    %cst_9 = arith.constant dense<0.000000e+00> : vector<48x64xf32>
    %17 = tpu.matmul %14, %16, %cst_9 {dimension_numbers = #tpu.dot_dimension_numbers<[1], [0], [0], [1], [0, 0, 1, 1], [], []>} : vector<48x48xbf16>, vector<48x64xbf16>, vector<48x64xf32> -> vector<48x64xf32>
    %18 = arith.addf %10, %17 : vector<48x64xf32>
    %c16_i32 = arith.constant 16 : i32
    %19 = arith.addi %1, %c16_i32 : i32
    %c0_10 = arith.constant 0 : index
    %20 = arith.index_cast %19 : i32 to index
    %c0_11 = arith.constant 0 : index
    %21 = vector.load %arg1[%c0_10, %20, %c0_11] : memref<2x64x48xbf16, #tpu.memory_space<vmem>>, vector<1x48x48xbf16>
    %22 = vector.shape_cast %21 : vector<1x48x48xbf16> to vector<48x48xbf16>
    %c2 = arith.constant 2 : index
    %c0_12 = arith.constant 0 : index
    %c0_13 = arith.constant 0 : index
    %23 = vector.load %arg2[%c2, %c0_12, %c0_13] : memref<3x48x64xbf16, #tpu.memory_space<vmem>>, vector<1x48x64xbf16>
    %24 = vector.shape_cast %23 : vector<1x48x64xbf16> to vector<48x64xbf16>
    %cst_14 = arith.constant dense<0.000000e+00> : vector<48x64xf32>
    %25 = tpu.matmul %22, %24, %cst_14 {dimension_numbers = #tpu.dot_dimension_numbers<[1], [0], [0], [1], [0, 0, 1, 1], [], []>} : vector<48x48xbf16>, vector<48x64xbf16>, vector<48x64xf32> -> vector<48x64xf32>
    %26 = arith.addf %18, %25 : vector<48x64xf32>
    %cst_15 = arith.constant 0.000000e+00 : f32
    %27 = vector.broadcast %cst_15 : f32 to vector<48x64xf32>
    %c0_i32_16 = arith.constant 0 : i32
    %28 = arith.addi %1, %c0_i32_16 : i32
    %c1_17 = arith.constant 1 : index
    %29 = arith.index_cast %28 : i32 to index
    %c0_18 = arith.constant 0 : index
    %30 = vector.load %arg1[%c1_17, %29, %c0_18] : memref<2x64x48xbf16, #tpu.memory_space<vmem>>, vector<1x48x48xbf16>
    %31 = vector.shape_cast %30 : vector<1x48x48xbf16> to vector<48x48xbf16>
    %c0_19 = arith.constant 0 : index
    %c0_20 = arith.constant 0 : index
    %c0_21 = arith.constant 0 : index
    %32 = vector.load %arg2[%c0_19, %c0_20, %c0_21] : memref<3x48x64xbf16, #tpu.memory_space<vmem>>, vector<1x48x64xbf16>
    %33 = vector.shape_cast %32 : vector<1x48x64xbf16> to vector<48x64xbf16>
    %cst_22 = arith.constant dense<0.000000e+00> : vector<48x64xf32>
    %34 = tpu.matmul %31, %33, %cst_22 {dimension_numbers = #tpu.dot_dimension_numbers<[1], [0], [0], [1], [0, 0, 1, 1], [], []>} : vector<48x48xbf16>, vector<48x64xbf16>, vector<48x64xf32> -> vector<48x64xf32>
    %35 = arith.addf %27, %34 : vector<48x64xf32>
    %c8_i32_23 = arith.constant 8 : i32
    %36 = arith.addi %1, %c8_i32_23 : i32
    %c1_24 = arith.constant 1 : index
    %37 = arith.index_cast %36 : i32 to index
    %c0_25 = arith.constant 0 : index
    %38 = vector.load %arg1[%c1_24, %37, %c0_25] : memref<2x64x48xbf16, #tpu.memory_space<vmem>>, vector<1x48x48xbf16>
    %39 = vector.shape_cast %38 : vector<1x48x48xbf16> to vector<48x48xbf16>
    %c1_26 = arith.constant 1 : index
    %c0_27 = arith.constant 0 : index
    %c0_28 = arith.constant 0 : index
    %40 = vector.load %arg2[%c1_26, %c0_27, %c0_28] : memref<3x48x64xbf16, #tpu.memory_space<vmem>>, vector<1x48x64xbf16>
    %41 = vector.shape_cast %40 : vector<1x48x64xbf16> to vector<48x64xbf16>
    %cst_29 = arith.constant dense<0.000000e+00> : vector<48x64xf32>
    %42 = tpu.matmul %39, %41, %cst_29 {dimension_numbers = #tpu.dot_dimension_numbers<[1], [0], [0], [1], [0, 0, 1, 1], [], []>} : vector<48x48xbf16>, vector<48x64xbf16>, vector<48x64xf32> -> vector<48x64xf32>
    %43 = arith.addf %35, %42 : vector<48x64xf32>
    %c16_i32_30 = arith.constant 16 : i32
    %44 = arith.addi %1, %c16_i32_30 : i32
    %c1_31 = arith.constant 1 : index
    %45 = arith.index_cast %44 : i32 to index
    %c0_32 = arith.constant 0 : index
    %46 = vector.load %arg1[%c1_31, %45, %c0_32] : memref<2x64x48xbf16, #tpu.memory_space<vmem>>, vector<1x48x48xbf16>
    %47 = vector.shape_cast %46 : vector<1x48x48xbf16> to vector<48x48xbf16>
    %c2_33 = arith.constant 2 : index
    %c0_34 = arith.constant 0 : index
    %c0_35 = arith.constant 0 : index
    %48 = vector.load %arg2[%c2_33, %c0_34, %c0_35] : memref<3x48x64xbf16, #tpu.memory_space<vmem>>, vector<1x48x64xbf16>
    %49 = vector.shape_cast %48 : vector<1x48x64xbf16> to vector<48x64xbf16>
    %cst_36 = arith.constant dense<0.000000e+00> : vector<48x64xf32>
    %50 = tpu.matmul %47, %49, %cst_36 {dimension_numbers = #tpu.dot_dimension_numbers<[1], [0], [0], [1], [0, 0, 1, 1], [], []>} : vector<48x48xbf16>, vector<48x64xbf16>, vector<48x64xf32> -> vector<48x64xf32>
    %51 = arith.addf %43, %50 : vector<48x64xf32>
    %52 = tpu.concatenate %26, %51 in 1 : vector<48x64xf32>, vector<48x64xf32> -> vector<48x128xf32>
    %c0_37 = arith.constant 0 : index
    %c0_38 = arith.constant 0 : index
    %53 = vector.load %arg3[%c0_37, %c0_38] : memref<1x128xf32, #tpu.memory_space<vmem>>, vector<1x128xf32>
    %54 = vector.broadcast %53 : vector<1x128xf32> to vector<48x128xf32>
    %55 = arith.mulf %52, %54 : vector<48x128xf32>
    %c0_39 = arith.constant 0 : index
    %c0_40 = arith.constant 0 : index
    %56 = vector.load %arg4[%c0_39, %c0_40] : memref<1x128xf32, #tpu.memory_space<vmem>>, vector<1x128xf32>
    %57 = vector.broadcast %56 : vector<1x128xf32> to vector<48x128xf32>
    %58 = arith.addf %55, %57 : vector<48x128xf32>
    %cst_41 = arith.constant 0.000000e+00 : f32
    %59 = vector.broadcast %cst_41 : f32 to vector<48x128xf32>
    %60 = arith.maximumf %58, %59 : vector<48x128xf32>
    %c0_42 = arith.constant 0 : index
    %c0_43 = arith.constant 0 : index
    %61 = vector.load %arg5[%c0_42, %c0_43] : memref<48x128xf32, #tpu.memory_space<vmem>>, vector<48x128xf32>
    tpu.vector_store %arg5[%c0_42, %c0_43], %60 {strides = array<i32>} : memref<48x128xf32, #tpu.memory_space<vmem>>, vector<48x128xf32>,
    return
  }
  func.func @transform_0(%arg0: i32) -> (i32, i32, i32) {
    %c0_i32 = arith.constant 0 : i32
    %c0_i32_0 = arith.constant 0 : i32
    %c0_i32_1 = arith.constant 0 : i32
    %c0_i32_2 = arith.constant 0 : i32
    return %c0_i32, %c0_i32_0, %c0_i32_1 : i32, i32, i32
  }
  func.func @transform_1(%arg0: i32) -> (i32, i32, i32) {
    %c0_i32 = arith.constant 0 : i32
    %c0_i32_0 = arith.constant 0 : i32
    %c0_i32_1 = arith.constant 0 : i32
    %c0_i32_2 = arith.constant 0 : i32
    return %c0_i32, %c0_i32_0, %c0_i32_1 : i32, i32, i32
  }
  func.func @transform_2(%arg0: i32) -> (i32, i32) {
    %c0_i32 = arith.constant 0 : i32
    %c0_i32_0 = arith.constant 0 : i32
    %c0_i32_1 = arith.constant 0 : i32
    return %c0_i32, %c0_i32_0 : i32, i32
  }
  func.func @transform_3(%arg0: i32) -> (i32, i32) {
    %c0_i32 = arith.constant 0 : i32
    %c0_i32_0 = arith.constant 0 : i32
    %c0_i32_1 = arith.constant 0 : i32
    return %c0_i32, %c0_i32_0 : i32, i32
  }
  func.func @transform_4(%arg0: i32) -> (i32, i32) {
    %c0_i32 = arith.constant 0 : i32
    %c0_i32_0 = arith.constant 0 : i32
    return %arg0, %c0_i32 : i32, i32
  }
}

module attributes {stable_mosaic.version = 11 : i64} {
  func.func @_xcorr_head_kernel(%arg0: i32, %arg1: memref<229x128xf32, #tpu.memory_space<vmem>>, %arg2: memref<48x128xf32, #tpu.memory_space<vmem>>, %arg3: memref<128x128xbf16, #tpu.memory_space<vmem>>, %arg4: memref<1x128xf32, #tpu.memory_space<vmem>>, %arg5: memref<1x128xf32, #tpu.memory_space<vmem>>, %arg6: memref<128x24xbf16, #tpu.memory_space<vmem>>, %arg7: memref<1x24xf32, #tpu.memory_space<vmem>>, %arg8: memref<72x24xf32, #tpu.memory_space<vmem>>) attributes {dimension_semantics = [#tpu.dimension_semantics<parallel>], iteration_bounds = array<i64: 2>, scalar_prefetch = 0 : i64, scratch_operands = 0 : i64, tpu.core_type = #tpu.core_type<tc>, window_params = [{pipeline_mode = #tpu.pipeline_mode<synchronous>, transform_indices = @transform_0, window_bounds = array<i64: 229, 128>}, {pipeline_mode = #tpu.pipeline_mode<synchronous>, transform_indices = @transform_1, window_bounds = array<i64: 48, 128>}, {pipeline_mode = #tpu.pipeline_mode<synchronous>, transform_indices = @transform_2, window_bounds = array<i64: 128, 128>}, {pipeline_mode = #tpu.pipeline_mode<synchronous>, transform_indices = @transform_3, window_bounds = array<i64: 1, 128>}, {pipeline_mode = #tpu.pipeline_mode<synchronous>, transform_indices = @transform_4, window_bounds = array<i64: 1, 128>}, {pipeline_mode = #tpu.pipeline_mode<synchronous>, transform_indices = @transform_5, window_bounds = array<i64: 128, 24>}, {pipeline_mode = #tpu.pipeline_mode<synchronous>, transform_indices = @transform_6, window_bounds = array<i64: 1, 24>}, {transform_indices = @transform_7, window_bounds = array<i64: 72, 24>}]} {
    %c72_i32 = arith.constant 72 : i32
    %0 = arith.muli %arg0, %c72_i32 : i32
    %1 = tpu.assume_multiple %0, 8 : i32
    %cst = arith.constant 0.000000e+00 : f32
    %2 = vector.broadcast %cst : f32 to vector<72x128xf32>
    %c0_i32 = arith.constant 0 : i32
    %3 = arith.addi %1, %c0_i32 : i32
    %c0_i32_0 = arith.constant 0 : i32
    %4 = arith.addi %3, %c0_i32_0 : i32
    %5 = arith.index_cast %4 : i32 to index
    %c0 = arith.constant 0 : index
    %6 = vector.load %arg1[%5, %c0] : memref<229x128xf32, #tpu.memory_space<vmem>>, vector<72x128xf32>
    %c0_1 = arith.constant 0 : index
    %c0_2 = arith.constant 0 : index
    %7 = vector.load %arg2[%c0_1, %c0_2] : memref<48x128xf32, #tpu.memory_space<vmem>>, vector<1x128xf32>
    %8 = vector.broadcast %7 : vector<1x128xf32> to vector<72x128xf32>
    %9 = arith.mulf %6, %8 : vector<72x128xf32>
    %10 = arith.addf %2, %9 : vector<72x128xf32>
    %c1_i32 = arith.constant 1 : i32
    %11 = arith.addi %3, %c1_i32 : i32
    %12 = arith.index_cast %11 : i32 to index
    %c0_3 = arith.constant 0 : index
    %13 = vector.load %arg1[%12, %c0_3] : memref<229x128xf32, #tpu.memory_space<vmem>>, vector<72x128xf32>
    %c1 = arith.constant 1 : index
    %c0_4 = arith.constant 0 : index
    %14 = vector.load %arg2[%c1, %c0_4] : memref<48x128xf32, #tpu.memory_space<vmem>>, vector<1x128xf32>
    %15 = vector.broadcast %14 : vector<1x128xf32> to vector<72x128xf32>
    %16 = arith.mulf %13, %15 : vector<72x128xf32>
    %17 = arith.addf %10, %16 : vector<72x128xf32>
    %c2_i32 = arith.constant 2 : i32
    %18 = arith.addi %3, %c2_i32 : i32
    %19 = arith.index_cast %18 : i32 to index
    %c0_5 = arith.constant 0 : index
    %20 = vector.load %arg1[%19, %c0_5] : memref<229x128xf32, #tpu.memory_space<vmem>>, vector<72x128xf32>
    %c2 = arith.constant 2 : index
    %c0_6 = arith.constant 0 : index
    %21 = vector.load %arg2[%c2, %c0_6] : memref<48x128xf32, #tpu.memory_space<vmem>>, vector<1x128xf32>
    %22 = vector.broadcast %21 : vector<1x128xf32> to vector<72x128xf32>
    %23 = arith.mulf %20, %22 : vector<72x128xf32>
    %24 = arith.addf %17, %23 : vector<72x128xf32>
    %c3_i32 = arith.constant 3 : i32
    %25 = arith.addi %3, %c3_i32 : i32
    %26 = arith.index_cast %25 : i32 to index
    %c0_7 = arith.constant 0 : index
    %27 = vector.load %arg1[%26, %c0_7] : memref<229x128xf32, #tpu.memory_space<vmem>>, vector<72x128xf32>
    %c3 = arith.constant 3 : index
    %c0_8 = arith.constant 0 : index
    %28 = vector.load %arg2[%c3, %c0_8] : memref<48x128xf32, #tpu.memory_space<vmem>>, vector<1x128xf32>
    %29 = vector.broadcast %28 : vector<1x128xf32> to vector<72x128xf32>
    %30 = arith.mulf %27, %29 : vector<72x128xf32>
    %31 = arith.addf %24, %30 : vector<72x128xf32>
    %c4_i32 = arith.constant 4 : i32
    %32 = arith.addi %3, %c4_i32 : i32
    %33 = arith.index_cast %32 : i32 to index
    %c0_9 = arith.constant 0 : index
    %34 = vector.load %arg1[%33, %c0_9] : memref<229x128xf32, #tpu.memory_space<vmem>>, vector<72x128xf32>
    %c4 = arith.constant 4 : index
    %c0_10 = arith.constant 0 : index
    %35 = vector.load %arg2[%c4, %c0_10] : memref<48x128xf32, #tpu.memory_space<vmem>>, vector<1x128xf32>
    %36 = vector.broadcast %35 : vector<1x128xf32> to vector<72x128xf32>
    %37 = arith.mulf %34, %36 : vector<72x128xf32>
    %38 = arith.addf %31, %37 : vector<72x128xf32>
    %c5_i32 = arith.constant 5 : i32
    %39 = arith.addi %3, %c5_i32 : i32
    %40 = arith.index_cast %39 : i32 to index
    %c0_11 = arith.constant 0 : index
    %41 = vector.load %arg1[%40, %c0_11] : memref<229x128xf32, #tpu.memory_space<vmem>>, vector<72x128xf32>
    %c5 = arith.constant 5 : index
    %c0_12 = arith.constant 0 : index
    %42 = vector.load %arg2[%c5, %c0_12] : memref<48x128xf32, #tpu.memory_space<vmem>>, vector<1x128xf32>
    %43 = vector.broadcast %42 : vector<1x128xf32> to vector<72x128xf32>
    %44 = arith.mulf %41, %43 : vector<72x128xf32>
    %45 = arith.addf %38, %44 : vector<72x128xf32>
    %c16_i32 = arith.constant 16 : i32
    %46 = arith.addi %1, %c16_i32 : i32
    %c0_i32_13 = arith.constant 0 : i32
    %47 = arith.addi %46, %c0_i32_13 : i32
    %48 = arith.index_cast %47 : i32 to index
    %c0_14 = arith.constant 0 : index
    %49 = vector.load %arg1[%48, %c0_14] : memref<229x128xf32, #tpu.memory_space<vmem>>, vector<72x128xf32>
    %c8 = arith.constant 8 : index
    %c0_15 = arith.constant 0 : index
    %50 = vector.load %arg2[%c8, %c0_15] : memref<48x128xf32, #tpu.memory_space<vmem>>, vector<1x128xf32>
    %51 = vector.broadcast %50 : vector<1x128xf32> to vector<72x128xf32>
    %52 = arith.mulf %49, %51 : vector<72x128xf32>
    %53 = arith.addf %45, %52 : vector<72x128xf32>
    %c1_i32_16 = arith.constant 1 : i32
    %54 = arith.addi %46, %c1_i32_16 : i32
    %55 = arith.index_cast %54 : i32 to index
    %c0_17 = arith.constant 0 : index
    %56 = vector.load %arg1[%55, %c0_17] : memref<229x128xf32, #tpu.memory_space<vmem>>, vector<72x128xf32>
    %c9 = arith.constant 9 : index
    %c0_18 = arith.constant 0 : index
    %57 = vector.load %arg2[%c9, %c0_18] : memref<48x128xf32, #tpu.memory_space<vmem>>, vector<1x128xf32>
    %58 = vector.broadcast %57 : vector<1x128xf32> to vector<72x128xf32>
    %59 = arith.mulf %56, %58 : vector<72x128xf32>
    %60 = arith.addf %53, %59 : vector<72x128xf32>
    %c2_i32_19 = arith.constant 2 : i32
    %61 = arith.addi %46, %c2_i32_19 : i32
    %62 = arith.index_cast %61 : i32 to index
    %c0_20 = arith.constant 0 : index
    %63 = vector.load %arg1[%62, %c0_20] : memref<229x128xf32, #tpu.memory_space<vmem>>, vector<72x128xf32>
    %c10 = arith.constant 10 : index
    %c0_21 = arith.constant 0 : index
    %64 = vector.load %arg2[%c10, %c0_21] : memref<48x128xf32, #tpu.memory_space<vmem>>, vector<1x128xf32>
    %65 = vector.broadcast %64 : vector<1x128xf32> to vector<72x128xf32>
    %66 = arith.mulf %63, %65 : vector<72x128xf32>
    %67 = arith.addf %60, %66 : vector<72x128xf32>
    %c3_i32_22 = arith.constant 3 : i32
    %68 = arith.addi %46, %c3_i32_22 : i32
    %69 = arith.index_cast %68 : i32 to index
    %c0_23 = arith.constant 0 : index
    %70 = vector.load %arg1[%69, %c0_23] : memref<229x128xf32, #tpu.memory_space<vmem>>, vector<72x128xf32>
    %c11 = arith.constant 11 : index
    %c0_24 = arith.constant 0 : index
    %71 = vector.load %arg2[%c11, %c0_24] : memref<48x128xf32, #tpu.memory_space<vmem>>, vector<1x128xf32>
    %72 = vector.broadcast %71 : vector<1x128xf32> to vector<72x128xf32>
    %73 = arith.mulf %70, %72 : vector<72x128xf32>
    %74 = arith.addf %67, %73 : vector<72x128xf32>
    %c4_i32_25 = arith.constant 4 : i32
    %75 = arith.addi %46, %c4_i32_25 : i32
    %76 = arith.index_cast %75 : i32 to index
    %c0_26 = arith.constant 0 : index
    %77 = vector.load %arg1[%76, %c0_26] : memref<229x128xf32, #tpu.memory_space<vmem>>, vector<72x128xf32>
    %c12 = arith.constant 12 : index
    %c0_27 = arith.constant 0 : index
    %78 = vector.load %arg2[%c12, %c0_27] : memref<48x128xf32, #tpu.memory_space<vmem>>, vector<1x128xf32>
    %79 = vector.broadcast %78 : vector<1x128xf32> to vector<72x128xf32>
    %80 = arith.mulf %77, %79 : vector<72x128xf32>
    %81 = arith.addf %74, %80 : vector<72x128xf32>
    %c5_i32_28 = arith.constant 5 : i32
    %82 = arith.addi %46, %c5_i32_28 : i32
    %83 = arith.index_cast %82 : i32 to index
    %c0_29 = arith.constant 0 : index
    %84 = vector.load %arg1[%83, %c0_29] : memref<229x128xf32, #tpu.memory_space<vmem>>, vector<72x128xf32>
    %c13 = arith.constant 13 : index
    %c0_30 = arith.constant 0 : index
    %85 = vector.load %arg2[%c13, %c0_30] : memref<48x128xf32, #tpu.memory_space<vmem>>, vector<1x128xf32>
    %86 = vector.broadcast %85 : vector<1x128xf32> to vector<72x128xf32>
    %87 = arith.mulf %84, %86 : vector<72x128xf32>
    %88 = arith.addf %81, %87 : vector<72x128xf32>
    %c32_i32 = arith.constant 32 : i32
    %89 = arith.addi %1, %c32_i32 : i32
    %c0_i32_31 = arith.constant 0 : i32
    %90 = arith.addi %89, %c0_i32_31 : i32
    %91 = arith.index_cast %90 : i32 to index
    %c0_32 = arith.constant 0 : index
    %92 = vector.load %arg1[%91, %c0_32] : memref<229x128xf32, #tpu.memory_space<vmem>>, vector<72x128xf32>
    %c16 = arith.constant 16 : index
    %c0_33 = arith.constant 0 : index
    %93 = vector.load %arg2[%c16, %c0_33] : memref<48x128xf32, #tpu.memory_space<vmem>>, vector<1x128xf32>
    %94 = vector.broadcast %93 : vector<1x128xf32> to vector<72x128xf32>
    %95 = arith.mulf %92, %94 : vector<72x128xf32>
    %96 = arith.addf %88, %95 : vector<72x128xf32>
    %c1_i32_34 = arith.constant 1 : i32
    %97 = arith.addi %89, %c1_i32_34 : i32
    %98 = arith.index_cast %97 : i32 to index
    %c0_35 = arith.constant 0 : index
    %99 = vector.load %arg1[%98, %c0_35] : memref<229x128xf32, #tpu.memory_space<vmem>>, vector<72x128xf32>
    %c17 = arith.constant 17 : index
    %c0_36 = arith.constant 0 : index
    %100 = vector.load %arg2[%c17, %c0_36] : memref<48x128xf32, #tpu.memory_space<vmem>>, vector<1x128xf32>
    %101 = vector.broadcast %100 : vector<1x128xf32> to vector<72x128xf32>
    %102 = arith.mulf %99, %101 : vector<72x128xf32>
    %103 = arith.addf %96, %102 : vector<72x128xf32>
    %c2_i32_37 = arith.constant 2 : i32
    %104 = arith.addi %89, %c2_i32_37 : i32
    %105 = arith.index_cast %104 : i32 to index
    %c0_38 = arith.constant 0 : index
    %106 = vector.load %arg1[%105, %c0_38] : memref<229x128xf32, #tpu.memory_space<vmem>>, vector<72x128xf32>
    %c18 = arith.constant 18 : index
    %c0_39 = arith.constant 0 : index
    %107 = vector.load %arg2[%c18, %c0_39] : memref<48x128xf32, #tpu.memory_space<vmem>>, vector<1x128xf32>
    %108 = vector.broadcast %107 : vector<1x128xf32> to vector<72x128xf32>
    %109 = arith.mulf %106, %108 : vector<72x128xf32>
    %110 = arith.addf %103, %109 : vector<72x128xf32>
    %c3_i32_40 = arith.constant 3 : i32
    %111 = arith.addi %89, %c3_i32_40 : i32
    %112 = arith.index_cast %111 : i32 to index
    %c0_41 = arith.constant 0 : index
    %113 = vector.load %arg1[%112, %c0_41] : memref<229x128xf32, #tpu.memory_space<vmem>>, vector<72x128xf32>
    %c19 = arith.constant 19 : index
    %c0_42 = arith.constant 0 : index
    %114 = vector.load %arg2[%c19, %c0_42] : memref<48x128xf32, #tpu.memory_space<vmem>>, vector<1x128xf32>
    %115 = vector.broadcast %114 : vector<1x128xf32> to vector<72x128xf32>
    %116 = arith.mulf %113, %115 : vector<72x128xf32>
    %117 = arith.addf %110, %116 : vector<72x128xf32>
    %c4_i32_43 = arith.constant 4 : i32
    %118 = arith.addi %89, %c4_i32_43 : i32
    %119 = arith.index_cast %118 : i32 to index
    %c0_44 = arith.constant 0 : index
    %120 = vector.load %arg1[%119, %c0_44] : memref<229x128xf32, #tpu.memory_space<vmem>>, vector<72x128xf32>
    %c20 = arith.constant 20 : index
    %c0_45 = arith.constant 0 : index
    %121 = vector.load %arg2[%c20, %c0_45] : memref<48x128xf32, #tpu.memory_space<vmem>>, vector<1x128xf32>
    %122 = vector.broadcast %121 : vector<1x128xf32> to vector<72x128xf32>
    %123 = arith.mulf %120, %122 : vector<72x128xf32>
    %124 = arith.addf %117, %123 : vector<72x128xf32>
    %c5_i32_46 = arith.constant 5 : i32
    %125 = arith.addi %89, %c5_i32_46 : i32
    %126 = arith.index_cast %125 : i32 to index
    %c0_47 = arith.constant 0 : index
    %127 = vector.load %arg1[%126, %c0_47] : memref<229x128xf32, #tpu.memory_space<vmem>>, vector<72x128xf32>
    %c21 = arith.constant 21 : index
    %c0_48 = arith.constant 0 : index
    %128 = vector.load %arg2[%c21, %c0_48] : memref<48x128xf32, #tpu.memory_space<vmem>>, vector<1x128xf32>
    %129 = vector.broadcast %128 : vector<1x128xf32> to vector<72x128xf32>
    %130 = arith.mulf %127, %129 : vector<72x128xf32>
    %131 = arith.addf %124, %130 : vector<72x128xf32>
    %c48_i32 = arith.constant 48 : i32
    %132 = arith.addi %1, %c48_i32 : i32
    %c0_i32_49 = arith.constant 0 : i32
    %133 = arith.addi %132, %c0_i32_49 : i32
    %134 = arith.index_cast %133 : i32 to index
    %c0_50 = arith.constant 0 : index
    %135 = vector.load %arg1[%134, %c0_50] : memref<229x128xf32, #tpu.memory_space<vmem>>, vector<72x128xf32>
    %c24 = arith.constant 24 : index
    %c0_51 = arith.constant 0 : index
    %136 = vector.load %arg2[%c24, %c0_51] : memref<48x128xf32, #tpu.memory_space<vmem>>, vector<1x128xf32>
    %137 = vector.broadcast %136 : vector<1x128xf32> to vector<72x128xf32>
    %138 = arith.mulf %135, %137 : vector<72x128xf32>
    %139 = arith.addf %131, %138 : vector<72x128xf32>
    %c1_i32_52 = arith.constant 1 : i32
    %140 = arith.addi %132, %c1_i32_52 : i32
    %141 = arith.index_cast %140 : i32 to index
    %c0_53 = arith.constant 0 : index
    %142 = vector.load %arg1[%141, %c0_53] : memref<229x128xf32, #tpu.memory_space<vmem>>, vector<72x128xf32>
    %c25 = arith.constant 25 : index
    %c0_54 = arith.constant 0 : index
    %143 = vector.load %arg2[%c25, %c0_54] : memref<48x128xf32, #tpu.memory_space<vmem>>, vector<1x128xf32>
    %144 = vector.broadcast %143 : vector<1x128xf32> to vector<72x128xf32>
    %145 = arith.mulf %142, %144 : vector<72x128xf32>
    %146 = arith.addf %139, %145 : vector<72x128xf32>
    %c2_i32_55 = arith.constant 2 : i32
    %147 = arith.addi %132, %c2_i32_55 : i32
    %148 = arith.index_cast %147 : i32 to index
    %c0_56 = arith.constant 0 : index
    %149 = vector.load %arg1[%148, %c0_56] : memref<229x128xf32, #tpu.memory_space<vmem>>, vector<72x128xf32>
    %c26 = arith.constant 26 : index
    %c0_57 = arith.constant 0 : index
    %150 = vector.load %arg2[%c26, %c0_57] : memref<48x128xf32, #tpu.memory_space<vmem>>, vector<1x128xf32>
    %151 = vector.broadcast %150 : vector<1x128xf32> to vector<72x128xf32>
    %152 = arith.mulf %149, %151 : vector<72x128xf32>
    %153 = arith.addf %146, %152 : vector<72x128xf32>
    %c3_i32_58 = arith.constant 3 : i32
    %154 = arith.addi %132, %c3_i32_58 : i32
    %155 = arith.index_cast %154 : i32 to index
    %c0_59 = arith.constant 0 : index
    %156 = vector.load %arg1[%155, %c0_59] : memref<229x128xf32, #tpu.memory_space<vmem>>, vector<72x128xf32>
    %c27 = arith.constant 27 : index
    %c0_60 = arith.constant 0 : index
    %157 = vector.load %arg2[%c27, %c0_60] : memref<48x128xf32, #tpu.memory_space<vmem>>, vector<1x128xf32>
    %158 = vector.broadcast %157 : vector<1x128xf32> to vector<72x128xf32>
    %159 = arith.mulf %156, %158 : vector<72x128xf32>
    %160 = arith.addf %153, %159 : vector<72x128xf32>
    %c4_i32_61 = arith.constant 4 : i32
    %161 = arith.addi %132, %c4_i32_61 : i32
    %162 = arith.index_cast %161 : i32 to index
    %c0_62 = arith.constant 0 : index
    %163 = vector.load %arg1[%162, %c0_62] : memref<229x128xf32, #tpu.memory_space<vmem>>, vector<72x128xf32>
    %c28 = arith.constant 28 : index
    %c0_63 = arith.constant 0 : index
    %164 = vector.load %arg2[%c28, %c0_63] : memref<48x128xf32, #tpu.memory_space<vmem>>, vector<1x128xf32>
    %165 = vector.broadcast %164 : vector<1x128xf32> to vector<72x128xf32>
    %166 = arith.mulf %163, %165 : vector<72x128xf32>
    %167 = arith.addf %160, %166 : vector<72x128xf32>
    %c5_i32_64 = arith.constant 5 : i32
    %168 = arith.addi %132, %c5_i32_64 : i32
    %169 = arith.index_cast %168 : i32 to index
    %c0_65 = arith.constant 0 : index
    %170 = vector.load %arg1[%169, %c0_65] : memref<229x128xf32, #tpu.memory_space<vmem>>, vector<72x128xf32>
    %c29 = arith.constant 29 : index
    %c0_66 = arith.constant 0 : index
    %171 = vector.load %arg2[%c29, %c0_66] : memref<48x128xf32, #tpu.memory_space<vmem>>, vector<1x128xf32>
    %172 = vector.broadcast %171 : vector<1x128xf32> to vector<72x128xf32>
    %173 = arith.mulf %170, %172 : vector<72x128xf32>
    %174 = arith.addf %167, %173 : vector<72x128xf32>
    %c64_i32 = arith.constant 64 : i32
    %175 = arith.addi %1, %c64_i32 : i32
    %c0_i32_67 = arith.constant 0 : i32
    %176 = arith.addi %175, %c0_i32_67 : i32
    %177 = arith.index_cast %176 : i32 to index
    %c0_68 = arith.constant 0 : index
    %178 = vector.load %arg1[%177, %c0_68] : memref<229x128xf32, #tpu.memory_space<vmem>>, vector<72x128xf32>
    %c32 = arith.constant 32 : index
    %c0_69 = arith.constant 0 : index
    %179 = vector.load %arg2[%c32, %c0_69] : memref<48x128xf32, #tpu.memory_space<vmem>>, vector<1x128xf32>
    %180 = vector.broadcast %179 : vector<1x128xf32> to vector<72x128xf32>
    %181 = arith.mulf %178, %180 : vector<72x128xf32>
    %182 = arith.addf %174, %181 : vector<72x128xf32>
    %c1_i32_70 = arith.constant 1 : i32
    %183 = arith.addi %175, %c1_i32_70 : i32
    %184 = arith.index_cast %183 : i32 to index
    %c0_71 = arith.constant 0 : index
    %185 = vector.load %arg1[%184, %c0_71] : memref<229x128xf32, #tpu.memory_space<vmem>>, vector<72x128xf32>
    %c33 = arith.constant 33 : index
    %c0_72 = arith.constant 0 : index
    %186 = vector.load %arg2[%c33, %c0_72] : memref<48x128xf32, #tpu.memory_space<vmem>>, vector<1x128xf32>
    %187 = vector.broadcast %186 : vector<1x128xf32> to vector<72x128xf32>
    %188 = arith.mulf %185, %187 : vector<72x128xf32>
    %189 = arith.addf %182, %188 : vector<72x128xf32>
    %c2_i32_73 = arith.constant 2 : i32
    %190 = arith.addi %175, %c2_i32_73 : i32
    %191 = arith.index_cast %190 : i32 to index
    %c0_74 = arith.constant 0 : index
    %192 = vector.load %arg1[%191, %c0_74] : memref<229x128xf32, #tpu.memory_space<vmem>>, vector<72x128xf32>
    %c34 = arith.constant 34 : index
    %c0_75 = arith.constant 0 : index
    %193 = vector.load %arg2[%c34, %c0_75] : memref<48x128xf32, #tpu.memory_space<vmem>>, vector<1x128xf32>
    %194 = vector.broadcast %193 : vector<1x128xf32> to vector<72x128xf32>
    %195 = arith.mulf %192, %194 : vector<72x128xf32>
    %196 = arith.addf %189, %195 : vector<72x128xf32>
    %c3_i32_76 = arith.constant 3 : i32
    %197 = arith.addi %175, %c3_i32_76 : i32
    %198 = arith.index_cast %197 : i32 to index
    %c0_77 = arith.constant 0 : index
    %199 = vector.load %arg1[%198, %c0_77] : memref<229x128xf32, #tpu.memory_space<vmem>>, vector<72x128xf32>
    %c35 = arith.constant 35 : index
    %c0_78 = arith.constant 0 : index
    %200 = vector.load %arg2[%c35, %c0_78] : memref<48x128xf32, #tpu.memory_space<vmem>>, vector<1x128xf32>
    %201 = vector.broadcast %200 : vector<1x128xf32> to vector<72x128xf32>
    %202 = arith.mulf %199, %201 : vector<72x128xf32>
    %203 = arith.addf %196, %202 : vector<72x128xf32>
    %c4_i32_79 = arith.constant 4 : i32
    %204 = arith.addi %175, %c4_i32_79 : i32
    %205 = arith.index_cast %204 : i32 to index
    %c0_80 = arith.constant 0 : index
    %206 = vector.load %arg1[%205, %c0_80] : memref<229x128xf32, #tpu.memory_space<vmem>>, vector<72x128xf32>
    %c36 = arith.constant 36 : index
    %c0_81 = arith.constant 0 : index
    %207 = vector.load %arg2[%c36, %c0_81] : memref<48x128xf32, #tpu.memory_space<vmem>>, vector<1x128xf32>
    %208 = vector.broadcast %207 : vector<1x128xf32> to vector<72x128xf32>
    %209 = arith.mulf %206, %208 : vector<72x128xf32>
    %210 = arith.addf %203, %209 : vector<72x128xf32>
    %c5_i32_82 = arith.constant 5 : i32
    %211 = arith.addi %175, %c5_i32_82 : i32
    %212 = arith.index_cast %211 : i32 to index
    %c0_83 = arith.constant 0 : index
    %213 = vector.load %arg1[%212, %c0_83] : memref<229x128xf32, #tpu.memory_space<vmem>>, vector<72x128xf32>
    %c37 = arith.constant 37 : index
    %c0_84 = arith.constant 0 : index
    %214 = vector.load %arg2[%c37, %c0_84] : memref<48x128xf32, #tpu.memory_space<vmem>>, vector<1x128xf32>
    %215 = vector.broadcast %214 : vector<1x128xf32> to vector<72x128xf32>
    %216 = arith.mulf %213, %215 : vector<72x128xf32>
    %217 = arith.addf %210, %216 : vector<72x128xf32>
    %c80_i32 = arith.constant 80 : i32
    %218 = arith.addi %1, %c80_i32 : i32
    %c0_i32_85 = arith.constant 0 : i32
    %219 = arith.addi %218, %c0_i32_85 : i32
    %220 = arith.index_cast %219 : i32 to index
    %c0_86 = arith.constant 0 : index
    %221 = vector.load %arg1[%220, %c0_86] : memref<229x128xf32, #tpu.memory_space<vmem>>, vector<72x128xf32>
    %c40 = arith.constant 40 : index
    %c0_87 = arith.constant 0 : index
    %222 = vector.load %arg2[%c40, %c0_87] : memref<48x128xf32, #tpu.memory_space<vmem>>, vector<1x128xf32>
    %223 = vector.broadcast %222 : vector<1x128xf32> to vector<72x128xf32>
    %224 = arith.mulf %221, %223 : vector<72x128xf32>
    %225 = arith.addf %217, %224 : vector<72x128xf32>
    %c1_i32_88 = arith.constant 1 : i32
    %226 = arith.addi %218, %c1_i32_88 : i32
    %227 = arith.index_cast %226 : i32 to index
    %c0_89 = arith.constant 0 : index
    %228 = vector.load %arg1[%227, %c0_89] : memref<229x128xf32, #tpu.memory_space<vmem>>, vector<72x128xf32>
    %c41 = arith.constant 41 : index
    %c0_90 = arith.constant 0 : index
    %229 = vector.load %arg2[%c41, %c0_90] : memref<48x128xf32, #tpu.memory_space<vmem>>, vector<1x128xf32>
    %230 = vector.broadcast %229 : vector<1x128xf32> to vector<72x128xf32>
    %231 = arith.mulf %228, %230 : vector<72x128xf32>
    %232 = arith.addf %225, %231 : vector<72x128xf32>
    %c2_i32_91 = arith.constant 2 : i32
    %233 = arith.addi %218, %c2_i32_91 : i32
    %234 = arith.index_cast %233 : i32 to index
    %c0_92 = arith.constant 0 : index
    %235 = vector.load %arg1[%234, %c0_92] : memref<229x128xf32, #tpu.memory_space<vmem>>, vector<72x128xf32>
    %c42 = arith.constant 42 : index
    %c0_93 = arith.constant 0 : index
    %236 = vector.load %arg2[%c42, %c0_93] : memref<48x128xf32, #tpu.memory_space<vmem>>, vector<1x128xf32>
    %237 = vector.broadcast %236 : vector<1x128xf32> to vector<72x128xf32>
    %238 = arith.mulf %235, %237 : vector<72x128xf32>
    %239 = arith.addf %232, %238 : vector<72x128xf32>
    %c3_i32_94 = arith.constant 3 : i32
    %240 = arith.addi %218, %c3_i32_94 : i32
    %241 = arith.index_cast %240 : i32 to index
    %c0_95 = arith.constant 0 : index
    %242 = vector.load %arg1[%241, %c0_95] : memref<229x128xf32, #tpu.memory_space<vmem>>, vector<72x128xf32>
    %c43 = arith.constant 43 : index
    %c0_96 = arith.constant 0 : index
    %243 = vector.load %arg2[%c43, %c0_96] : memref<48x128xf32, #tpu.memory_space<vmem>>, vector<1x128xf32>
    %244 = vector.broadcast %243 : vector<1x128xf32> to vector<72x128xf32>
    %245 = arith.mulf %242, %244 : vector<72x128xf32>
    %246 = arith.addf %239, %245 : vector<72x128xf32>
    %c4_i32_97 = arith.constant 4 : i32
    %247 = arith.addi %218, %c4_i32_97 : i32
    %248 = arith.index_cast %247 : i32 to index
    %c0_98 = arith.constant 0 : index
    %249 = vector.load %arg1[%248, %c0_98] : memref<229x128xf32, #tpu.memory_space<vmem>>, vector<72x128xf32>
    %c44 = arith.constant 44 : index
    %c0_99 = arith.constant 0 : index
    %250 = vector.load %arg2[%c44, %c0_99] : memref<48x128xf32, #tpu.memory_space<vmem>>, vector<1x128xf32>
    %251 = vector.broadcast %250 : vector<1x128xf32> to vector<72x128xf32>
    %252 = arith.mulf %249, %251 : vector<72x128xf32>
    %253 = arith.addf %246, %252 : vector<72x128xf32>
    %c5_i32_100 = arith.constant 5 : i32
    %254 = arith.addi %218, %c5_i32_100 : i32
    %255 = arith.index_cast %254 : i32 to index
    %c0_101 = arith.constant 0 : index
    %256 = vector.load %arg1[%255, %c0_101] : memref<229x128xf32, #tpu.memory_space<vmem>>, vector<72x128xf32>
    %c45 = arith.constant 45 : index
    %c0_102 = arith.constant 0 : index
    %257 = vector.load %arg2[%c45, %c0_102] : memref<48x128xf32, #tpu.memory_space<vmem>>, vector<1x128xf32>
    %258 = vector.broadcast %257 : vector<1x128xf32> to vector<72x128xf32>
    %259 = arith.mulf %256, %258 : vector<72x128xf32>
    %260 = arith.addf %253, %259 : vector<72x128xf32>
    %261 = arith.truncf %260 : vector<72x128xf32> to vector<72x128xbf16>
    %c0_103 = arith.constant 0 : index
    %c0_104 = arith.constant 0 : index
    %262 = vector.load %arg3[%c0_103, %c0_104] : memref<128x128xbf16, #tpu.memory_space<vmem>>, vector<128x128xbf16>
    %cst_105 = arith.constant dense<0.000000e+00> : vector<72x128xf32>
    %263 = tpu.matmul %261, %262, %cst_105 {dimension_numbers = #tpu.dot_dimension_numbers<[1], [0], [0], [1], [0, 0, 1, 1], [], []>} : vector<72x128xbf16>, vector<128x128xbf16>, vector<72x128xf32> -> vector<72x128xf32>
    %c0_106 = arith.constant 0 : index
    %c0_107 = arith.constant 0 : index
    %264 = vector.load %arg4[%c0_106, %c0_107] : memref<1x128xf32, #tpu.memory_space<vmem>>, vector<1x128xf32>
    %265 = vector.broadcast %264 : vector<1x128xf32> to vector<72x128xf32>
    %266 = arith.mulf %263, %265 : vector<72x128xf32>
    %c0_108 = arith.constant 0 : index
    %c0_109 = arith.constant 0 : index
    %267 = vector.load %arg5[%c0_108, %c0_109] : memref<1x128xf32, #tpu.memory_space<vmem>>, vector<1x128xf32>
    %268 = vector.broadcast %267 : vector<1x128xf32> to vector<72x128xf32>
    %269 = arith.addf %266, %268 : vector<72x128xf32>
    %cst_110 = arith.constant 0.000000e+00 : f32
    %270 = vector.broadcast %cst_110 : f32 to vector<72x128xf32>
    %271 = arith.maximumf %269, %270 : vector<72x128xf32>
    %272 = arith.truncf %271 : vector<72x128xf32> to vector<72x128xbf16>
    %c0_111 = arith.constant 0 : index
    %c0_112 = arith.constant 0 : index
    %273 = vector.load %arg6[%c0_111, %c0_112] : memref<128x24xbf16, #tpu.memory_space<vmem>>, vector<128x24xbf16>
    %cst_113 = arith.constant dense<0.000000e+00> : vector<72x24xf32>
    %274 = tpu.matmul %272, %273, %cst_113 {dimension_numbers = #tpu.dot_dimension_numbers<[1], [0], [0], [1], [0, 0, 1, 1], [], []>} : vector<72x128xbf16>, vector<128x24xbf16>, vector<72x24xf32> -> vector<72x24xf32>
    %c0_114 = arith.constant 0 : index
    %c0_115 = arith.constant 0 : index
    %275 = vector.load %arg7[%c0_114, %c0_115] : memref<1x24xf32, #tpu.memory_space<vmem>>, vector<1x24xf32>
    %276 = vector.broadcast %275 : vector<1x24xf32> to vector<72x24xf32>
    %277 = arith.addf %274, %276 : vector<72x24xf32>
    %c0_116 = arith.constant 0 : index
    %c0_117 = arith.constant 0 : index
    %278 = vector.load %arg8[%c0_116, %c0_117] : memref<72x24xf32, #tpu.memory_space<vmem>>, vector<72x24xf32>
    tpu.vector_store %arg8[%c0_116, %c0_117], %277 {strides = array<i32>} : memref<72x24xf32, #tpu.memory_space<vmem>>, vector<72x24xf32>,
    return
  }
  func.func @transform_0(%arg0: i32) -> (i32, i32) {
    %c0_i32 = arith.constant 0 : i32
    %c0_i32_0 = arith.constant 0 : i32
    %c0_i32_1 = arith.constant 0 : i32
    return %c0_i32, %c0_i32_0 : i32, i32
  }
  func.func @transform_1(%arg0: i32) -> (i32, i32) {
    %c0_i32 = arith.constant 0 : i32
    %c0_i32_0 = arith.constant 0 : i32
    %c0_i32_1 = arith.constant 0 : i32
    return %c0_i32, %c0_i32_0 : i32, i32
  }
  func.func @transform_2(%arg0: i32) -> (i32, i32) {
    %c0_i32 = arith.constant 0 : i32
    %c0_i32_0 = arith.constant 0 : i32
    %c0_i32_1 = arith.constant 0 : i32
    return %c0_i32, %c0_i32_0 : i32, i32
  }
  func.func @transform_3(%arg0: i32) -> (i32, i32) {
    %c0_i32 = arith.constant 0 : i32
    %c0_i32_0 = arith.constant 0 : i32
    %c0_i32_1 = arith.constant 0 : i32
    return %c0_i32, %c0_i32_0 : i32, i32
  }
  func.func @transform_4(%arg0: i32) -> (i32, i32) {
    %c0_i32 = arith.constant 0 : i32
    %c0_i32_0 = arith.constant 0 : i32
    %c0_i32_1 = arith.constant 0 : i32
    return %c0_i32, %c0_i32_0 : i32, i32
  }
  func.func @transform_5(%arg0: i32) -> (i32, i32) {
    %c0_i32 = arith.constant 0 : i32
    %c0_i32_0 = arith.constant 0 : i32
    %c0_i32_1 = arith.constant 0 : i32
    return %c0_i32, %c0_i32_0 : i32, i32
  }
  func.func @transform_6(%arg0: i32) -> (i32, i32) {
    %c0_i32 = arith.constant 0 : i32
    %c0_i32_0 = arith.constant 0 : i32
    %c0_i32_1 = arith.constant 0 : i32
    return %c0_i32, %c0_i32_0 : i32, i32
  }
  func.func @transform_7(%arg0: i32) -> (i32, i32) {
    %c0_i32 = arith.constant 0 : i32
    %c0_i32_0 = arith.constant 0 : i32
    return %arg0, %c0_i32 : i32, i32
  }
}

</mosaic_0001>

<bundles_post_ra>
// kernel: depthwise_rpn_forward.3
= control target key start
LH: loop header
LB: loop body
LE: loop exit
PB: predicated region body
PF: predicated region fallthrough
CT: control target
= control target key end

     0   :  { %v1052_v0 = vmov 0.0   ;;  %vm1053_vm0 = vmmov 0   ;;  %vm86_vm1 = vcmask 392192   ;;  %s1054_s16 = smov 64   ;;  %vm675_vm2 = vcmask 523264   ;;  %s1263_s1 = inlined_call_operand.vmem [shape: bf16[3,48,64], index: 1, kind: input, shape index: {}]   ;;  %s1264_s0 = inlined_call_operand.vmem [shape: bf16[2,64,48], index: 0, kind: input, shape index: {}]   ;;  %s1265_s2 = inlined_call_operand.vmem [shape: f32[1,128], index: 2, kind: input, shape index: {}]   ;;  %s1266_s3 = inlined_call_operand.vmem [shape: f32[1,128], index: 3, kind: input, shape index: {}]   ;;  %s1267_s4 = inlined_call_operand.vmem [shape: f32[48,128], index: 4, kind: output, shape index: {}]  }
   0x1   :  { %920 = vmatprep.subr.bf16.mxu1 %v1052_v0  ;;  %v1025_v1 = vld [vmem:[%s1263_s1 + $0x18] sm:$0xff]   ;;  %926 = vmatprep.mubr.msk.bf16.mxu1 %vm1053_vm0, %v1052_v0  ;;  %v1026_v2 = vld [vmem:[%s1263_s1 + $0x20] sm:$0xff]   ;;  %v1027_v3 = vld [vmem:[%s1263_s1 + $0x28] sm:$0xff]  }
   0x2   :  { %866 = vmatprep.subr.bf16.mxu0 %v1052_v0  ;;  %872 = vmatprep.mubr.msk.bf16.mxu0 %vm1053_vm0, %v1052_v0  ;;  %v1028_v4 = vld [vmem:[%s1264_s0 + $0x24] sm:$0xff]   ;;  %v1030_v7 = vld [vmem:[%s1264_s0 + $0x2c] sm:$0xff]   ;;  %v1032_v11 = vld [vmem:[%s1264_s0 + $0x34] sm:$0xff]  }
   0x3   :  { %921 = vmatpush3.bf16.msra.mxu1 %v1025_v1  ;;  %867 = vmatpush3.bf16.msra.mxu0 %v1025_v1  ;;  %v1029_v5 = vld [vmem:[%s1263_s1] sm:$0xff]   ;;  %v1031_v6 = vld [vmem:[%s1263_s1 + $0x8] sm:$0xff]   ;;  %v1033_v8 = vld [vmem:[%s1263_s1 + $0x10] sm:$0xff]  }
   0x4   :  { %922 = vmatprep.subr.bf16.mxu1 %v1052_v0  ;;  %868 = vmatprep.subr.bf16.mxu0 %v1052_v0  ;;  %v1043_v9 = vld [vmem:[%s1264_s0 + $0x4] sm:$0xff]   ;;  %v1044_v10 = vld [vmem:[%s1264_s0 + $0xc] sm:$0xff]   ;;  %v1045_v12 = vld [vmem:[%s1264_s0 + $0x14] sm:$0xff]  }
   0x5   :  { %v1034_v13 = vld [vmem:[%s1264_s0 + $0x20] sm:$0xff]   ;;  %v1035_v14 = vld [vmem:[%s1263_s1 + $0x30] sm:$0xff]   ;;  %v1037_v15 = vld [vmem:[%s1263_s1 + $0x38] sm:$0xff]  }
   0x6   :  { %v1046_v16 = vld [vmem:[%s1264_s0] sm:$0xff]   ;;  %v1036_v17 = vld [vmem:[%s1264_s0 + $0x28] sm:$0xff]   ;;  %v1038_v20 = vld [vmem:[%s1264_s0 + $0x30] sm:$0xff]  }
   0x7   :  { %923 = vmatpush3.bf16.msra.mxu1 %v1026_v2  ;;  %869 = vmatpush3.bf16.msra.mxu0 %v1026_v2  ;;  %v1039_v18 = vld [vmem:[%s1263_s1 + $0x40] sm:$0xff]   ;;  %v1047_v19 = vld [vmem:[%s1264_s0 + $0x8] sm:$0xff]   ;;  %v1048_v21 = vld [vmem:[%s1264_s0 + $0x10] sm:$0xff]  }
   0x8   :  { %924 = vmatprep.subr.bf16.mxu1 %v1052_v0  ;;  %870 = vmatprep.subr.bf16.mxu0 %v1052_v0  ;;  %v1040_v22 = vld [vmem:[%s1264_s0 + $0x28] sm:$0xff]   ;;  %v1041_v24 = vld [vmem:[%s1264_s0 + $0x30] sm:$0xff]   ;;  %v1042_v26 = vld [vmem:[%s1264_s0 + $0x38] sm:$0xff]  }
   0x9   :  { %v1049_v23 = vld [vmem:[%s1264_s0 + $0x8] sm:$0xff]   ;;  %v1050_v25 = vld [vmem:[%s1264_s0 + $0x10] sm:$0xff]   ;;  %v1051_v27 = vld [vmem:[%s1264_s0 + $0x18] sm:$0xff]  }
   0xa   :  { %v828_v52 = vld [vmem:[%s1265_s2] ss:$0 sm:$0xff] }
   0xb   :  { %925 = vmatpush3.bf16.msra.mxu1 %v1027_v3  ;;  %871 = vmatpush3.bf16.msra.mxu0 %v1027_v3  ;;  %v829_v54 = vld [vmem:[%s1266_s3] ss:$0 sm:$0xff] }
   0xc   :  { %938 = vmatprep.subr.bf16.mxu1 %v1052_v0  ;;  %884 = vmatprep.subr.bf16.mxu0 %v1052_v0 }
   0xe   :  { %927 = vmatmul.mubr.msk.bf16.vlgmr.msra.gmra.mrb[0].mxu1 %vm86_vm1, %v1028_v4  ;;  %873 = vmatmul.mubr.msk.bf16.vlgmr.msra.gmra.mrb[0].mxu0 %vm86_vm1, %v1043_v9 }
   0xf   :  { %939 = vmatpush3.bf16.msra.mxu1 %v1029_v5  ;;  %930 = vmatprep.mubr.msk.bf16.mxu1 %vm1053_vm0, %v1052_v0 }
  0x10   :  { %940 = vmatprep.subr.bf16.mxu1 %v1052_v0  ;;  %876 = vmatprep.mubr.msk.bf16.mxu0 %vm1053_vm0, %v1052_v0 }
  0x11   :  { %885 = vmatpush3.bf16.msra.mxu0 %v1029_v5 }
  0x12   :  { %886 = vmatprep.subr.bf16.mxu0 %v1052_v0 }
  0x13   :  { %941 = vmatpush3.bf16.msra.mxu1 %v1031_v6 }
  0x14   :  { %942 = vmatprep.subr.bf16.mxu1 %v1052_v0 }
  0x15   :  { %887 = vmatpush3.bf16.msra.mxu0 %v1031_v6 }
  0x16   :  { %931 = vmatmul.mubr.msk.bf16.gmra.mrb[4].mxu1 %vm86_vm1, %v1030_v7  ;;  %877 = vmatmul.mubr.msk.bf16.gmra.mrb[4].mxu0 %vm86_vm1, %v1044_v10 }
  0x17   :  { %934 = vmatprep.mubr.msk.bf16.mxu1 %vm1053_vm0, %v1052_v0  ;;  %943 = vmatpush3.bf16.msra.mxu1 %v1033_v8 }
  0x18   :  { %956 = vmatprep.subr.bf16.mxu1 %v1052_v0  ;;  %888 = vmatprep.subr.bf16.mxu0 %v1052_v0 }
  0x19   :  { %880 = vmatprep.mubr.msk.bf16.mxu0 %vm1053_vm0, %v1052_v0  ;;  %889 = vmatpush3.bf16.msra.mxu0 %v1033_v8 }
  0x1a   :  { %902 = vmatprep.subr.bf16.mxu0 %v1052_v0 }
  0x1e   :  { %935 = vmatmul.mubr.msk.bf16.gmra.mrb[8].mxu1 %vm86_vm1, %v1032_v11  ;;  %881 = vmatmul.mubr.msk.bf16.gmra.mrb[8].mxu0 %vm86_vm1, %v1045_v12 }
  0x1f   :  { %944 = vmatprep.mubr.msk.bf16.mxu1 %vm1053_vm0, %v1052_v0  ;;  %890 = vmatprep.mubr.msk.bf16.mxu0 %vm1053_vm0, %v1052_v0 }
  0x26   :  { %945 = vmatmul.mubr.msk.bf16.vlgmr.msra.gmra.mrb[0].mxu1 %vm86_vm1, %v1034_v13  ;;  %891 = vmatmul.mubr.msk.bf16.vlgmr.msra.gmra.mrb[0].mxu0 %vm86_vm1, %v1046_v16 }
  0x27   :  { %957 = vmatpush3.bf16.msra.mxu1 %v1035_v14  ;;  %948 = vmatprep.mubr.msk.bf16.mxu1 %vm1053_vm0, %v1052_v0 }
  0x28   :  { %958 = vmatprep.subr.bf16.mxu1 %v1052_v0  ;;  %894 = vmatprep.mubr.msk.bf16.mxu0 %vm1053_vm0, %v1052_v0 }
  0x29   :  { %903 = vmatpush3.bf16.msra.mxu0 %v1035_v14 }
  0x2a   :  { %904 = vmatprep.subr.bf16.mxu0 %v1052_v0 }
  0x2b   :  { %959 = vmatpush3.bf16.msra.mxu1 %v1037_v15 }
  0x2c   :  { %960 = vmatprep.subr.bf16.mxu1 %v1052_v0 }
  0x2d   :  { %905 = vmatpush3.bf16.msra.mxu0 %v1037_v15 }
  0x2e   :  { %949 = vmatmul.mubr.msk.bf16.gmra.mrb[4].mxu1 %vm86_vm1, %v1036_v17  ;;  %895 = vmatmul.mubr.msk.bf16.gmra.mrb[4].mxu0 %vm86_vm1, %v1047_v19 }
  0x2f   :  { %952 = vmatprep.mubr.msk.bf16.mxu1 %vm1053_vm0, %v1052_v0  ;;  %961 = vmatpush3.bf16.msra.mxu1 %v1039_v18 }
  0x30   :  { %906 = vmatprep.subr.bf16.mxu0 %v1052_v0  ;;  %898 = vmatprep.mubr.msk.bf16.mxu0 %vm1053_vm0, %v1052_v0 }
  0x31   :  { %907 = vmatpush3.bf16.msra.mxu0 %v1039_v18 }
  0x36   :  { %953 = vmatmul.mubr.msk.bf16.gmra.mrb[8].mxu1 %vm86_vm1, %v1038_v20  ;;  %899 = vmatmul.mubr.msk.bf16.gmra.mrb[8].mxu0 %vm86_vm1, %v1048_v21 }
  0x37   :  { %962 = vmatprep.mubr.msk.bf16.mxu1 %vm1053_vm0, %v1052_v0  ;;  %908 = vmatprep.mubr.msk.bf16.mxu0 %vm1053_vm0, %v1052_v0 }
  0x3e   :  { %963 = vmatmul.mubr.msk.bf16.vlgmr.msra.gmra.mrb[0].mxu1 %vm86_vm1, %v1040_v22  ;;  %909 = vmatmul.mubr.msk.bf16.vlgmr.msra.gmra.mrb[0].mxu0 %vm86_vm1, %v1049_v23 }
  0x3f   :  { %966 = vmatprep.mubr.msk.bf16.mxu1 %vm1053_vm0, %v1052_v0  ;;  %912 = vmatprep.mubr.msk.bf16.mxu0 %vm1053_vm0, %v1052_v0 }
  0x46   :  { %967 = vmatmul.mubr.msk.bf16.gmra.mrb[4].mxu1 %vm86_vm1, %v1041_v24  ;;  %913 = vmatmul.mubr.msk.bf16.gmra.mrb[4].mxu0 %vm86_vm1, %v1050_v25 }
  0x47   :  { %970 = vmatprep.mubr.msk.bf16.mxu1 %vm1053_vm0, %v1052_v0  ;;  %916 = vmatprep.mubr.msk.bf16.mxu0 %vm1053_vm0, %v1052_v0 }
  0x4e   :  { %971 = vmatmul.mubr.msk.bf16.gmra.mrb[8].mxu1 %vm86_vm1, %v1042_v26  ;;  %917 = vmatmul.mubr.msk.bf16.gmra.mrb[8].mxu0 %vm86_vm1, %v1051_v27 }
 0x111   :  { %v622_v28 = vpop.f32.mrb[0].mxu1  ;;  %v346_v32 = vpop.f32.mrb[0].mxu0 }
 0x112   :  { %657 = vrot.lane.b32.xlu0 %v622_v28, %s1054_s16  ;;  %v964_v29 = vpop.f32.mrb[1].mxu1  ;;  %v910_v34 = vpop.f32.mrb[1].mxu0 }
 0x113   :  { %v625_v30 = vpop.f32.mrb[2].mxu1  ;;  %v349_v36 = vpop.f32.mrb[2].mxu0 }
 0x114   :  { %v965_v31 = vpop.f32.mrb[3].mxu1  ;;  %v911_v38 = vpop.f32.mrb[3].mxu0 }
 0x116   :  { %659 = vrot.lane.b32.xlu0 %v625_v30, %s1054_s16 }
 0x119   :  { %v630_v33 = vpop.f32.mrb[4].mxu1  ;;  %v354_v40 = vpop.f32.mrb[4].mxu0 }
 0x11a   :  { %661 = vrot.lane.b32.xlu1 %v630_v33, %s1054_s16  ;;  %v968_v35 = vpop.f32.mrb[5].mxu1  ;;  %v914_v42 = vpop.f32.mrb[5].mxu0 }
 0x11b   :  { %v633_v37 = vpop.f32.mrb[6].mxu1  ;;  %v357_v44 = vpop.f32.mrb[6].mxu0 }
 0x11c   :  { %v969_v39 = vpop.f32.mrb[7].mxu1  ;;  %v915_v46 = vpop.f32.mrb[7].mxu0 }
 0x11e   :  { %663 = vrot.lane.b32.xlu1 %v633_v37, %s1054_s16 }
 0x121   :  { %v638_v41 = vpop.f32.mrb[8].mxu1  ;;  %v362_v48 = vpop.f32.mrb[8].mxu0 }
 0x122   :  { %665 = vrot.lane.b32.xlu0 %v638_v41, %s1054_s16  ;;  %v972_v43 = vpop.f32.mrb[9].mxu1  ;;  %v918_v49 = vpop.f32.mrb[9].mxu0 }
 0x123   :  { %v641_v45 = vpop.f32.mrb[10].mxu1  ;;  %v365_v50 = vpop.f32.mrb[10].mxu0 }
 0x124   :  { %667 = vrot.lane.b32.xlu1 %v641_v45, %s1054_s16  ;;  %v973_v47 = vpop.f32.mrb[11].mxu1  ;;  %v919_v51 = vpop.f32.mrb[11].mxu0 }
 0x184   :  { %v658_v53 = vpop.permute.xlu0 %657 }
 0x185   :  { %v676_v55 = vsel %vm675_vm2, %v346_v32, %v658_v53 }
 0x186   :  { %v689_v56 = vmul.f32 %v828_v52, %v676_v55 }
 0x188   :  { %v702_v57 = vadd.f32 %v829_v54, %v689_v56  ;;  %v660_v58 = vpop.permute.xlu0 %659 }
 0x189   :  { %v677_v59 = vsel %vm675_vm2, %v349_v36, %v660_v58 }
 0x18a   :  { %v708_v60 = vmax.f32 %v702_v57, 0.0  ;;  %v690_v61 = vmul.f32 %v828_v52, %v677_v59 }
 0x18c   :  { %714 = vst [vmem:[%s1267_s4] sm:$0xff] %v708_v60  ;;  %v703_v62 = vadd.f32 %v829_v54, %v690_v61  ;;  %v662_v63 = vpop.permute.xlu1 %661 }
 0x18d   :  { %v678_v0 = vsel %vm675_vm2, %v354_v40, %v662_v63 }
 0x18e   :  { %v709_v1 = vmax.f32 %v703_v62, 0.0  ;;  %v691_v2 = vmul.f32 %v828_v52, %v678_v0 }
 0x190   :  { %715 = vst [vmem:[%s1267_s4 + $0x8] sm:$0xff] %v709_v1  ;;  %v704_v3 = vadd.f32 %v829_v54, %v691_v2  ;;  %v664_v4 = vpop.permute.xlu1 %663 }
 0x191   :  { %v679_v5 = vsel %vm675_vm2, %v357_v44, %v664_v4 }
 0x192   :  { %v710_v6 = vmax.f32 %v704_v3, 0.0  ;;  %v692_v7 = vmul.f32 %v828_v52, %v679_v5 }
 0x194   :  { %716 = vst [vmem:[%s1267_s4 + $0x10] sm:$0xff] %v710_v6  ;;  %v705_v8 = vadd.f32 %v829_v54, %v692_v7  ;;  %v666_v9 = vpop.permute.xlu0 %665 }
 0x195   :  { %v680_v10 = vsel %vm675_vm2, %v362_v48, %v666_v9 }
 0x196   :  { %v711_v11 = vmax.f32 %v705_v8, 0.0  ;;  %v693_v12 = vmul.f32 %v828_v52, %v680_v10  ;;  %v668_v13 = vpop.permute.xlu1 %667 }
 0x197   :  { %v681_v14 = vsel %vm675_vm2, %v365_v50, %v668_v13 }
 0x198   :  { %717 = vst [vmem:[%s1267_s4 + $0x18] sm:$0xff] %v711_v11  ;;  %v706_v15 = vadd.f32 %v829_v54, %v693_v12  ;;  %v694_v16 = vmul.f32 %v828_v52, %v681_v14 }
 0x19a   :  { %v712_v17 = vmax.f32 %v706_v15, 0.0  ;;  %v707_v18 = vadd.f32 %v829_v54, %v694_v16 }
 0x19c   :  { %718 = vst [vmem:[%s1267_s4 + $0x20] sm:$0xff] %v712_v17  ;;  %v713_v19 = vmax.f32 %v707_v18, 0.0 }
 0x19e   :  { %719 = vst [vmem:[%s1267_s4 + $0x28] sm:$0xff] %v713_v19 }

// kernel: depthwise_rpn_forward.4
= control target key start
LH: loop header
LB: loop body
LE: loop exit
PB: predicated region body
PF: predicated region fallthrough
CT: control target
= control target key end

     0   :  { %s2485_s15 = smov 0   ;;  %s2487_s16 = smov 0   ;;  %s2857_s0 = inlined_call_operand.vmem [shape: bf16[2,272,48], index: 0, kind: input, shape index: {}]   ;;  %s2858_s1 = inlined_call_operand.vmem [shape: bf16[3,48,64], index: 1, kind: input, shape index: {}]   ;;  %s2859_s2 = inlined_call_operand.vmem [shape: f32[1,128], index: 2, kind: input, shape index: {}]   ;;  %s2860_s3 = inlined_call_operand.vmem [shape: f32[1,128], index: 3, kind: input, shape index: {}]   ;;  %s2861_s4 = inlined_call_operand.vmem [shape: f32[229,128], index: 4, kind: output, shape index: {}]  }
   0x1   :  { %s2489_s17 = smov 0  }
   0x2 LB: > { %s2498_s18 = sadd.s32 4294967295, %s2425_s17   ;;  %s2500_s19 = sadd.s32 1, %s2425_s17   ;;  %s2425_s17 = sphi %s2489_s17, %s2868_s17   ;;  %s2421_s16 = sphi %s2487_s16, %s2867_s16   ;;  %s2417_s15 = sphi %s2485_s15, %s2866_s15  }
   0x3   : > { %s102_s20 = ssub.s32 %s2425_s17, %s2500_s19  ;;  %s105_s21 = sadd.s32 1, %s2421_s16 }
   0x4   : > { %p103_p0 = scmp.eq.s32.totalorder %s102_s20, 0  ;;  %p115_p1 = scmp.ne.s32.totalorder %s2421_s16, %s2417_s15 }
   0x5   : > { %p116_p2 = scmp.eq.s32.totalorder %s2498_s18, 1  ;;  %p1773_p3 = scmp.ge.s32.totalorder %s2425_s17, 1 }
   0x6   : > { %s2508_s22 = scalar_select %p103_p0, %s2421_s16, %s105_s21  }
   0x7   : > { %p2510_p4 = por %p116_p2, %p115_p1  ;;  %p152_p5 = scmp.lt.s32.totalorder %s2425_s17, 3 }
   0x9   : > { %p153_p6 = pnand %p1773_p3, %p152_p5 }
   0xa   : > { %v2310_v0 = vld [vmem:[%s2858_s1 + $0x18] sm:$0xff] (!%p153_p6)   ;;  %s2518_s26 = smul.u32 (!%p153_p6), 120, %s2498_s18  ;;  %v2311_v1 = vld [vmem:[%s2858_s1 + $0x20] sm:$0xff] (!%p153_p6)   ;;  %v2312_v2 = vld [vmem:[%s2858_s1 + $0x28] sm:$0xff] (!%p153_p6)   ;;  %vm287_vm0 = vcmask (!%p153_p6), 392192   ;;  %vm1405_vm1 = vcmask (!%p153_p6), 523264  }
   0xb   : > { %156 = sbr.rel (%p153_p6) target bundleno = 512 (0x200), region = 36  ;;  %2089 = vmatprep.subr.bf16.mxu1 (!%p153_p6), %v2310_v0  ;;  %2023 = vmatprep.subr.bf16.mxu0 (!%p153_p6), %v2310_v0  ;;  %v2315_v4 = vld [vmem:[%s2858_s1] sm:$0xff] (!%p153_p6)   ;;  %v2318_v7 = vld [vmem:[%s2858_s1 + $0x8] sm:$0xff] (!%p153_p6)   ;;  %v2321_v8 = vld [vmem:[%s2858_s1 + $0x10] sm:$0xff] (!%p153_p6)   ;;  %s169_s20 = sand.u32 (!%p153_p6), 1, %s2417_s15  }
   0xc   : > { %s204_s29 = sadd.s32 (!%p153_p6), 16, %s2518_s26  ;;  %2090 = vmatpush3.bf16.msra.mxu1 (!%p153_p6), %v2310_v0  ;;  %2024 = vmatpush3.bf16.msra.mxu0 (!%p153_p6), %v2310_v0  ;;  %s179_s11 = sshra.s32 (!%p153_p6), %s2518_s26, 3  ;;  %v2326_v11 = vld [vmem:[%s2858_s1 + $0x30] sm:$0xff] (!%p153_p6)   ;;  %v2329_v25 = vld [vmem:[%s2858_s1 + $0x38] sm:$0xff] (!%p153_p6)   ;;  %v2334_v28 = vld [vmem:[%s2858_s1 + $0x40] sm:$0xff] (!%p153_p6)  }
   0xd   : > { %s205_s30 = sshra.s32 (!%p153_p6), %s204_s29, 3  ;;  %2091 = vmatprep.subr.bf16.mxu1 (!%p153_p6), %v2311_v1  ;;  %2025 = vmatprep.subr.bf16.mxu0 (!%p153_p6), %v2311_v1  ;;  %s1774_s14 = sshll.u32 (!%p153_p6), %s179_s11, 2 }
   0xe   : > { %s1775_s7 = sshll.u32 (!%p153_p6), %s205_s30, 2  ;;  %s2546_s25 = scalar_lea.vmem (!%p153_p6), %s2857_s0, %s1774_s14 }
   0xf   : > { %s2530_s10 = scalar_lea.vmem (!%p153_p6), %s2857_s0, %s1775_s7  ;;  %s584_s29 = sadd.s32 (!%p153_p6), 32, %s2518_s26  ;;  %v2324_v20 = vld [vmem:[%s2546_s25 + $0x88] sm:$0xff] (!%p153_p6)   ;;  %v2325_v23 = vld [vmem:[%s2546_s25 + $0x90] sm:$0xff] (!%p153_p6)   ;;  %v2327_v24 = vld [vmem:[%s2546_s25 + $0x98] sm:$0xff] (!%p153_p6)  }
  0x10   : > { %v2313_v3 = vld [vmem:[%s2530_s10 + $0x88] sm:$0xff] (!%p153_p6)   ;;  %2092 = vmatpush3.bf16.msra.mxu1 (!%p153_p6), %v2311_v1  ;;  %2026 = vmatpush3.bf16.msra.mxu0 (!%p153_p6), %v2311_v1  ;;  %v2314_v5 = vld [vmem:[%s2530_s10 + $0x90] sm:$0xff] (!%p153_p6)   ;;  %v2316_v6 = vld [vmem:[%s2530_s10 + $0x98] sm:$0xff] (!%p153_p6)   ;;  %s585_s6 = sshra.s32 (!%p153_p6), %s584_s29, 3  ;;  %s2219_s28 = smul.u32 (!%p153_p6), 120, %s169_s20 }
  0x11   : > { %2093 = vmatprep.subr.bf16.mxu1 (!%p153_p6), %v2312_v2  ;;  %2095 = vmatprep.mubr.msk.bf16.mxu1 (!%p153_p6), %vm287_vm0, %v2313_v3  ;;  %v2317_v9 = vld [vmem:[%s2530_s10 + $0xa0] sm:$0xff] (!%p153_p6)   ;;  %v2319_v10 = vld [vmem:[%s2530_s10 + $0xa8] sm:$0xff] (!%p153_p6)   ;;  %s1820_s7 = sshll.u32 (!%p153_p6), %s585_s6, 2  ;;  %v2320_v14 = vld [vmem:[%s2530_s10 + $0xb0] sm:$0xff] (!%p153_p6)  }
  0x12   : > { %2027 = vmatprep.subr.bf16.mxu0 %v2312_v2  ;;  %v2332_v12 = vld [vmem:[%s2530_s10] sm:$0xff]   ;;  %v2333_v13 = vld [vmem:[%s2530_s10 + $0x8] sm:$0xff]   ;;  %v2322_v15 = vld [vmem:[%s2530_s10 + $0xb8] sm:$0xff]   ;;  %s2571_s11 = scalar_lea.vmem %s2857_s0, %s1820_s7  ;;  %s2706_s15 = scalar_lea.vmem [#allocation2], %s2219_s28  }
  0x13   : > { %2029 = vmatprep.mubr.msk.bf16.mxu0 %vm287_vm0, %v2332_v12  ;;  %v2337_v16 = vld [vmem:[%s2530_s10 + $0x10] sm:$0xff]   ;;  %v2338_v17 = vld [vmem:[%s2530_s10 + $0x18] sm:$0xff]   ;;  %v2341_v18 = vld [vmem:[%s2530_s10 + $0x20] sm:$0xff]   ;;  %s1502_s29 = smul.u32 (%p2510_p4), 15, %s2498_s18  ;;  %s2771_s6 = scalar_lea.vmem (%p2510_p4), %s2861_s4, %s2518_s26  }
  0x14   : > { %2094 = vmatpush3.bf16.msra.mxu1 %v2312_v2  ;;  %2028 = vmatpush3.bf16.msra.mxu0 %v2312_v2  ;;  %v2323_v19 = vld [vmem:[%s2530_s10 + $0xc0] ss:$0 sps:$4 sm:$0xff]   ;;  %v2342_v21 = vld [vmem:[%s2530_s10 + $0x28] sm:$0xff]   ;;  %v2345_v22 = vld [vmem:[%s2530_s10 + $0x30] sm:$0xff]  }
  0x15   : > { %2111 = vmatprep.subr.bf16.mxu1 %v2315_v4  ;;  %2045 = vmatprep.subr.bf16.mxu0 %v2315_v4  ;;  %v2346_v26 = vld [vmem:[%s2530_s10 + $0x38] ss:$0 sps:$4 sm:$0xff]   ;;  %v2349_v27 = vld [vmem:[%s2546_s25] sm:$0xff]   ;;  %v2330_v30 = vld [vmem:[%s2546_s25 + $0xa8] sm:$0xff]   ;;  %s2459_s10 = smov 64   ;;  %s1503_s7 = ssub.s32 (%p2510_p4), 29, %s1502_s29 }
  0x16   : > { %v2328_v29 = vld [vmem:[%s2546_s25 + $0xa0] sm:$0xff]   ;;  %v2350_v31 = vld [vmem:[%s2546_s25 + $0x8] sm:$0xff]   ;;  %v2353_v32 = vld [vmem:[%s2546_s25 + $0x10] sm:$0xff]   ;;  %p1504_p7 = scmp.lt.s32.totalorder (%p2510_p4), %s1503_s7, 15 }
  0x17   : > { %2096 = vmatmul.mubr.msk.bf16.vlgmr.msra.gmra.mrb[0].mxu1 %vm287_vm0, %v2314_v5  ;;  %2030 = vmatmul.mubr.msk.bf16.vlgmr.msra.gmra.mrb[0].mxu0 %vm287_vm0, %v2333_v13  ;;  %v2331_v33 = vld [vmem:[%s2546_s25 + $0xb0] sm:$0xff]   ;;  %v2335_v34 = vld [vmem:[%s2546_s25 + $0xb8] sm:$0xff]   ;;  %v2355_v36 = vld [vmem:[%s2546_s25 + $0x20] sm:$0xff]  }
  0x18   : > { %2112 = vmatpush3.bf16.msra.mxu1 %v2315_v4  ;;  %2099 = vmatprep.mubr.msk.bf16.mxu1 %vm287_vm0, %v2316_v6  ;;  %v2354_v35 = vld [vmem:[%s2546_s25 + $0x18] sm:$0xff]   ;;  %v2336_v37 = vld [vmem:[%s2546_s25 + $0xc0] ss:$0 sps:$4 sm:$0xff]   ;;  %v2339_v38 = vld [vmem:[%s2571_s11 + $0x88] sm:$0xff]  }
  0x19   : > { %2113 = vmatprep.subr.bf16.mxu1 %v2318_v7  ;;  %2046 = vmatpush3.bf16.msra.mxu0 %v2315_v4  ;;  %v2356_v39 = vld [vmem:[%s2546_s25 + $0x28] sm:$0xff]   ;;  %v2357_v40 = vld [vmem:[%s2546_s25 + $0x30] sm:$0xff]   ;;  %v2343_v42 = vld [vmem:[%s2571_s11 + $0x98] sm:$0xff]  }
  0x1a   : > { %2047 = vmatprep.subr.bf16.mxu0 %v2318_v7  ;;  %2033 = vmatprep.mubr.msk.bf16.mxu0 %vm287_vm0, %v2337_v16  ;;  %v2340_v41 = vld [vmem:[%s2571_s11 + $0x90] sm:$0xff]   ;;  %v2358_v43 = vld [vmem:[%s2546_s25 + $0x38] ss:$0 sps:$4 sm:$0xff]   ;;  %v2359_v44 = vld [vmem:[%s2571_s11] sm:$0xff]  }
  0x1b   : > { %v2344_v45 = vld [vmem:[%s2571_s11 + $0xa0] sm:$0xff]   ;;  %v2347_v46 = vld [vmem:[%s2571_s11 + $0xa8] sm:$0xff]   ;;  %v2361_v48 = vld [vmem:[%s2571_s11 + $0x10] sm:$0xff]  }
  0x1c   : > { %2114 = vmatpush3.bf16.msra.mxu1 %v2318_v7  ;;  %v2360_v47 = vld [vmem:[%s2571_s11 + $0x8] sm:$0xff]   ;;  %v2348_v49 = vld [vmem:[%s2571_s11 + $0xb0] sm:$0xff]   ;;  %v2351_v50 = vld [vmem:[%s2571_s11 + $0xb8] sm:$0xff]  }
  0x1d   : > { %2115 = vmatprep.subr.bf16.mxu1 %v2321_v8  ;;  %2048 = vmatpush3.bf16.msra.mxu0 %v2318_v7  ;;  %v2362_v51 = vld [vmem:[%s2571_s11 + $0x18] sm:$0xff]   ;;  %v2363_v52 = vld [vmem:[%s2571_s11 + $0x20] sm:$0xff]   ;;  %v2364_v54 = vld [vmem:[%s2571_s11 + $0x28] sm:$0xff]  }
  0x1e   : > { %2049 = vmatprep.subr.bf16.mxu0 %v2321_v8  ;;  %v2352_v53 = vld [vmem:[%s2571_s11 + $0xc0] ss:$0 sps:$4 sm:$0xff]   ;;  %v2365_v55 = vld [vmem:[%s2571_s11 + $0x30] sm:$0xff]   ;;  %v2366_v56 = vld [vmem:[%s2571_s11 + $0x38] ss:$0 sps:$4 sm:$0xff]  }
  0x1f   : > { %2100 = vmatmul.mubr.msk.bf16.gmra.mrb[4].mxu1 %vm287_vm0, %v2317_v9  ;;  %2034 = vmatmul.mubr.msk.bf16.gmra.mrb[4].mxu0 %vm287_vm0, %v2338_v17 }
  0x20   : > { %2103 = vmatprep.mubr.msk.bf16.mxu1 %vm287_vm0, %v2319_v10  ;;  %2116 = vmatpush3.bf16.msra.mxu1 %v2321_v8 }
  0x21   : > { %2133 = vmatprep.subr.bf16.mxu1 %v2326_v11  ;;  %2037 = vmatprep.mubr.msk.bf16.mxu0 %vm287_vm0, %v2341_v18 }
  0x22   : > { %2050 = vmatpush3.bf16.msra.mxu0 %v2321_v8 }
  0x23   : > { %2067 = vmatprep.subr.bf16.mxu0 %v2326_v11 }
  0x27   : > { %2104 = vmatmul.mubr.msk.bf16.gmra.mrb[8].mxu1 %vm287_vm0, %v2320_v14  ;;  %2038 = vmatmul.mubr.msk.bf16.gmra.mrb[8].mxu0 %vm287_vm0, %v2342_v21 }
  0x28   : > { %2107 = vmatprep.mubr.msk.bf16.mxu1 %vm287_vm0, %v2322_v15  ;;  %2041 = vmatprep.mubr.msk.bf16.mxu0 %vm287_vm0, %v2345_v22 }
  0x2f   : > { %2108 = vmatmul.mubr.msk.bf16.gmra.mrb[12].mxu1 %vm287_vm0, %v2323_v19  ;;  %2042 = vmatmul.mubr.msk.bf16.gmra.mrb[12].mxu0 %vm287_vm0, %v2346_v26 }
  0x30   : > { %2117 = vmatprep.mubr.msk.bf16.mxu1 %vm287_vm0, %v2324_v20  ;;  %2051 = vmatprep.mubr.msk.bf16.mxu0 %vm287_vm0, %v2349_v27  ;;  %v2694_v27 = vld [vmem:[%s2860_s3] ss:$0 sm:$0xff] }
  0x37   : > { %2118 = vmatmul.mubr.msk.bf16.vlgmr.msra.gmra.mrb[0].mxu1 %vm287_vm0, %v2325_v23  ;;  %2052 = vmatmul.mubr.msk.bf16.vlgmr.msra.gmra.mrb[0].mxu0 %vm287_vm0, %v2350_v31 }
  0x38   : > { %2134 = vmatpush3.bf16.msra.mxu1 %v2326_v11  ;;  %2121 = vmatprep.mubr.msk.bf16.mxu1 %vm287_vm0, %v2327_v24 }
  0x39   : > { %2135 = vmatprep.subr.bf16.mxu1 %v2329_v25  ;;  %2055 = vmatprep.mubr.msk.bf16.mxu0 %vm287_vm0, %v2353_v32 }
  0x3a   : > { %2068 = vmatpush3.bf16.msra.mxu0 %v2326_v11 }
  0x3b   : > { %2069 = vmatprep.subr.bf16.mxu0 %v2329_v25 }
  0x3c   : > { %2136 = vmatpush3.bf16.msra.mxu1 %v2329_v25 }
  0x3d   : > { %2137 = vmatprep.subr.bf16.mxu1 %v2334_v28 }
  0x3e   : > { %2070 = vmatpush3.bf16.msra.mxu0 %v2329_v25  ;;  %v2689_v25 = vld [vmem:[%s2859_s2] ss:$0 sm:$0xff] }
  0x3f   : > { %2122 = vmatmul.mubr.msk.bf16.gmra.mrb[4].mxu1 %vm287_vm0, %v2328_v29  ;;  %2071 = vmatprep.subr.bf16.mxu0 %v2334_v28 }
  0x40   : > { %2125 = vmatprep.mubr.msk.bf16.mxu1 %vm287_vm0, %v2330_v30  ;;  %2138 = vmatpush3.bf16.msra.mxu1 %v2334_v28 }
  0x41   : > { %2056 = vmatmul.mubr.msk.bf16.gmra.mrb[4].mxu0 %vm287_vm0, %v2354_v35 }
  0x42   : > { %2059 = vmatprep.mubr.msk.bf16.mxu0 %vm287_vm0, %v2355_v36  ;;  %2072 = vmatpush3.bf16.msra.mxu0 %v2334_v28 }
  0x47   : > { %2126 = vmatmul.mubr.msk.bf16.gmra.mrb[8].mxu1 %vm287_vm0, %v2331_v33 }
  0x48   : > { %2129 = vmatprep.mubr.msk.bf16.mxu1 %vm287_vm0, %v2335_v34 }
  0x49   : > { %2060 = vmatmul.mubr.msk.bf16.gmra.mrb[8].mxu0 %vm287_vm0, %v2356_v39 }
  0x4a   : > { %2063 = vmatprep.mubr.msk.bf16.mxu0 %vm287_vm0, %v2357_v40 }
  0x4f   : > { %2130 = vmatmul.mubr.msk.bf16.gmra.mrb[12].mxu1 %vm287_vm0, %v2336_v37 }
  0x50   : > { %2139 = vmatprep.mubr.msk.bf16.mxu1 %vm287_vm0, %v2339_v38 }
  0x51   : > { %2064 = vmatmul.mubr.msk.bf16.gmra.mrb[12].mxu0 %vm287_vm0, %v2358_v43 }
  0x52   : > { %2073 = vmatprep.mubr.msk.bf16.mxu0 %vm287_vm0, %v2359_v44 }
  0x57   : > { %2140 = vmatmul.mubr.msk.bf16.vlgmr.msra.gmra.mrb[0].mxu1 %vm287_vm0, %v2340_v41 }
  0x58   : > { %2143 = vmatprep.mubr.msk.bf16.mxu1 %vm287_vm0, %v2343_v42 }
  0x59   : > { %2074 = vmatmul.mubr.msk.bf16.vlgmr.msra.gmra.mrb[0].mxu0 %vm287_vm0, %v2360_v47 }
  0x5a   : > { %2077 = vmatprep.mubr.msk.bf16.mxu0 %vm287_vm0, %v2361_v48 }
  0x5f   : > { %2144 = vmatmul.mubr.msk.bf16.gmra.mrb[4].mxu1 %vm287_vm0, %v2344_v45 }
  0x60   : > { %2147 = vmatprep.mubr.msk.bf16.mxu1 %vm287_vm0, %v2347_v46 }
  0x61   : > { %2078 = vmatmul.mubr.msk.bf16.gmra.mrb[4].mxu0 %vm287_vm0, %v2362_v51 }
  0x62   : > { %2081 = vmatprep.mubr.msk.bf16.mxu0 %vm287_vm0, %v2363_v52 }
  0x67   : > { %2148 = vmatmul.mubr.msk.bf16.gmra.mrb[8].mxu1 %vm287_vm0, %v2348_v49 }
  0x68   : > { %2151 = vmatprep.mubr.msk.bf16.mxu1 %vm287_vm0, %v2351_v50 }
  0x69   : > { %2082 = vmatmul.mubr.msk.bf16.gmra.mrb[8].mxu0 %vm287_vm0, %v2364_v54 }
  0x6a   : > { %2085 = vmatprep.mubr.msk.bf16.mxu0 %vm287_vm0, %v2365_v55 }
  0x6f   : > { %2152 = vmatmul.mubr.msk.bf16.gmra.mrb[12].mxu1 %vm287_vm0, %v2352_v53 }
  0x71   : > { %2086 = vmatmul.mubr.msk.bf16.gmra.mrb[12].mxu0 %vm287_vm0, %v2366_v56 }
 0x12a   : > { %v2141_v57 = vpop.f32.mrb[0].mxu1 }
 0x12b   : > { %1364 = vrot.lane.b32.xlu1 %v2141_v57, %s2459_s10  ;;  %v1268_v58 = vpop.f32.mrb[1].mxu1 }
 0x12c   : > { %1360 = vrot.lane.b32.xlu0 %v1268_v58, %s2459_s10  ;;  %v2142_v59 = vpop.f32.mrb[2].mxu1  ;;  %v2075_v1 = vpop.f32.mrb[0].mxu0 }
 0x12d   : > { %v1271_v60 = vpop.f32.mrb[3].mxu1  ;;  %v725_v2 = vpop.f32.mrb[1].mxu0 }
 0x12e   : > { %v2076_v3 = vpop.f32.mrb[2].mxu0 }
 0x12f   : > { %1366 = vrot.lane.b32.xlu1 %v2142_v59, %s2459_s10  ;;  %v728_v4 = vpop.f32.mrb[3].mxu0 }
 0x130   : > { %1362 = vrot.lane.b32.xlu0 %v1271_v60, %s2459_s10 }
 0x132   : > { %v2145_v61 = vpop.f32.mrb[4].mxu1 }
 0x133   : > { %v1284_v62 = vpop.f32.mrb[5].mxu1 }
 0x134   : > { %1372 = vrot.lane.b32.xlu0 %v2145_v61, %s2459_s10  ;;  %v2146_v63 = vpop.f32.mrb[6].mxu1  ;;  %v2079_v9 = vpop.f32.mrb[4].mxu0 }
 0x135   : > { %1374 = vrot.lane.b32.xlu1 %v2146_v63, %s2459_s10  ;;  %v1287_v0 = vpop.f32.mrb[7].mxu1  ;;  %v741_v10 = vpop.f32.mrb[5].mxu0 }
 0x136   : > { %v2080_v11 = vpop.f32.mrb[6].mxu0 }
 0x137   : > { %v744_v12 = vpop.f32.mrb[7].mxu0 }
 0x138   : > { %1368 = vrot.lane.b32.xlu0 %v1284_v62, %s2459_s10 }
 0x139   : > { %1370 = vrot.lane.b32.xlu1 %v1287_v0, %s2459_s10 }
 0x13a   : > { %v2149_v5 = vpop.f32.mrb[8].mxu1 }
 0x13b   : > { %v1300_v6 = vpop.f32.mrb[9].mxu1 }
 0x13c   : > { %1380 = vrot.lane.b32.xlu0 %v2149_v5, %s2459_s10  ;;  %v2150_v7 = vpop.f32.mrb[10].mxu1  ;;  %v2083_v17 = vpop.f32.mrb[8].mxu0 }
 0x13d   : > { %1382 = vrot.lane.b32.xlu1 %v2150_v7, %s2459_s10  ;;  %v1303_v8 = vpop.f32.mrb[11].mxu1  ;;  %v2672_v18 = vpop.f32.mrb[9].mxu0 }
 0x13e   : > { %v2674_v19 = vpop.f32.mrb[10].mxu0 }
 0x13f   : > { %v2677_v20 = vpop.f32.mrb[11].mxu0 }
 0x140   : > { %1376 = vrot.lane.b32.xlu0 %v1300_v6, %s2459_s10 }
 0x141   : > { %1378 = vrot.lane.b32.xlu1 %v1303_v8, %s2459_s10 }
 0x142   : > { %v2153_v13 = vpop.f32.mrb[12].mxu1 }
 0x143   : > { %v1316_v14 = vpop.f32.mrb[13].mxu1 }
 0x144   : > { %1384 = vrot.lane.b32.xlu0 %v1316_v14, %s2459_s10  ;;  %v2154_v15 = vpop.f32.mrb[14].mxu1  ;;  %v2679_v21 = vpop.f32.mrb[12].mxu0 }
 0x145   : > { %v1319_v16 = vpop.f32.mrb[15].mxu1  ;;  %v2681_v22 = vpop.f32.mrb[13].mxu0 }
 0x146   : > { %1386 = vrot.lane.b32.xlu1 %v1319_v16, %s2459_s10  ;;  %v2088_v23 = vpop.f32.mrb[14].mxu0 }
 0x147   : > { %v2683_v24 = vpop.f32.mrb[15].mxu0 }
 0x148   : > { %1388 = vrot.lane.b32.xlu0 %v2153_v13, %s2459_s10 }
 0x19d   : > { %v1365_v26 = vpop.permute.xlu1 %1364 }
 0x19e   : > { %v1408_v28 = vsel %vm1405_vm1, %v2075_v1, %v1365_v26  ;;  %v1361_v29 = vpop.permute.xlu0 %1360 }
 0x19f   : > { %v1430_v30 = vmul.f32 %v2689_v25, %v1408_v28  ;;  %v1406_v31 = vsel %vm1405_vm1, %v725_v2, %v1361_v29 }
 0x1a0   : > { %v1428_v32 = vmul.f32 %v2689_v25, %v1406_v31 }
 0x1a1   : > { %v1452_v33 = vadd.f32 %v2694_v27, %v1430_v30  ;;  %v1367_v34 = vpop.permute.xlu1 %1366 }
 0x1a2   : > { %v1450_v35 = vadd.f32 %v2694_v27, %v1428_v32  ;;  %v1409_v36 = vsel %vm1405_vm1, %v2076_v3, %v1367_v34  ;;  %v1363_v37 = vpop.permute.xlu0 %1362 }
 0x1a3   : > { %v1467_v38 = vmax.f32 %v1452_v33, 0.0  ;;  %v1431_v39 = vmul.f32 %v2689_v25, %v1409_v36  ;;  %v1407_v40 = vsel %vm1405_vm1, %v728_v4, %v1363_v37 }
 0x1a4   : > { %v1465_v41 = vmax.f32 %v1450_v35, 0.0  ;;  %v1429_v42 = vmul.f32 %v2689_v25, %v1407_v40 }
 0x1a5   : > { %1482 = vst [vmem:[%s2706_s15 + $0x10] sm:$0xff] %v1467_v38  ;;  %v1453_v43 = vadd.f32 %v2694_v27, %v1431_v39 }
 0x1a6   : > { %1480 = vst [vmem:[%s2706_s15] sm:$0xff] %v1465_v41  ;;  %v1451_v44 = vadd.f32 %v2694_v27, %v1429_v42  ;;  %v1373_v45 = vpop.permute.xlu0 %1372 }
 0x1a7   : > { %v1468_v46 = vmax.f32 %v1453_v43, 0.0  ;;  %v1412_v47 = vsel %vm1405_vm1, %v2079_v9, %v1373_v45  ;;  %v1375_v48 = vpop.permute.xlu1 %1374 }
 0x1a8   : > { %v1466_v49 = vmax.f32 %v1451_v44, 0.0  ;;  %v1434_v50 = vmul.f32 %v2689_v25, %v1412_v47  ;;  %v1413_v51 = vsel %vm1405_vm1, %v2080_v11, %v1375_v48 }
 0x1a9   : > { %1483 = vst [vmem:[%s2706_s15 + $0x18] sm:$0xff] %v1468_v46  ;;  %v1435_v52 = vmul.f32 %v2689_v25, %v1413_v51 }
 0x1aa   : > { %1481 = vst [vmem:[%s2706_s15 + $0x8] sm:$0xff] %v1466_v49  ;;  %v1456_v53 = vadd.f32 %v2694_v27, %v1434_v50  ;;  %v1369_v54 = vpop.permute.xlu0 %1368 }
 0x1ab   : > { %v1457_v55 = vadd.f32 %v2694_v27, %v1435_v52  ;;  %v1410_v56 = vsel %vm1405_vm1, %v741_v10, %v1369_v54  ;;  %v1371_v57 = vpop.permute.xlu1 %1370 }
 0x1ac   : > { %v1471_v58 = vmax.f32 %v1456_v53, 0.0  ;;  %v1432_v59 = vmul.f32 %v2689_v25, %v1410_v56  ;;  %v1411_v60 = vsel %vm1405_vm1, %v744_v12, %v1371_v57 }
 0x1ad   : > { %v1472_v61 = vmax.f32 %v1457_v55, 0.0  ;;  %v1433_v62 = vmul.f32 %v2689_v25, %v1411_v60 }
 0x1ae   : > { %1486 = vst [vmem:[%s2706_s15 + $0x30] sm:$0xff] %v1471_v58  ;;  %v1454_v63 = vadd.f32 %v2694_v27, %v1432_v59  ;;  %v1381_v0 = vpop.permute.xlu0 %1380 }
 0x1af   : > { %1487 = vst [vmem:[%s2706_s15 + $0x38] sm:$0xff] %v1472_v61  ;;  %v1455_v1 = vadd.f32 %v2694_v27, %v1433_v62  ;;  %v1416_v2 = vsel %vm1405_vm1, %v2083_v17, %v1381_v0  ;;  %v1383_v3 = vpop.permute.xlu1 %1382 }
 0x1b0   : > { %v1469_v4 = vmax.f32 %v1454_v63, 0.0  ;;  %v1438_v5 = vmul.f32 %v2689_v25, %v1416_v2  ;;  %v1417_v6 = vsel %vm1405_vm1, %v2674_v19, %v1383_v3 }
 0x1b1   : > { %v1470_v7 = vmax.f32 %v1455_v1, 0.0  ;;  %v1439_v8 = vmul.f32 %v2689_v25, %v1417_v6 }
 0x1b2   : > { %1484 = vst [vmem:[%s2706_s15 + $0x20] sm:$0xff] %v1469_v4  ;;  %v1460_v9 = vadd.f32 %v2694_v27, %v1438_v5  ;;  %v1377_v10 = vpop.permute.xlu0 %1376 }
 0x1b3   : > { %1485 = vst [vmem:[%s2706_s15 + $0x28] sm:$0xff] %v1470_v7  ;;  %v1461_v11 = vadd.f32 %v2694_v27, %v1439_v8  ;;  %v1414_v12 = vsel %vm1405_vm1, %v2672_v18, %v1377_v10  ;;  %v1379_v13 = vpop.permute.xlu1 %1378 }
 0x1b4   : > { %v1475_v14 = vmax.f32 %v1460_v9, 0.0  ;;  %v1436_v15 = vmul.f32 %v2689_v25, %v1414_v12  ;;  %v1415_v16 = vsel %vm1405_vm1, %v2677_v20, %v1379_v13 }
 0x1b5   : > { %v1476_v17 = vmax.f32 %v1461_v11, 0.0  ;;  %v1437_v19 = vmul.f32 %v2689_v25, %v1415_v16 }
 0x1b6   : > { %1490 = vst [vmem:[%s2706_s15 + $0x50] sm:$0xff] %v1475_v14  ;;  %v1458_v23 = vadd.f32 %v2694_v27, %v1436_v15  ;;  %v1385_v26 = vpop.permute.xlu0 %1384 }
 0x1b7   : > { %1491 = vst [vmem:[%s2706_s15 + $0x58] sm:$0xff] %v1476_v17  ;;  %v1459_v28 = vadd.f32 %v2694_v27, %v1437_v19  ;;  %v1418_v18 = vsel %vm1405_vm1, %v2681_v22, %v1385_v26 }
 0x1b8   : > { %v1473_v29 = vmax.f32 %v1458_v23, 0.0  ;;  %v1440_v30 = vmul.f32 %v2689_v25, %v1418_v18  ;;  %v1387_v20 = vpop.permute.xlu1 %1386 }
 0x1b9   : > { %v1474_v31 = vmax.f32 %v1459_v28, 0.0  ;;  %v1419_v32 = vsel %vm1405_vm1, %v2683_v24, %v1387_v20 }
 0x1ba   : > { %1488 = vst [vmem:[%s2706_s15 + $0x40] sm:$0xff] %v1473_v29  ;;  %v1462_v33 = vadd.f32 %v2694_v27, %v1440_v30  ;;  %v1441_v34 = vmul.f32 %v2689_v25, %v1419_v32  ;;  %v1389_v35 = vpop.permute.xlu0 %1388 }
 0x1bb   : > { %1489 = vst [vmem:[%s2706_s15 + $0x48] sm:$0xff] %v1474_v31  ;;  %v1420_v22 = vsel %vm1405_vm1, %v2679_v21, %v1389_v35 }
 0x1bc   : > { %v1477_v36 = vmax.f32 %v1462_v33, 0.0  ;;  %v1463_v37 = vadd.f32 %v2694_v27, %v1441_v34  ;;  %v1442_v38 = vmul.f32 %v2689_v25, %v1420_v22  ;;  %1501 = sbr.rel (!%p2510_p4) target bundleno = 512 (0x200), region = 40 }
 0x1be   : > { %1492 = vst [vmem:[%s2706_s15 + $0x60] sm:$0xff] %v1477_v36  ;;  %v1478_v39 = vmax.f32 %v1463_v37, 0.0  ;;  %v1464_v40 = vadd.f32 %v2694_v27, %v1442_v38 }
 0x1c0   : > { %1493 = vst [vmem:[%s2706_s15 + $0x68] sm:$0xff] %v1478_v39  ;;  %v1479_v24 = vmax.f32 %v1464_v40, 0.0 }
 0x1c2   : > { %1494 = vst [vmem:[%s2706_s15 + $0x70] sm:$0xff] %v1479_v24 }
 0x1c3   : > { %s2870_s7 = smov (!%p1504_p7, %s1503_s7), 15 }
 0x1c4   : > { %s1944_s8 = sshll.u32 %s2870_s7, 7 }
 0x1c5   : > { %p1947_p8 = scmp.eq.s32.totalorder %s1944_s8, 0 }
 0x1c6   : > { %2367 = sdivrem.u32 (!%p1947_p8), %s2870_s7, 15 }
 0x1c7   : > { %1512 = sbr.rel (%p1947_p8) target bundleno = 512 (0x200), region = 44 }
 0x1cf   : > { %s2777_s23 = spop.drf %2367 }
 0x1d0   : > { %p1948_p9 = scmp.le.s32.totalorder %s2777_s23, 0 }
 0x1d1   : > { %s2863_s18 = smov (!%p1948_p9), %s2771_s6  ;;  %s2864_s26 = smov (!%p1948_p9), %s2706_s15 }
 0x1d2   : > { %1733 = sbr.rel (%p1948_p9) target bundleno = 483 (0x1e3), region = 125  ;;  %s2786_s9 = smov (!%p1948_p9), 0  }
 0x1d3   : > { %s2788_s11 = smov (!%p1948_p9), 0  }
 0x1d9 LB: >> { %v1604_v21 = vld [vmem:[%s2433_s26] sm:$0xff]  ;;  %v1606_v25 = vld [vmem:[%s2433_s26 + $0x8] sm:$0xff]  ;;  %v1608_v27 = vld [vmem:[%s2433_s26 + $0x10] sm:$0xff]  ;;  %s1634_s12 = sadd.s32 1, %s2437_s9  ;;  %s1598_s11 = sadd.s32 1, %s2441_s11   ;;  %s2441_s11 = sphi %s2788_s11, %s1598_s11   ;;  %s2437_s9 = sphi %s2786_s9, %s2865_s9   ;;  %s2433_s26 = sphi %s2864_s26, %s1639_s26   ;;  %s2429_s18 = sphi %s2863_s18, %s1640_s18  }
 0x1da   : >> { %1605 = vst [vmem:[%s2429_s18] sm:$0xff] %v1604_v21  ;;  %1607 = vst [vmem:[%s2429_s18 + $0x8] sm:$0xff] %v1606_v25  ;;  %v1610_v41 = vld [vmem:[%s2433_s26 + $0x18] sm:$0xff]  ;;  %v1612_v42 = vld [vmem:[%s2433_s26 + $0x20] sm:$0xff]  ;;  %p1635_p10 = scmp.ge.s32.totalorder %s1634_s12, %s2777_s23  ;;  %p1597_p11 = scmp.ge.s32.totalorder %s1598_s11, %s2777_s23 }
 0x1db   : >> { %1609 = vst [vmem:[%s2429_s18 + $0x10] sm:$0xff] %v1608_v27  ;;  %v1614_v43 = vld [vmem:[%s2433_s26 + $0x28] sm:$0xff]  ;;  %1611 = vst [vmem:[%s2429_s18 + $0x18] sm:$0xff] %v1610_v41  ;;  %v1616_v44 = vld [vmem:[%s2433_s26 + $0x30] sm:$0xff] }
 0x1dc   : >> { %1613 = vst [vmem:[%s2429_s18 + $0x20] sm:$0xff] %v1612_v42  ;;  %1615 = vst [vmem:[%s2429_s18 + $0x28] sm:$0xff] %v1614_v43  ;;  %v1618_v45 = vld [vmem:[%s2433_s26 + $0x38] sm:$0xff]  ;;  %v1620_v46 = vld [vmem:[%s2433_s26 + $0x40] sm:$0xff]  ;;  %s2872_s12 = smov (%p1635_p10, %s1634_s12), 0  ;;  %1600 = sbr.rel (!%p1597_p11) target bundleno = 473 (0x1d9), region = 131 }
 0x1dd   : >> { %1617 = vst [vmem:[%s2429_s18 + $0x30] sm:$0xff] %v1616_v44  ;;  %1619 = vst [vmem:[%s2429_s18 + $0x38] sm:$0xff] %v1618_v45  ;;  %v1622_v47 = vld [vmem:[%s2433_s26 + $0x48] sm:$0xff]  ;;  %v1624_v48 = vld [vmem:[%s2433_s26 + $0x50] sm:$0xff]  ;;  %s1637_s13 = smul.u32 120, %s2872_s12  ;;  %s2865_s9 = smov %s2872_s12 }
 0x1de   : >> { %1621 = vst [vmem:[%s2429_s18 + $0x40] sm:$0xff] %v1620_v46  ;;  %v1626_v49 = vld [vmem:[%s2433_s26 + $0x58] sm:$0xff]  ;;  %1623 = vst [vmem:[%s2429_s18 + $0x48] sm:$0xff] %v1622_v47  ;;  %v1628_v50 = vld [vmem:[%s2433_s26 + $0x60] sm:$0xff] }
 0x1df   : >> { %1625 = vst [vmem:[%s2429_s18 + $0x50] sm:$0xff] %v1624_v48  ;;  %1627 = vst [vmem:[%s2429_s18 + $0x58] sm:$0xff] %v1626_v49  ;;  %v1630_v51 = vld [vmem:[%s2433_s26 + $0x68] sm:$0xff]  ;;  %v1632_v52 = vld [vmem:[%s2433_s26 + $0x70] sm:$0xff]  ;;  %s1639_s26 = scalar_lea.vmem %s2706_s15, %s1637_s13 [#allocation2]  }
 0x1e0   : >> { %1629 = vst [vmem:[%s2429_s18 + $0x60] sm:$0xff] %v1628_v50  ;;  %1631 = vst [vmem:[%s2429_s18 + $0x68] sm:$0xff] %v1630_v51 }
 0x1e1   : >> { %1633 = vst [vmem:[%s2429_s18 + $0x70] sm:$0xff] %v1632_v52  ;;  %s1640_s18 = scalar_lea.vmem %s2771_s6, %s1637_s13  }
 0x1e3 PF: > { %2369 = sdivrem.u32 %s2870_s7, 15 }
 0x1e4   : > { %s1949_s14 = smul.u32 120, %s2777_s23 }
 0x1e6   : > { %s1645_s17 = scalar_lea.vmem %s2706_s15, %s1949_s14 [#allocation2]   ;;  %s1647_s10 = scalar_lea.vmem %s2771_s6, %s1949_s14  }
 0x1ec   : > { %s2370_s20 = spop.drf %2369 }
 0x1ed   : > { %p1951_p12 = scmp.le.s32.totalorder %s2370_s20, 0 }
 0x1ee   : > { %s2443_s21 = smov (!%p1951_p12), %s1647_s10   ;;  %s2447_s24 = smov (!%p1951_p12), %s1645_s17  }
 0x1ef   : > { %1747 = sbr.rel (%p1951_p12) target bundleno = 512 (0x200), region = 136  ;;  %s2451_s25 = smov (!%p1951_p12), 0  }
 0x1f0   : > { %s2455_s27 = smov (!%p1951_p12), 0  }
 0x1f6 LB: >> { %v1657_v53 = vld [vmem:[%s2449_s24] sm:$0xff]  ;;  %s1659_s28 = sadd.s32 1, %s2453_s25  ;;  %s1651_s27 = sadd.s32 1, %s2457_s27   ;;  %s2457_s27 = sphi %s2455_s27, %s1651_s27   ;;  %s2453_s25 = sphi %s2451_s25, %s2452_s25   ;;  %s2449_s24 = sphi %s2447_s24, %s1664_s24   ;;  %s2445_s21 = sphi %s2443_s21, %s1665_s21  }
 0x1f7   : >> { %1658 = vst [vmem:[%s2445_s21] sm:$0xff] %v1657_v53  ;;  %p1660_p13 = scmp.ge.s32.totalorder %s1659_s28, %s2370_s20  ;;  %p1650_p0 = scmp.ge.s32.totalorder %s1651_s27, %s2370_s20 }
 0x1f9   : >> { %s2874_s28 = smov (%p1660_p13, %s1659_s28), 0  ;;  %1653 = sbr.rel (!%p1650_p0) target bundleno = 502 (0x1f6), region = 142 }
 0x1fa   : >> { %s1952_s15 = sshll.u32 %s2874_s28, 3  ;;  %s2452_s25 = smov %s2874_s28  }
 0x1fb   : >> { %s1664_s24 = scalar_lea.vmem %s1645_s17, %s1952_s15 [#allocation2]   ;;  %s1665_s21 = scalar_lea.vmem %s1647_s10, %s1952_s15  }
 0x200 PF: > { %p11_p1 = scmp.ge.s32.totalorder %s2500_s19, 4   ;;  %s2866_s15 = smov %s2421_s16 }
 0x201   : > { %s2867_s16 = smov %s2508_s22  ;;  %s2868_s17 = smov %s2500_s19 }
 0x202   :  { %13 = sbr.rel (!%p11_p1) target bundleno = 2 (0x2), region = 153 }

// kernel: depthwise_rpn_forward.5
= control target key start
LH: loop header
LB: loop body
LE: loop exit
PB: predicated region body
PF: predicated region fallthrough
CT: control target
= control target key end

     0   :  { %s2563_s24 = smov 0   ;;  %s4086_s0 = inlined_call_operand.vmem [shape: f32[229,128], index: 0, kind: input, shape index: {}]   ;;  %s4087_s1 = inlined_call_operand.vmem [shape: f32[48,128], index: 1, kind: input, shape index: {}]   ;;  %s4088_s2 = inlined_call_operand.vmem [shape: bf16[128,128], index: 2, kind: input, shape index: {}]   ;;  %s4089_s3 = inlined_call_operand.vmem [shape: f32[1,128], index: 3, kind: input, shape index: {}]   ;;  %s4090_s4 = inlined_call_operand.vmem [shape: f32[1,128], index: 4, kind: input, shape index: {}]   ;;  %s4091_s5 = inlined_call_operand.vmem [shape: bf16[128,24], index: 5, kind: input, shape index: {}]   ;;  %s4092_s6 = inlined_call_operand.vmem [shape: f32[1,24], index: 6, kind: input, shape index: {}]   ;;  %s4093_s7 = inlined_call_operand.vmem [shape: f32[144,24], index: 7, kind: output, shape index: {}]  }
   0x1 LB: > { %s1976_s25 = sadd.s32 4294967295, %s2519_s24   ;;  %p1979_p0 = scmp.ge.s32.totalorder %s2519_s24, 1  ;;  %s2519_s24 = sphi %s2563_s24, %s17_s24  }
   0x2   : > { %p227_p1 = scmp.lt.s32.totalorder %s2519_s24, 3 }
   0x4   : > { %p228_p2 = pnand %p1979_p0, %p227_p1 }
   0x6   : > { %231 = sbr.rel (%p228_p2) target bundleno = 664 (0x298), region = 48 }
   0xd   : > { %v2461_v0 = vld [vmem:[%s4088_s2] sm:$0xff]   ;;  %v4094_v1 = vmov 0.0   ;;  %v2462_v2 = vld [vmem:[%s4088_s2 + $0x8] sm:$0xff]   ;;  %vm2522_vm0 = vmmov 0   ;;  %s261_s30 = smul.u32 72, %s1976_s25  ;;  %v2463_v3 = vld [vmem:[%s4088_s2 + $0x10] sm:$0xff]  }
   0xe   : > { %2379 = vmatprep.subr.bf16.mxu0 %v4094_v1  ;;  %2415 = vmatprep.subr.bf16.mxu1 %v4094_v1  ;;  %v2464_v4 = vld [vmem:[%s4088_s2 + $0x18] sm:$0xff]   ;;  %v2603_v7 = vld [vmem:[%s4087_s1] ss:$0 sm:$0xff]  ;;  %v2612_v12 = vld [vmem:[%s4087_s1 + $0x1] ss:$0 sm:$0xff]  ;;  %vm1815_vm1 = vcmask 195584  }
   0xf   : > { %2380 = vmatpush3.bf16.msra.mxu0 %v2461_v0  ;;  %2395 = vmatprep.mubr.msk.bf16.mxu0 %vm2522_vm0, %v4094_v1  ;;  %s2589_s10 = scalar_lea.vmem %s4086_s0, %s261_s30  ;;  %4241 = vst [vmem:[#allocation2_spill] sm:$0xff] %v2603_v7  ;;  %4242 = vst [vmem:[#allocation3_spill] sm:$0xff] %v2612_v12  ;;  %v2621_v17 = vld [vmem:[%s4087_s1 + $0x2] ss:$0 sm:$0xff]  ;;  %v2631_v22 = vld [vmem:[%s4087_s1 + $0x3] ss:$0 sm:$0xff] }
  0x10   : > { %2381 = vmatprep.subr.bf16.mxu0 %v4094_v1  ;;  %2431 = vmatprep.mubr.msk.bf16.mxu1 %vm2522_vm0, %v4094_v1  ;;  %v263_v5 = vld [vmem:[%s2589_s10] sm:$0xff]  ;;  %v264_v6 = vld [vmem:[%s2589_s10 + $0x8] sm:$0xff]  ;;  %4243 = vst [vmem:[#allocation4_spill] sm:$0xff] %v2621_v17  ;;  %4244 = vst [vmem:[#allocation5_spill] sm:$0xff] %v2631_v22 }
  0x11   : > { %v277_v8 = vmul.f32 %v2603_v7, %v263_v5  ;;  %v278_v9 = vmul.f32 %v2603_v7, %v264_v6  ;;  %v1982_v10 = vld [vmem:[%s2589_s10 + $0x1] sm:$0xff]  ;;  %v1983_v11 = vld [vmem:[%s2589_s10 + $0x9] sm:$0xff]  ;;  %v2033_v39 = vld [vmem:[%s2589_s10 + $0x18] sm:$0xff] }
  0x12   : > { %v311_v13 = vmul.f32 %v2612_v12, %v1982_v10  ;;  %v312_v14 = vmul.f32 %v2612_v12, %v1983_v11  ;;  %v1992_v15 = vld [vmem:[%s2589_s10 + $0x2] sm:$0xff]  ;;  %v1993_v16 = vld [vmem:[%s2589_s10 + $0xa] sm:$0xff]  ;;  %v2043_v42 = vld [vmem:[%s2589_s10 + $0x19] sm:$0xff]  ;;  %v280_v44 = vmul.f32 %v2033_v39, %v2603_v7 }
  0x13   : > { %2382 = vmatpush3.bf16.msra.mxu0 %v2462_v2  ;;  %v345_v18 = vmul.f32 %v2621_v17, %v1992_v15  ;;  %v346_v19 = vmul.f32 %v2621_v17, %v1993_v16  ;;  %v2002_v20 = vld [vmem:[%s2589_s10 + $0x3] sm:$0xff]  ;;  %v2003_v21 = vld [vmem:[%s2589_s10 + $0xb] sm:$0xff]  ;;  %v314_v51 = vmul.f32 %v2043_v42, %v2612_v12  ;;  %v2053_v58 = vld [vmem:[%s2589_s10 + $0x1a] sm:$0xff] }
  0x14   : > { %2383 = vmatprep.subr.bf16.mxu0 %v4094_v1  ;;  %v320_v23 = vadd.f32 %v311_v13, %v277_v8  ;;  %v321_v24 = vadd.f32 %v312_v14, %v278_v9  ;;  %v379_v25 = vmul.f32 %v2631_v22, %v2002_v20  ;;  %v380_v26 = vmul.f32 %v2631_v22, %v2003_v21  ;;  %v2012_v27 = vld [vmem:[%s2589_s10 + $0x4] sm:$0xff]  ;;  %v2013_v28 = vld [vmem:[%s2589_s10 + $0xc] sm:$0xff]  ;;  %v2063_v14 = vld [vmem:[%s2589_s10 + $0x1b] sm:$0xff] }
  0x15   : > { %v2640_v29 = vld [vmem:[%s4087_s1 + $0x4] ss:$0 sm:$0xff]  ;;  %v2022_v30 = vld [vmem:[%s2589_s10 + $0x5] sm:$0xff]  ;;  %v2023_v31 = vld [vmem:[%s2589_s10 + $0xd] sm:$0xff]  ;;  %v323_v61 = vadd.f32 %v314_v51, %v280_v44  ;;  %v348_v6 = vmul.f32 %v2053_v58, %v2621_v17 }
  0x16   : > { %4245 = vst [vmem:[#allocation6_spill] sm:$0xff] %v2640_v29  ;;  %v2647_v32 = vld [vmem:[%s4087_s1 + $0x5] ss:$0 sm:$0xff]  ;;  %v354_v34 = vadd.f32 %v345_v18, %v320_v23  ;;  %v355_v35 = vadd.f32 %v346_v19, %v321_v24  ;;  %v413_v36 = vmul.f32 %v2640_v29, %v2012_v27  ;;  %v414_v37 = vmul.f32 %v2640_v29, %v2013_v28  ;;  %v2032_v38 = vld [vmem:[%s2589_s10 + $0x10] sm:$0xff]  ;;  %v2660_v40 = vld [vmem:[%s4087_s1 + $0x8] ss:$0 sm:$0xff] }
  0x17   : > { %2384 = vmatpush3.bf16.msra.mxu0 %v2463_v3  ;;  %4246 = vst [vmem:[#allocation7_spill] sm:$0xff] %v2647_v32  ;;  %v2465_v33 = vld [vmem:[%s4088_s2 + $0x20] sm:$0xff]   ;;  %4247 = vst [vmem:[#allocation8_spill] sm:$0xff] %v2660_v40  ;;  %v2042_v41 = vld [vmem:[%s2589_s10 + $0x11] sm:$0xff]  ;;  %v279_v43 = vmul.f32 %v2032_v38, %v2603_v7  ;;  %v447_v47 = vmul.f32 %v2647_v32, %v2022_v30  ;;  %v448_v48 = vmul.f32 %v2647_v32, %v2023_v31 }
  0x18   : > { %2385 = vmatprep.subr.bf16.mxu0 %v4094_v1  ;;  %v388_v45 = vadd.f32 %v379_v25, %v354_v34  ;;  %v389_v46 = vadd.f32 %v380_v26, %v355_v35  ;;  %v2671_v49 = vld [vmem:[%s4087_s1 + $0x9] ss:$0 sm:$0xff]  ;;  %v313_v50 = vmul.f32 %v2042_v41, %v2612_v12  ;;  %v481_v55 = vmul.f32 %v2660_v40, %v2032_v38  ;;  %v2052_v57 = vld [vmem:[%s2589_s10 + $0x12] sm:$0xff]  ;;  %v2686_v59 = vld [vmem:[%s4087_s1 + $0xa] ss:$0 sm:$0xff] }
  0x19   : > { %4248 = vst [vmem:[#allocation9_spill] sm:$0xff] %v2671_v49  ;;  %v2466_v52 = vld [vmem:[%s4088_s2 + $0x28] sm:$0xff]   ;;  %v482_v56 = vmul.f32 %v2660_v40, %v2033_v39  ;;  %4249 = vst [vmem:[#allocation10_spill] sm:$0xff] %v2686_v59  ;;  %v515_v0 = vmul.f32 %v2671_v49, %v2042_v41  ;;  %v516_v2 = vmul.f32 %v2671_v49, %v2043_v42  ;;  %v2467_v3 = vld [vmem:[%s4088_s2 + $0x30] sm:$0xff]  }
  0x1a   : > { %v422_v53 = vadd.f32 %v413_v36, %v388_v45  ;;  %v423_v54 = vadd.f32 %v414_v37, %v389_v46  ;;  %v322_v60 = vadd.f32 %v313_v50, %v279_v43  ;;  %v347_v5 = vmul.f32 %v2052_v57, %v2621_v17  ;;  %v2062_v13 = vld [vmem:[%s2589_s10 + $0x13] sm:$0xff]  ;;  %v2707_v15 = vld [vmem:[%s4087_s1 + $0xc] ss:$0 sm:$0xff]  ;;  %v2713_v16 = vld [vmem:[%s4087_s1 + $0xd] ss:$0 sm:$0xff] }
  0x1b   : > { %2386 = vmatpush3.bf16.msra.mxu0 %v2464_v4  ;;  %v2696_v4 = vld [vmem:[%s4087_s1 + $0xb] ss:$0 sm:$0xff]  ;;  %v549_v10 = vmul.f32 %v2686_v59, %v2052_v57  ;;  %v550_v11 = vmul.f32 %v2686_v59, %v2053_v58  ;;  %4251 = vst [vmem:[#allocation12_spill] sm:$0xff] %v2707_v15  ;;  %4252 = vst [vmem:[#allocation13_spill] sm:$0xff] %v2713_v16  ;;  %v357_v19 = vadd.f32 %v348_v6, %v323_v61  ;;  %v2468_v20 = vld [vmem:[%s4088_s2 + $0x38] sm:$0xff]  }
  0x1c   : > { %2387 = vmatprep.subr.bf16.mxu0 %v4094_v1  ;;  %v456_v62 = vadd.f32 %v447_v47, %v422_v53  ;;  %v457_v63 = vadd.f32 %v448_v48, %v423_v54  ;;  %4250 = vst [vmem:[#allocation11_spill] sm:$0xff] %v2696_v4  ;;  %v356_v18 = vadd.f32 %v347_v5, %v322_v60  ;;  %v2072_v26 = vld [vmem:[%s2589_s10 + $0x14] sm:$0xff]  ;;  %v2724_v27 = vld [vmem:[%s4087_s1 + $0x10] ss:$0 sm:$0xff]  ;;  %v2073_v28 = vld [vmem:[%s2589_s10 + $0x1c] sm:$0xff] }
  0x1d   : > { %v583_v24 = vmul.f32 %v2696_v4, %v2062_v13  ;;  %v584_v25 = vmul.f32 %v2696_v4, %v2063_v14  ;;  %4253 = vst [vmem:[#allocation14_spill] sm:$0xff] %v2724_v27  ;;  %v617_v30 = vmul.f32 %v2707_v15, %v2072_v26  ;;  %v2082_v31 = vld [vmem:[%s2589_s10 + $0x15] sm:$0xff]  ;;  %v381_v34 = vmul.f32 %v2062_v13, %v2631_v22  ;;  %v2083_v39 = vld [vmem:[%s2589_s10 + $0x1d] sm:$0xff]  ;;  %v2745_v43 = vld [vmem:[%s4087_s1 + $0x12] ss:$0 sm:$0xff] }
  0x1e   : > { %v490_v8 = vadd.f32 %v481_v55, %v456_v62  ;;  %v491_v9 = vadd.f32 %v482_v56, %v457_v63  ;;  %v382_v35 = vmul.f32 %v2063_v14, %v2631_v22  ;;  %v618_v38 = vmul.f32 %v2707_v15, %v2073_v28  ;;  %v2740_v42 = vld [vmem:[%s2589_s10 + $0x20] sm:$0xff]  ;;  %4256 = vst [vmem:[#allocation17_spill] sm:$0xff] %v2745_v43  ;;  %v2750_v45 = vld [vmem:[%s2589_s10 + $0x28] sm:$0xff]  ;;  %v2760_v48 = vld [vmem:[%s4087_s1 + $0x13] ss:$0 sm:$0xff] }
  0x1f   : > { %2388 = vmatpush3.bf16.msra.mxu0 %v2465_v33  ;;  %v2732_v33 = vld [vmem:[%s4087_s1 + $0x11] ss:$0 sm:$0xff]  ;;  %v651_v41 = vmul.f32 %v2713_v16, %v2082_v31  ;;  %4255 = vst [vmem:[#allocation16_spill] sm:$0xff] %v2740_v42  ;;  %v652_v44 = vmul.f32 %v2713_v16, %v2083_v39  ;;  %4257 = vst [vmem:[#allocation18_spill] sm:$0xff] %v2750_v45  ;;  %v685_v46 = vmul.f32 %v2724_v27, %v2740_v42  ;;  %v2755_v47 = vld [vmem:[%s2589_s10 + $0x21] sm:$0xff] }
  0x20   : > { %2389 = vmatprep.subr.bf16.mxu0 %v4094_v1  ;;  %v524_v21 = vadd.f32 %v515_v0, %v490_v8  ;;  %v525_v23 = vadd.f32 %v516_v2, %v491_v9  ;;  %4254 = vst [vmem:[#allocation15_spill] sm:$0xff] %v2732_v33  ;;  %4258 = vst [vmem:[#allocation19_spill] sm:$0xff] %v2755_v47  ;;  %v390_v50 = vadd.f32 %v381_v34, %v356_v18  ;;  %v2765_v55 = vld [vmem:[%s2589_s10 + $0x29] sm:$0xff]  ;;  %v2775_v58 = vld [vmem:[%s4087_s1 + $0x14] ss:$0 sm:$0xff] }
  0x21   : > { %4259 = vst [vmem:[#allocation20_spill] sm:$0xff] %v2760_v48  ;;  %v391_v51 = vadd.f32 %v382_v35, %v357_v19  ;;  %v686_v54 = vmul.f32 %v2724_v27, %v2750_v45  ;;  %4260 = vst [vmem:[#allocation21_spill] sm:$0xff] %v2765_v55  ;;  %v719_v56 = vmul.f32 %v2732_v33, %v2755_v47  ;;  %v2770_v57 = vld [vmem:[%s2589_s10 + $0x22] sm:$0xff]  ;;  %v2780_v61 = vld [vmem:[%s2589_s10 + $0x2a] sm:$0xff] }
  0x22   : > { %v558_v36 = vadd.f32 %v549_v10, %v524_v21  ;;  %v559_v37 = vadd.f32 %v550_v11, %v525_v23  ;;  %4261 = vst [vmem:[#allocation22_spill] sm:$0xff] %v2770_v57  ;;  %4262 = vst [vmem:[#allocation23_spill] sm:$0xff] %v2775_v58  ;;  %v720_v60 = vmul.f32 %v2732_v33, %v2765_v55  ;;  %v2785_v63 = vld [vmem:[%s2589_s10 + $0x23] sm:$0xff]  ;;  %v2790_v0 = vld [vmem:[%s4087_s1 + $0x15] ss:$0 sm:$0xff] }
  0x23   : > { %2390 = vmatpush3.bf16.msra.mxu0 %v2466_v52  ;;  %4263 = vst [vmem:[#allocation24_spill] sm:$0xff] %v2780_v61  ;;  %v753_v62 = vmul.f32 %v2745_v43, %v2770_v57  ;;  %4264 = vst [vmem:[#allocation25_spill] sm:$0xff] %v2785_v63  ;;  %v415_v2 = vmul.f32 %v2072_v26, %v2640_v29  ;;  %v754_v8 = vmul.f32 %v2745_v43, %v2780_v61  ;;  %v2797_v9 = vld [vmem:[%s2589_s10 + $0x2b] sm:$0xff]  ;;  %v2809_v13 = vld [vmem:[%s4087_s1 + $0x18] ss:$0 sm:$0xff] }
  0x24   : > { %2391 = vmatprep.subr.bf16.mxu0 %v4094_v1  ;;  %v592_v52 = vadd.f32 %v583_v24, %v558_v36  ;;  %v593_v53 = vadd.f32 %v584_v25, %v559_v37  ;;  %4265 = vst [vmem:[#allocation26_spill] sm:$0xff] %v2790_v0  ;;  %4266 = vst [vmem:[#allocation27_spill] sm:$0xff] %v2797_v9  ;;  %v2801_v10 = vmul.f32 %v2760_v48, %v2785_v63  ;;  %v2804_v11 = vld [vmem:[%s2589_s10 + $0x24] sm:$0xff]  ;;  %v2816_v18 = vld [vmem:[%s2589_s10 + $0x2c] sm:$0xff] }
  0x25   : > { %4267 = vst [vmem:[#allocation28_spill] sm:$0xff] %v2809_v13  ;;  %v2813_v14 = vmul.f32 %v2760_v48, %v2797_v9  ;;  %4268 = vst [vmem:[#allocation29_spill] sm:$0xff] %v2816_v18  ;;  %v2820_v19 = vmul.f32 %v2775_v58, %v2804_v11  ;;  %v2828_v21 = vld [vmem:[%s4087_s1 + $0x19] ss:$0 sm:$0xff]  ;;  %v424_v23 = vadd.f32 %v415_v2, %v390_v50  ;;  %v2842_v35 = vld [vmem:[%s2589_s10 + $0x30] sm:$0xff] }
  0x26   : > { %v626_v5 = vadd.f32 %v617_v30, %v592_v52  ;;  %v627_v6 = vadd.f32 %v618_v38, %v593_v53  ;;  %4270 = vst [vmem:[#allocation31_spill] sm:$0xff] %v2828_v21  ;;  %v2835_v30 = vld [vmem:[%s2589_s10 + $0x2d] sm:$0xff]  ;;  %4272 = vst [vmem:[#allocation33_spill] sm:$0xff] %v2842_v35  ;;  %v2847_v36 = vld [vmem:[%s4087_s1 + $0x1a] ss:$0 sm:$0xff]  ;;  %v450_v52 = vmul.f32 %v2083_v39, %v2647_v32 }
  0x27   : > { %2392 = vmatpush3.bf16.msra.mxu0 %v2467_v3  ;;  %v416_v3 = vmul.f32 %v2073_v28, %v2640_v29  ;;  %v2832_v28 = vmul.f32 %v2775_v58, %v2816_v18  ;;  %4271 = vst [vmem:[#allocation32_spill] sm:$0xff] %v2835_v30  ;;  %4273 = vst [vmem:[#allocation34_spill] sm:$0xff] %v2847_v36  ;;  %v2851_v37 = vmul.f32 %v2790_v0, %v2835_v30  ;;  %v2854_v38 = vld [vmem:[%s2589_s10 + $0x38] sm:$0xff] }
  0x28   : > { %2393 = vmatprep.subr.bf16.mxu0 %v4094_v1  ;;  %v660_v25 = vadd.f32 %v651_v41, %v626_v5  ;;  %v661_v26 = vadd.f32 %v652_v44, %v627_v6  ;;  %4274 = vst [vmem:[#allocation35_spill] sm:$0xff] %v2854_v38  ;;  %v2858_v41 = vmul.f32 %v2809_v13, %v2842_v35  ;;  %v2861_v44 = vld [vmem:[%s2589_s10 + $0x31] sm:$0xff]  ;;  %v2866_v50 = vld [vmem:[%s4087_s1 + $0x1b] ss:$0 sm:$0xff] }
  0x29   : > { %v425_v24 = vadd.f32 %v416_v3, %v391_v51  ;;  %4275 = vst [vmem:[#allocation36_spill] sm:$0xff] %v2861_v44  ;;  %4276 = vst [vmem:[#allocation37_spill] sm:$0xff] %v2866_v50  ;;  %v449_v51 = vmul.f32 %v2082_v31, %v2647_v32  ;;  %v2872_v3 = vmul.f32 %v2809_v13, %v2854_v38  ;;  %v2875_v5 = vld [vmem:[%s2589_s10 + $0x39] sm:$0xff] }
  0x2a   : > { %v694_v53 = vadd.f32 %v685_v46, %v660_v25  ;;  %v695_v2 = vadd.f32 %v686_v54, %v661_v26  ;;  %4277 = vst [vmem:[#allocation38_spill] sm:$0xff] %v2875_v5  ;;  %v2879_v6 = vmul.f32 %v2828_v21, %v2861_v44  ;;  %v2882_v1 = vld [vmem:[%s2589_s10 + $0x32] sm:$0xff]  ;;  %v2887_v31 = vld [vmem:[%s4087_s1 + $0x1c] ss:$0 sm:$0xff]  ;;  %v2891_v39 = vmul.f32 %v2828_v21, %v2875_v5  ;;  %v2906_v26 = vld [vmem:[%s4087_s1 + $0x1d] ss:$0 sm:$0xff] }
  0x2b   : > { %2394 = vmatpush3.bf16.msra.mxu0 %v2468_v20  ;;  %v2823_v20 = vld [vmem:[%s2589_s10 + $0x25] sm:$0xff]  ;;  %4278 = vst [vmem:[#allocation39_spill] sm:$0xff] %v2882_v1  ;;  %4279 = vst [vmem:[#allocation40_spill] sm:$0xff] %v2887_v31  ;;  %v2894_v46 = vld [vmem:[%s2589_s10 + $0x3a] sm:$0xff]  ;;  %v2898_v54 = vmul.f32 %v2847_v36, %v2882_v1  ;;  %v458_v32 = vadd.f32 %v449_v51, %v424_v23  ;;  %v459_v29 = vadd.f32 %v450_v52, %v425_v24 }
  0x2c   : > { %4269 = vst [vmem:[#allocation30_spill] sm:$0xff] %v2823_v20  ;;  %v2839_v34 = vmul.f32 %v2790_v0, %v2823_v20  ;;  %4280 = vst [vmem:[#allocation41_spill] sm:$0xff] %v2894_v46  ;;  %v2901_v25 = vld [vmem:[%s2589_s10 + $0x33] sm:$0xff]  ;;  %v728_v22 = vadd.f32 %v719_v56, %v694_v53  ;;  %v729_v17 = vadd.f32 %v720_v60, %v695_v2  ;;  %v2913_v7 = vld [vmem:[%s2589_s10 + $0x3b] sm:$0xff] }
  0x2d   : > { %4281 = vst [vmem:[#allocation42_spill] sm:$0xff] %v2901_v25  ;;  %4282 = vst [vmem:[#allocation43_spill] sm:$0xff] %v2906_v26  ;;  %v2910_v12 = vmul.f32 %v2847_v36, %v2894_v46  ;;  %v2917_v21 = vmul.f32 %v2866_v50, %v2901_v25  ;;  %v2920_v13 = vld [vmem:[%s2589_s10 + $0x34] sm:$0xff]  ;;  %v2925_v23 = vld [vmem:[%s4087_s1 + $0x20] ss:$0 sm:$0xff]  ;;  %v2929_v56 = vmul.f32 %v2866_v50, %v2913_v7 }
  0x2e   : > { %4283 = vst [vmem:[#allocation44_spill] sm:$0xff] %v2913_v7  ;;  %4284 = vst [vmem:[#allocation45_spill] sm:$0xff] %v2920_v13  ;;  %v2932_v60 = vld [vmem:[%s2589_s10 + $0x3c] sm:$0xff]  ;;  %v2936_v24 = vmul.f32 %v2887_v31, %v2920_v13  ;;  %v483_v53 = vmul.f32 %v2740_v42, %v2660_v40  ;;  %v484_v2 = vmul.f32 %v2750_v45, %v2660_v40 }
  0x2f   : > { %4285 = vst [vmem:[#allocation46_spill] sm:$0xff] %v2925_v23  ;;  %4286 = vst [vmem:[#allocation47_spill] sm:$0xff] %v2932_v60  ;;  %v2939_v51 = vld [vmem:[%s2589_s10 + $0x35] sm:$0xff]  ;;  %v2944_v52 = vld [vmem:[%s4087_s1 + $0x21] ss:$0 sm:$0xff]  ;;  %v762_v50 = vadd.f32 %v753_v62, %v728_v22  ;;  %v763_v36 = vadd.f32 %v754_v8, %v729_v17  ;;  %v2952_v0 = vmul.f32 %v2887_v31, %v2932_v60 }
  0x30   : > { %4287 = vst [vmem:[#allocation48_spill] sm:$0xff] %v2939_v51  ;;  %4288 = vst [vmem:[#allocation49_spill] sm:$0xff] %v2944_v52  ;;  %v2955_v13 = vld [vmem:[%s2589_s10 + $0x3d] sm:$0xff]  ;;  %v2959_v58 = vmul.f32 %v2906_v26, %v2939_v51  ;;  %v2974_v22 = vld [vmem:[%s2589_s10 + $0x48] sm:$0xff]  ;;  %v492_v42 = vadd.f32 %v483_v53, %v458_v32  ;;  %v493_v31 = vadd.f32 %v484_v2, %v459_v29 }
  0x31   : > { %4289 = vst [vmem:[#allocation50_spill] sm:$0xff] %v2955_v13  ;;  %v2962_v7 = vld [vmem:[%s2589_s10 + $0x40] sm:$0xff]  ;;  %v2971_v17 = vmul.f32 %v2906_v26, %v2955_v13  ;;  %4292 = vst [vmem:[#allocation53_spill] sm:$0xff] %v2974_v22  ;;  %v796_v51 = vadd.f32 %v2801_v10, %v762_v50  ;;  %v797_v26 = vadd.f32 %v2813_v14, %v763_v36  ;;  %v3014_v10 = vld [vmem:[%s2589_s10 + $0x4a] sm:$0xff] }
  0x32   : > { %4290 = vst [vmem:[#allocation51_spill] sm:$0xff] %v2962_v7  ;;  %v2967_v40 = vld [vmem:[%s4087_s1 + $0x22] ss:$0 sm:$0xff]  ;;  %v2978_v62 = vmul.f32 %v2925_v23, %v2962_v7  ;;  %v2986_v45 = vld [vmem:[%s4087_s1 + $0x23] ss:$0 sm:$0xff]  ;;  %v2992_v13 = vmul.f32 %v2925_v23, %v2974_v22  ;;  %v2995_v7 = vld [vmem:[%s2589_s10 + $0x49] sm:$0xff]  ;;  %v517_v53 = vmul.f32 %v2755_v47, %v2671_v49  ;;  %v518_v2 = vmul.f32 %v2765_v55, %v2671_v49 }
  0x33   : > { %4291 = vst [vmem:[#allocation52_spill] sm:$0xff] %v2967_v40  ;;  %v2981_v8 = vld [vmem:[%s2589_s10 + $0x41] sm:$0xff]  ;;  %4295 = vst [vmem:[#allocation56_spill] sm:$0xff] %v2986_v45  ;;  %v3011_v32 = vmul.f32 %v2944_v52, %v2995_v7  ;;  %v831_v23 = vadd.f32 %v2832_v28, %v797_v26 }
  0x34   : > { %4293 = vst [vmem:[#allocation54_spill] sm:$0xff] %v2978_v62  ;;  %4294 = vst [vmem:[#allocation55_spill] sm:$0xff] %v2981_v8  ;;  %v2999_v60 = vmul.f32 %v2944_v52, %v2981_v8  ;;  %v3002_v62 = vld [vmem:[%s2589_s10 + $0x42] sm:$0xff]  ;;  %v830_v52 = vadd.f32 %v2820_v19, %v796_v51  ;;  %v3053_v19 = vld [vmem:[%s2589_s10 + $0x4c] sm:$0xff]  ;;  %v526_v55 = vadd.f32 %v517_v53, %v492_v42 }
  0x35   : > { %4296 = vst [vmem:[#allocation57_spill] sm:$0xff] %v2995_v7  ;;  %4297 = vst [vmem:[#allocation58_spill] sm:$0xff] %v3002_v62  ;;  %v3007_v29 = vld [vmem:[%s4087_s1 + $0x24] ss:$0 sm:$0xff]  ;;  %v3018_v14 = vmul.f32 %v2967_v40, %v3002_v62  ;;  %v3026_v50 = vld [vmem:[%s4087_s1 + $0x25] ss:$0 sm:$0xff]  ;;  %v3036_v62 = vmul.f32 %v2967_v40, %v3014_v10  ;;  %v527_v40 = vadd.f32 %v518_v2, %v493_v31 }
  0x36   : > { %4298 = vst [vmem:[#allocation59_spill] sm:$0xff] %v3007_v29  ;;  %v3021_v36 = vld [vmem:[%s2589_s10 + $0x43] sm:$0xff]  ;;  %4300 = vst [vmem:[#allocation61_spill] sm:$0xff] %v3026_v50  ;;  %v3039_v7 = vld [vmem:[%s2589_s10 + $0x4b] sm:$0xff]  ;;  %v585_v31 = vmul.f32 %v2785_v63, %v2696_v4 }
  0x37   : > { %4299 = vst [vmem:[#allocation60_spill] sm:$0xff] %v3018_v14  ;;  %4301 = vst [vmem:[#allocation62_spill] sm:$0xff] %v3039_v7  ;;  %v3043_v14 = vmul.f32 %v2986_v45, %v3021_v36  ;;  %v3046_v47 = vld [vmem:[%s2589_s10 + $0x44] sm:$0xff]  ;;  %v3050_v49 = vmul.f32 %v2986_v45, %v3039_v7  ;;  %v865_v45 = vadd.f32 %v2851_v37, %v831_v23  ;;  %v3110_v63 = vld [vmem:[%s2589_s10 + $0x51] sm:$0xff] }
  0x38   : > { %4303 = vst [vmem:[#allocation64_spill] sm:$0xff] %v3046_v47  ;;  %v3057_v28 = vmul.f32 %v3007_v29, %v3046_v47  ;;  %v3060_v26 = vld [vmem:[%s2589_s10 + $0x45] sm:$0xff]  ;;  %v3071_v7 = vmul.f32 %v3007_v29, %v3053_v19  ;;  %v3078_v47 = vld [vmem:[%s2589_s10 + $0x4d] sm:$0xff]  ;;  %v552_v37 = vmul.f32 %v2780_v61, %v2686_v59  ;;  %v586_v23 = vmul.f32 %v2797_v9, %v2696_v4 }
  0x39   : > { %4302 = vst [vmem:[#allocation63_spill] sm:$0xff] %v3043_v14  ;;  %4304 = vst [vmem:[#allocation65_spill] sm:$0xff] %v3050_v49  ;;  %v3065_v51 = vld [vmem:[%s4087_s1 + $0x28] ss:$0 sm:$0xff]  ;;  %v864_v14 = vadd.f32 %v2839_v34, %v830_v52  ;;  %v3081_v49 = vld [vmem:[%s2589_s10 + $0x50] sm:$0xff]  ;;  %v551_v34 = vmul.f32 %v2770_v57, %v2686_v59  ;;  %v899_v53 = vadd.f32 %v2872_v3, %v865_v45 }
  0x3a   : > { %4305 = vst [vmem:[#allocation66_spill] sm:$0xff] %v3057_v28  ;;  %4306 = vst [vmem:[#allocation67_spill] sm:$0xff] %v3065_v51  ;;  %v3075_v28 = vmul.f32 %v3026_v50, %v3060_v26  ;;  %v3086_v42 = vld [vmem:[%s4087_s1 + $0x29] ss:$0 sm:$0xff]  ;;  %v3100_v2 = vmul.f32 %v3026_v50, %v3078_v47  ;;  %v3104_v57 = vmul.f32 %v3065_v51, %v3081_v49  ;;  %v3107_v59 = vld [vmem:[%s2589_s10 + $0x58] sm:$0xff] }
  0x3b   : > { %4307 = vst [vmem:[#allocation68_spill] sm:$0xff] %v3086_v42  ;;  %v898_v52 = vadd.f32 %v2858_v41, %v864_v14  ;;  %v3115_v4 = vld [vmem:[%s4087_s1 + $0x2a] ss:$0 sm:$0xff]  ;;  %v560_v41 = vadd.f32 %v551_v34, %v526_v55  ;;  %v561_v14 = vadd.f32 %v552_v37, %v527_v40  ;;  %v619_v45 = vmul.f32 %v2804_v11, %v2707_v15  ;;  %v3132_v40 = vld [vmem:[%s2589_s10 + $0x59] sm:$0xff]  ;;  %v3140_v37 = vld [vmem:[%s4087_s1 + $0x2b] ss:$0 sm:$0xff] }
  0x3c   : > { %4308 = vst [vmem:[#allocation69_spill] sm:$0xff] %v3115_v4  ;;  %v620_v3 = vmul.f32 %v2816_v18, %v2707_v15  ;;  %v933_v61 = vadd.f32 %v2891_v39, %v899_v53  ;;  %v3125_v50 = vmul.f32 %v3065_v51, %v3107_v59  ;;  %v3129_v55 = vmul.f32 %v3086_v42, %v3110_v63  ;;  %v3135_v34 = vld [vmem:[%s2589_s10 + $0x52] sm:$0xff] }
  0x3d   : > { %v932_v9 = vadd.f32 %v2879_v6, %v898_v52  ;;  %4309 = vst [vmem:[#allocation70_spill] sm:$0xff] %v3140_v37  ;;  %v594_v6 = vadd.f32 %v585_v31, %v560_v41  ;;  %v595_v52 = vadd.f32 %v586_v23, %v561_v14  ;;  %v653_v39 = vmul.f32 %v2823_v20, %v2713_v16  ;;  %v3157_v23 = vld [vmem:[%s2589_s10 + $0x5a] sm:$0xff]  ;;  %v3165_v14 = vld [vmem:[%s4087_s1 + $0x2c] ss:$0 sm:$0xff] }
  0x3e   : > { %v654_v53 = vmul.f32 %v2835_v30, %v2713_v16  ;;  %v967_v51 = vadd.f32 %v2910_v12, %v933_v61  ;;  %v3150_v18 = vmul.f32 %v3086_v42, %v3132_v40  ;;  %v3154_v31 = vmul.f32 %v3115_v4, %v3135_v34  ;;  %v3160_v41 = vld [vmem:[%s2589_s10 + $0x53] sm:$0xff]  ;;  %4310 = vst [vmem:[#allocation71_spill] sm:$0xff] %v3165_v14 }
  0x3f   : > { %v966_v15 = vadd.f32 %v2898_v54, %v932_v9  ;;  %v628_v9 = vadd.f32 %v619_v45, %v594_v6  ;;  %v629_v54 = vadd.f32 %v620_v3, %v595_v52  ;;  %v687_v12 = vmul.f32 %v2842_v35, %v2724_v27  ;;  %v3182_v3 = vld [vmem:[%s2589_s10 + $0x5b] sm:$0xff]  ;;  %v3190_v52 = vld [vmem:[%s4087_s1 + $0x2d] ss:$0 sm:$0xff] }
  0x40   : > { %v688_v61 = vmul.f32 %v2854_v38, %v2724_v27  ;;  %v1001_v42 = vadd.f32 %v2929_v56, %v967_v51  ;;  %v3175_v30 = vmul.f32 %v3115_v4, %v3157_v23  ;;  %v3179_v45 = vmul.f32 %v3140_v37, %v3160_v41  ;;  %4311 = vst [vmem:[#allocation72_spill] sm:$0xff] %v3182_v3  ;;  %v3185_v6 = vld [vmem:[%s2589_s10 + $0x54] sm:$0xff] }
  0x41   : > { %v1000_v16 = vadd.f32 %v2917_v21, %v966_v15  ;;  %4312 = vst [vmem:[#allocation73_spill] sm:$0xff] %v3185_v6  ;;  %4313 = vst [vmem:[#allocation74_spill] sm:$0xff] %v3190_v52  ;;  %v662_v15 = vadd.f32 %v653_v39, %v628_v9  ;;  %v663_v21 = vadd.f32 %v654_v53, %v629_v54  ;;  %v3207_v39 = vld [vmem:[%s2589_s10 + $0x5c] sm:$0xff] }
  0x42   : > { %v721_v56 = vmul.f32 %v2861_v44, %v2732_v33  ;;  %v722_v51 = vmul.f32 %v2875_v5, %v2732_v33  ;;  %v1035_v4 = vadd.f32 %v2952_v0, %v1001_v42  ;;  %v3200_v38 = vmul.f32 %v3140_v37, %v3182_v3  ;;  %4314 = vst [vmem:[#allocation75_spill] sm:$0xff] %v3207_v39  ;;  %v3210_v53 = vld [vmem:[%s2589_s10 + $0x55] sm:$0xff] }
  0x43   : > { %v1034_v27 = vadd.f32 %v2936_v24, %v1000_v16  ;;  %v3204_v35 = vmul.f32 %v3165_v14, %v3185_v6  ;;  %4315 = vst [vmem:[#allocation76_spill] sm:$0xff] %v3210_v53  ;;  %v696_v9 = vadd.f32 %v687_v12, %v662_v15  ;;  %v697_v54 = vadd.f32 %v688_v61, %v663_v21  ;;  %v3227_v12 = vld [vmem:[%s2589_s10 + $0x5d] sm:$0xff] }
  0x44   : > { %v755_v33 = vmul.f32 %v2882_v1, %v2745_v43  ;;  %v756_v16 = vmul.f32 %v2894_v46, %v2745_v43  ;;  %v1069_v24 = vadd.f32 %v2971_v17, %v1035_v4  ;;  %v3220_v42 = vmul.f32 %v3165_v14, %v3207_v39  ;;  %4316 = vst [vmem:[#allocation77_spill] sm:$0xff] %v3227_v12  ;;  %v4317_v43 = vld [vmem:[#allocation44_spill] sm:$0xff]  ;;  %v4319_v46 = vld [vmem:[#allocation23_spill] sm:$0xff]  ;;  %v4320_v1 = vld [vmem:[#allocation45_spill] sm:$0xff] }
  0x45   : > { %v1068_v0 = vadd.f32 %v2959_v58, %v1034_v27  ;;  %v3224_v37 = vmul.f32 %v3190_v52, %v3210_v53  ;;  %v730_v61 = vadd.f32 %v721_v56, %v696_v9  ;;  %v731_v15 = vadd.f32 %v722_v51, %v697_v54  ;;  %v4318_v58 = vld [vmem:[#allocation54_spill] sm:$0xff]  ;;  %v4321_v51 = vld [vmem:[#allocation47_spill] sm:$0xff] }
  0x46   : > { %v789_v21 = vmul.f32 %v2901_v25, %v2760_v48  ;;  %v790_v27 = vmul.f32 %v4317_v43, %v2760_v48  ;;  %v1103_v17 = vadd.f32 %v2992_v13, %v1069_v24  ;;  %v3237_v14 = vmul.f32 %v3190_v52, %v3227_v12  ;;  %v4322_v54 = vld [vmem:[#allocation26_spill] sm:$0xff]  ;;  %v4323_v25 = vld [vmem:[#allocation48_spill] sm:$0xff]  ;;  %v4326_v52 = vld [vmem:[#allocation51_spill] sm:$0xff] }
  0x47   : > { %v1102_v4 = vadd.f32 %v4318_v58, %v1068_v0  ;;  %v823_v5 = vmul.f32 %v4320_v1, %v4319_v46  ;;  %v764_v44 = vadd.f32 %v755_v33, %v730_v61  ;;  %v765_v56 = vadd.f32 %v756_v16, %v731_v15  ;;  %v4324_v13 = vld [vmem:[#allocation50_spill] sm:$0xff]  ;;  %v4325_v58 = vld [vmem:[#allocation28_spill] sm:$0xff]  ;;  %v4327_v16 = vld [vmem:[#allocation31_spill] sm:$0xff] }
  0x48   : > { %v824_v9 = vmul.f32 %v4321_v51, %v4319_v46  ;;  %v857_v20 = vmul.f32 %v4323_v25, %v4322_v54  ;;  %v1137_v0 = vadd.f32 %v3011_v32, %v1103_v17  ;;  %v858_v24 = vmul.f32 %v4324_v13, %v4322_v54  ;;  %v4328_v15 = vld [vmem:[#allocation60_spill] sm:$0xff]  ;;  %v4329_v32 = vld [vmem:[#allocation57_spill] sm:$0xff]  ;;  %v4330_v17 = vld [vmem:[#allocation34_spill] sm:$0xff] }
  0x49   : > { %v1136_v48 = vadd.f32 %v2999_v60, %v1102_v4  ;;  %v891_v43 = vmul.f32 %v4326_v52, %v4325_v58  ;;  %v798_v12 = vadd.f32 %v789_v21, %v764_v44  ;;  %v799_v1 = vadd.f32 %v790_v27, %v765_v56  ;;  %v4331_v54 = vld [vmem:[#allocation58_spill] sm:$0xff]  ;;  %v4332_v21 = vld [vmem:[#allocation37_spill] sm:$0xff]  ;;  %v4333_v56 = vld [vmem:[#allocation63_spill] sm:$0xff] }
  0x4a   : > { %v892_v33 = vmul.f32 %v2974_v22, %v4325_v58  ;;  %v925_v61 = vmul.f32 %v2981_v8, %v4327_v16  ;;  %v1171_v60 = vadd.f32 %v3036_v62, %v1137_v0  ;;  %v926_v4 = vmul.f32 %v4329_v32, %v4327_v16  ;;  %v4334_v8 = vld [vmem:[#allocation65_spill] sm:$0xff]  ;;  %v4335_v62 = vld [vmem:[#allocation62_spill] sm:$0xff]  ;;  %v4337_v16 = vld [vmem:[#allocation64_spill] sm:$0xff] }
  0x4b   : > { %v1170_v46 = vadd.f32 %v4328_v15, %v1136_v48  ;;  %v959_v13 = vmul.f32 %v4331_v54, %v4330_v17  ;;  %v832_v25 = vadd.f32 %v823_v5, %v798_v12  ;;  %v833_v52 = vadd.f32 %v824_v9, %v799_v1  ;;  %v4336_v15 = vld [vmem:[#allocation40_spill] sm:$0xff]  ;;  %v4338_v5 = vld [vmem:[#allocation43_spill] sm:$0xff]  ;;  %v4339_v9 = vld [vmem:[#allocation66_spill] sm:$0xff] }
  0x4c   : > { %v960_v44 = vmul.f32 %v3014_v10, %v4330_v17  ;;  %v993_v27 = vmul.f32 %v3021_v36, %v4332_v21  ;;  %v1205_v48 = vadd.f32 %v4334_v8, %v1171_v60  ;;  %v994_v0 = vmul.f32 %v4335_v62, %v4332_v21  ;;  %v4340_v60 = vld [vmem:[#allocation46_spill] sm:$0xff] }
  0x4d   : > { %v1204_v58 = vadd.f32 %v4333_v56, %v1170_v46  ;;  %v1027_v32 = vmul.f32 %v4337_v16, %v4336_v15  ;;  %v866_v22 = vadd.f32 %v857_v20, %v832_v25  ;;  %v867_v54 = vadd.f32 %v858_v24, %v833_v52  ;;  %v4341_v25 = vld [vmem:[#allocation49_spill] sm:$0xff] }
  0x4e   : > { %v1028_v1 = vmul.f32 %v3053_v19, %v4336_v15  ;;  %v1061_v12 = vmul.f32 %v3060_v26, %v4338_v5  ;;  %v1239_v46 = vadd.f32 %v3071_v7, %v1205_v48  ;;  %v1062_v8 = vmul.f32 %v3078_v47, %v4338_v5  ;;  %v4342_v48 = vld [vmem:[#allocation52_spill] sm:$0xff] }
  0x4f   : > { %v1238_v17 = vadd.f32 %v4339_v9, %v1204_v58  ;;  %v1095_v56 = vmul.f32 %v3081_v49, %v4340_v60  ;;  %v900_v21 = vadd.f32 %v891_v43, %v866_v22  ;;  %v901_v16 = vadd.f32 %v892_v33, %v867_v54  ;;  %v4343_v22 = vld [vmem:[#allocation56_spill] sm:$0xff] }
  0x50   : > { %v1096_v20 = vmul.f32 %v3107_v59, %v4340_v60  ;;  %v1129_v52 = vmul.f32 %v3110_v63, %v4341_v25  ;;  %v1273_v58 = vadd.f32 %v3100_v2, %v1239_v46  ;;  %v1130_v7 = vmul.f32 %v3132_v40, %v4341_v25  ;;  %v4350_v60 = vld [vmem:[#allocation21_spill] sm:$0xff] }
  0x51   : > { %v1272_v24 = vadd.f32 %v3075_v28, %v1238_v17  ;;  %v1163_v9 = vmul.f32 %v3135_v34, %v4342_v48  ;;  %v934_v5 = vadd.f32 %v925_v61, %v900_v21  ;;  %v935_v15 = vadd.f32 %v926_v4, %v901_v16  ;;  %v4344_v21 = vld [vmem:[#allocation61_spill] sm:$0xff] }
  0x52   : > { %v1164_v43 = vmul.f32 %v3157_v23, %v4342_v48  ;;  %v3295_v54 = vmul.f32 %v3160_v41, %v4343_v22  ;;  %v1307_v28 = vadd.f32 %v3125_v50, %v1273_v58  ;;  %v1198_v2 = vmul.f32 %v3182_v3, %v4343_v22  ;;  %v4346_v58 = vld [vmem:[#allocation16_spill] sm:$0xff]  ;;  %v4347_v48 = vld [vmem:[#allocation18_spill] sm:$0xff] }
  0x53   : > { %v1306_v33 = vadd.f32 %v3104_v57, %v1272_v24  ;;  %v3303_v17 = vmul.f32 %v3185_v6, %v3007_v29  ;;  %v968_v61 = vadd.f32 %v959_v13, %v934_v5  ;;  %v969_v16 = vadd.f32 %v960_v44, %v935_v15  ;;  %v4345_v24 = vld [vmem:[#allocation2_spill] sm:$0xff]  ;;  %v4348_v15 = vld [vmem:[#allocation3_spill] sm:$0xff] }
  0x54   : > { %v3307_v4 = vmul.f32 %v3207_v39, %v3007_v29  ;;  %v3311_v46 = vmul.f32 %v3210_v53, %v4344_v21  ;;  %v1341_v50 = vadd.f32 %v3150_v18, %v1307_v28  ;;  %v281_v22 = vmul.f32 %v4346_v58, %v4345_v24  ;;  %v4349_v5 = vld [vmem:[#allocation19_spill] sm:$0xff]  ;;  %v4352_v18 = vld [vmem:[#allocation22_spill] sm:$0xff]  ;;  %v4353_v58 = vld [vmem:[#allocation24_spill] sm:$0xff] }
  0x55   : > { %v1340_v57 = vadd.f32 %v3129_v55, %v1306_v33  ;;  %v282_v25 = vmul.f32 %v4347_v48, %v4345_v24  ;;  %v1002_v13 = vadd.f32 %v993_v27, %v968_v61  ;;  %v1003_v44 = vadd.f32 %v994_v0, %v969_v16  ;;  %v4351_v33 = vld [vmem:[#allocation4_spill] sm:$0xff]  ;;  %v4354_v24 = vld [vmem:[#allocation5_spill] sm:$0xff] }
  0x56   : > { %v315_v29 = vmul.f32 %v4349_v5, %v4348_v15  ;;  %v316_v39 = vmul.f32 %v4350_v60, %v4348_v15  ;;  %v1375_v55 = vadd.f32 %v3175_v30, %v1341_v50  ;;  %v349_v28 = vmul.f32 %v4352_v18, %v4351_v33  ;;  %v4355_v60 = vld [vmem:[#allocation25_spill] sm:$0xff] }
  0x57   : > { %v1374_v53 = vadd.f32 %v3154_v31, %v1340_v57  ;;  %v350_v6 = vmul.f32 %v4353_v58, %v4351_v33  ;;  %v1036_v3 = vadd.f32 %v1027_v32, %v1002_v13  ;;  %v1037_v48 = vadd.f32 %v1028_v1, %v1003_v44  ;;  %v4356_v31 = vld [vmem:[#allocation27_spill] sm:$0xff] }
  0x58   : > { %v324_v27 = vadd.f32 %v315_v29, %v281_v22  ;;  %v325_v0 = vadd.f32 %v316_v39, %v282_v25  ;;  %v1409_v16 = vadd.f32 %v3200_v38, %v1375_v55  ;;  %v383_v15 = vmul.f32 %v4355_v60, %v4354_v24  ;;  %v4357_v29 = vld [vmem:[#allocation6_spill] sm:$0xff] }
  0x59   : > { %v1408_v61 = vadd.f32 %v3179_v45, %v1374_v53  ;;  %v384_v30 = vmul.f32 %v4356_v31, %v4354_v24  ;;  %v1070_v57 = vadd.f32 %v1061_v12, %v1036_v3  ;;  %v1071_v50 = vadd.f32 %v1062_v8, %v1037_v48  ;;  %v4358_v45 = vld [vmem:[#allocation29_spill] sm:$0xff]  ;;  %v4359_v12 = vld [vmem:[#allocation7_spill] sm:$0xff]  ;;  %v4362_v48 = vld [vmem:[#allocation8_spill] sm:$0xff] }
  0x5a   : > { %v358_v5 = vadd.f32 %v349_v28, %v324_v27  ;;  %v359_v18 = vadd.f32 %v350_v6, %v325_v0  ;;  %v1443_v32 = vadd.f32 %v3220_v42, %v1409_v16  ;;  %v417_v39 = vmul.f32 %v2804_v11, %v4357_v29  ;;  %v4360_v6 = vld [vmem:[#allocation30_spill] sm:$0xff]  ;;  %v4364_v27 = vld [vmem:[#allocation35_spill] sm:$0xff]  ;;  %v4366_v0 = vld [vmem:[#allocation36_spill] sm:$0xff] }
  0x5b   : > { %v1442_v33 = vadd.f32 %v3204_v35, %v1408_v61  ;;  %v418_v38 = vmul.f32 %v4358_v45, %v4357_v29  ;;  %v1104_v53 = vadd.f32 %v1095_v56, %v1070_v57  ;;  %v1105_v1 = vadd.f32 %v1096_v20, %v1071_v50  ;;  %v4361_v35 = vld [vmem:[#allocation32_spill] sm:$0xff]  ;;  %v4363_v56 = vld [vmem:[#allocation33_spill] sm:$0xff]  ;;  %v4368_v31 = vld [vmem:[#allocation38_spill] sm:$0xff] }
  0x5c   : > { %v392_v25 = vadd.f32 %v383_v15, %v358_v5  ;;  %v393_v22 = vadd.f32 %v384_v30, %v359_v18  ;;  %v1477_v3 = vadd.f32 %v3237_v14, %v1443_v32  ;;  %v451_v8 = vmul.f32 %v4360_v6, %v4359_v12  ;;  %v4365_v14 = vld [vmem:[#allocation9_spill] sm:$0xff]  ;;  %v4369_v57 = vld [vmem:[#allocation10_spill] sm:$0xff]  ;;  %v4370_v50 = vld [vmem:[#allocation39_spill] sm:$0xff] }
  0x5d   : > { %v1476_v13 = vadd.f32 %v3224_v37, %v1442_v33  ;;  %v452_v42 = vmul.f32 %v4361_v35, %v4359_v12  ;;  %v1138_v44 = vadd.f32 %v1129_v52, %v1104_v53  ;;  %v1139_v55 = vadd.f32 %v1130_v7, %v1105_v1  ;;  %v4367_v52 = vld [vmem:[#allocation77_spill] sm:$0xff]  ;;  %v3365_v29 = vld [vmem:[%s2589_s10 + $0x60] sm:$0xff]  ;;  %v4373_v53 = vld [vmem:[#allocation67_spill] sm:$0xff] }
  0x5e   : > { %v426_v11 = vadd.f32 %v417_v39, %v392_v25  ;;  %v427_v28 = vadd.f32 %v418_v38, %v393_v22  ;;  %v485_v20 = vmul.f32 %v4363_v56, %v4362_v48  ;;  %v486_v37 = vmul.f32 %v4364_v27, %v4362_v48  ;;  %v4371_v18 = vld [vmem:[#allocation41_spill] sm:$0xff]  ;;  %v3368_v39 = vld [vmem:[%s2589_s10 + $0x68] sm:$0xff] }
  0x5f   : > { %v1485_v58 = vpack.c.bf16 %v1477_v3, %v1476_v13  ;;  %v519_v61 = vmul.f32 %v4366_v0, %v4365_v14  ;;  %v1172_v16 = vadd.f32 %v1163_v9, %v1138_v44  ;;  %v1173_v24 = vadd.f32 %v1164_v43, %v1139_v55  ;;  %v4374_v22 = vld [vmem:[#allocation11_spill] sm:$0xff]  ;;  %v4375_v13 = vld [vmem:[#allocation42_spill] sm:$0xff]  ;;  %v4377_v55 = vld [vmem:[#allocation68_spill] sm:$0xff] }
  0x60   : > { %v460_v60 = vadd.f32 %v451_v8, %v426_v11  ;;  %v461_v15 = vadd.f32 %v452_v42, %v427_v28  ;;  %v1266_v7 = vmul.f32 %v4367_v52, %v4344_v21  ;;  %v520_v30 = vmul.f32 %v4368_v31, %v4365_v14  ;;  %v3381_v8 = vld [vmem:[%s2589_s10 + $0x61] sm:$0xff]  ;;  %v3384_v35 = vld [vmem:[%s2589_s10 + $0x69] sm:$0xff]  ;;  %v4379_v48 = vld [vmem:[#allocation45_spill] sm:$0xff] }
  0x61   : > { %2396 = vmatmul.mubr.bf16.vlgmr.msra.gmra.mrb[0].mxu0 %v1485_v58  ;;  %v553_v5 = vmul.f32 %v4370_v50, %v4369_v57  ;;  %v554_v33 = vmul.f32 %v4371_v18, %v4369_v57  ;;  %v4372_v32 = vmov 0.0   ;;  %v1206_v9 = vadd.f32 %v3295_v54, %v1172_v16  ;;  %v4376_v54 = vld [vmem:[#allocation44_spill] sm:$0xff]  ;;  %v3396_v27 = vld [vmem:[%s2589_s10 + $0x62] sm:$0xff] }
  0x62   : > { %2399 = vmatprep.mubr.msk.bf16.mxu0 %vm2522_vm0, %v4372_v32  ;;  %v1207_v43 = vadd.f32 %v1198_v2, %v1173_v24  ;;  %v494_v45 = vadd.f32 %v485_v20, %v460_v60  ;;  %v495_v38 = vadd.f32 %v486_v37, %v461_v15  ;;  %v1299_v1 = vmul.f32 %v4373_v53, %v3365_v29  ;;  %v4378_v58 = vld [vmem:[#allocation12_spill] sm:$0xff]  ;;  %v4381_v60 = vld [vmem:[#allocation13_spill] sm:$0xff]  ;;  %v3413_v50 = vld [vmem:[%s2589_s10 + $0x63] sm:$0xff] }
  0x63   : > { %v1300_v25 = vmul.f32 %v4373_v53, %v3368_v39  ;;  %v587_v3 = vmul.f32 %v4375_v13, %v4374_v22  ;;  %v588_v2 = vmul.f32 %v4376_v54, %v4374_v22  ;;  %v1240_v12 = vadd.f32 %v3303_v17, %v1206_v9  ;;  %v3399_v37 = vld [vmem:[%s2589_s10 + $0x6a] sm:$0xff]  ;;  %v4384_v9 = vld [vmem:[#allocation70_spill] sm:$0xff]  ;;  %v4387_v54 = vld [vmem:[#allocation53_spill] sm:$0xff] }
  0x64   : > { %v1241_v6 = vadd.f32 %v3307_v4, %v1207_v43  ;;  %v528_v42 = vadd.f32 %v519_v61, %v494_v45  ;;  %v529_v44 = vadd.f32 %v520_v30, %v495_v38  ;;  %v1333_v11 = vmul.f32 %v4377_v55, %v3381_v8  ;;  %v4380_v61 = vld [vmem:[#allocation69_spill] sm:$0xff]  ;;  %v4382_v15 = vld [vmem:[#allocation48_spill] sm:$0xff]  ;;  %v4385_v38 = vld [vmem:[#allocation14_spill] sm:$0xff] }
  0x65   : > { %v1334_v28 = vmul.f32 %v4377_v55, %v3384_v35  ;;  %v621_v56 = vmul.f32 %v4379_v48, %v4378_v58  ;;  %v622_v17 = vmul.f32 %v4321_v51, %v4378_v58  ;;  %v1274_v4 = vadd.f32 %v3311_v46, %v1240_v12  ;;  %v4383_v51 = vld [vmem:[#allocation50_spill] sm:$0xff]  ;;  %v4386_v22 = vld [vmem:[#allocation51_spill] sm:$0xff] }
  0x66   : > { %v1275_v20 = vadd.f32 %v1266_v7, %v1241_v6  ;;  %v562_v14 = vadd.f32 %v553_v5, %v528_v42  ;;  %v563_v0 = vadd.f32 %v554_v33, %v529_v44  ;;  %v1367_v16 = vmul.f32 %v4380_v61, %v3396_v27  ;;  %v2469_v46 = vld [vmem:[%s4091_s5] sm:$0xff]   ;;  %v3416_v5 = vld [vmem:[%s2589_s10 + $0x6b] sm:$0xff] }
  0x67   : > { %v1368_v24 = vmul.f32 %v4380_v61, %v3399_v37  ;;  %v655_v31 = vmul.f32 %v4382_v15, %v4381_v60  ;;  %v656_v30 = vmul.f32 %v4383_v51, %v4381_v60  ;;  %v1308_v7 = vadd.f32 %v1299_v1, %v1274_v4  ;;  %2416 = vmatpush3.bf16.msra.mxu1 %v2469_v46  ;;  %v2470_v1 = vld [vmem:[%s4091_s5 + $0x8] sm:$0xff]  }
  0x68   : > { %v1309_v57 = vadd.f32 %v1300_v25, %v1275_v20  ;;  %v596_v18 = vadd.f32 %v587_v3, %v562_v14  ;;  %v597_v33 = vadd.f32 %v588_v2, %v563_v0  ;;  %v1401_v43 = vmul.f32 %v4384_v9, %v3413_v50  ;;  %v3430_v2 = vld [vmem:[%s2589_s10 + $0x64] sm:$0xff]  ;;  %v3433_v6 = vld [vmem:[%s2589_s10 + $0x6c] sm:$0xff]  ;;  %2417 = vmatprep.subr.bf16.mxu1 %v4372_v32 }
  0x69   : > { %v1402_v45 = vmul.f32 %v4384_v9, %v3416_v5  ;;  %v689_v13 = vmul.f32 %v4386_v22, %v4385_v38  ;;  %v690_v12 = vmul.f32 %v4387_v54, %v4385_v38  ;;  %v1342_v25 = vadd.f32 %v1333_v11, %v1308_v7  ;;  %v4388_v58 = vld [vmem:[#allocation71_spill] sm:$0xff]  ;;  %v4391_v11 = vld [vmem:[#allocation57_spill] sm:$0xff]  ;;  %v4392_v7 = vld [vmem:[#allocation74_spill] sm:$0xff] }
  0x6a   : > { %v1343_v3 = vadd.f32 %v1334_v28, %v1309_v57  ;;  %v630_v42 = vadd.f32 %v621_v56, %v596_v18  ;;  %v631_v44 = vadd.f32 %v622_v17, %v597_v33  ;;  %v1435_v48 = vmul.f32 %v4388_v58, %v3430_v2  ;;  %v4389_v20 = vld [vmem:[#allocation15_spill] sm:$0xff]  ;;  %v4393_v33 = vld [vmem:[#allocation17_spill] sm:$0xff]  ;;  %v4394_v38 = vld [vmem:[#allocation58_spill] sm:$0xff] }
  0x6b   : > { %v1436_v4 = vmul.f32 %v4388_v58, %v3433_v6  ;;  %v4390_v14 = vld [vmem:[#allocation55_spill] sm:$0xff]  ;;  %v724_v28 = vmul.f32 %v4391_v11, %v4389_v20  ;;  %v1376_v60 = vadd.f32 %v1367_v16, %v1342_v25  ;;  %v757_v22 = vmul.f32 %v4394_v38, %v4393_v33  ;;  %2418 = vmatpush3.bf16.msra.mxu1 %v2470_v1  ;;  %v2471_v16 = vld [vmem:[%s4091_s5 + $0x10] sm:$0xff]  }
  0x6c   : > { %v723_v0 = vmul.f32 %v4390_v14, %v4389_v20  ;;  %v1377_v15 = vadd.f32 %v1368_v24, %v1343_v3  ;;  %v3445_v51 = vld [vmem:[%s2589_s10 + $0x65] sm:$0xff]  ;;  %v3448_v56 = vld [vmem:[%s2589_s10 + $0x6d] sm:$0xff]  ;;  %v664_v17 = vadd.f32 %v655_v31, %v630_v42  ;;  %v665_v46 = vadd.f32 %v656_v30, %v631_v44  ;;  %2419 = vmatprep.subr.bf16.mxu1 %v4372_v32 }
  0x6d   : > { %v1469_v57 = vmul.f32 %v4392_v7, %v3445_v51  ;;  %v1470_v18 = vmul.f32 %v4392_v7, %v3448_v56  ;;  %v758_v54 = vmul.f32 %v3014_v10, %v4393_v33  ;;  %v1410_v24 = vadd.f32 %v1401_v43, %v1376_v60  ;;  %v4395_v3 = vld [vmem:[#allocation20_spill] sm:$0xff]  ;;  %v4396_v11 = vld [vmem:[#allocation23_spill] sm:$0xff] }
  0x6e   : > { %v1411_v31 = vadd.f32 %v1402_v45, %v1377_v15  ;;  %v698_v30 = vadd.f32 %v689_v13, %v664_v17  ;;  %v699_v25 = vadd.f32 %v690_v12, %v665_v46  ;;  %v791_v42 = vmul.f32 %v3021_v36, %v4395_v3  ;;  %v4397_v33 = vld [vmem:[#allocation64_spill] sm:$0xff]  ;;  %v2472_v45 = vld [vmem:[%s4091_s5 + $0x18] sm:$0xff]   ;;  %v2473_v15 = vld [vmem:[%s4091_s5 + $0x20] sm:$0xff]  }
  0x6f   : > { %v792_v44 = vmul.f32 %v4335_v62, %v4395_v3  ;;  %v1444_v20 = vadd.f32 %v1435_v48, %v1410_v24  ;;  %v825_v38 = vmul.f32 %v4397_v33, %v4396_v11  ;;  %v826_v43 = vmul.f32 %v3053_v19, %v4396_v11  ;;  %2420 = vmatpush3.bf16.msra.mxu1 %v2471_v16  ;;  %v4398_v48 = vld [vmem:[#allocation26_spill] sm:$0xff]  ;;  %v1998_v3 = vld [vmem:[%s2589_s10 + $0x32] sm:$0xff] }
  0x70   : > { %v1445_v14 = vadd.f32 %v1436_v4, %v1411_v31  ;;  %v732_v10 = vadd.f32 %v723_v0, %v698_v30  ;;  %v733_v1 = vadd.f32 %v724_v28, %v699_v25  ;;  %2421 = vmatprep.subr.bf16.mxu1 %v4372_v32  ;;  %v859_v4 = vmul.f32 %v3060_v26, %v4398_v48  ;;  %v4400_v31 = vld [vmem:[#allocation31_spill] sm:$0xff]  ;;  %v2008_v11 = vld [vmem:[%s2589_s10 + $0x33] sm:$0xff]  ;;  %v2009_v33 = vld [vmem:[%s2589_s10 + $0x3b] sm:$0xff] }
  0x71   : > { %v1478_v13 = vadd.f32 %v1469_v57, %v1444_v20  ;;  %v860_v60 = vmul.f32 %v3078_v47, %v4398_v48  ;;  %v4399_v57 = vld [vmem:[#allocation28_spill] sm:$0xff]  ;;  %v927_v30 = vmul.f32 %v3110_v63, %v4400_v31  ;;  %v928_v25 = vmul.f32 %v3132_v40, %v4400_v31  ;;  %v3505_v63 = vld [vmem:[%s4087_s1] ss:$0 sm:$0xff] }
  0x72   : > { %v1479_v36 = vadd.f32 %v1470_v18, %v1445_v14  ;;  %v766_v12 = vadd.f32 %v757_v22, %v732_v10  ;;  %v767_v62 = vadd.f32 %v758_v54, %v733_v1  ;;  %v893_v26 = vmul.f32 %v3081_v49, %v4399_v57  ;;  %v269_v47 = vld [vmem:[%s2589_s10 + $0x30] sm:$0xff]  ;;  %v270_v22 = vld [vmem:[%s2589_s10 + $0x38] sm:$0xff] }
  0x73   : > { %2422 = vmatpush3.bf16.msra.mxu1 %v2472_v45  ;;  %v894_v18 = vmul.f32 %v3107_v59, %v4399_v57  ;;  %v1988_v54 = vld [vmem:[%s2589_s10 + $0x31] sm:$0xff]  ;;  %v1989_v49 = vld [vmem:[%s2589_s10 + $0x39] sm:$0xff]  ;;  %v283_v40 = vmul.f32 %v3505_v63, %v269_v47  ;;  %v284_v1 = vmul.f32 %v3505_v63, %v270_v22 }
  0x74   : > { %v1486_v0 = vpack.c.bf16 %v1479_v36, %v1478_v13  ;;  %v800_v28 = vadd.f32 %v791_v42, %v766_v12  ;;  %v801_v19 = vadd.f32 %v792_v44, %v767_v62  ;;  %v1999_v42 = vld [vmem:[%s2589_s10 + $0x3a] sm:$0xff]  ;;  %2423 = vmatprep.subr.bf16.mxu1 %v4372_v32 }
  0x75   : > { %v4401_v59 = vld [vmem:[#allocation34_spill] sm:$0xff]  ;;  %v4402_v62 = vld [vmem:[#allocation37_spill] sm:$0xff] }
  0x76   : > { %2400 = vmatmul.mubr.bf16.gmra.mrb[4].mxu0 %v1486_v0  ;;  %v834_v17 = vadd.f32 %v825_v38, %v800_v28  ;;  %v835_v46 = vadd.f32 %v826_v43, %v801_v19  ;;  %v961_v44 = vmul.f32 %v3135_v34, %v4401_v59  ;;  %v962_v20 = vmul.f32 %v3157_v23, %v4401_v59  ;;  %v3515_v34 = vld [vmem:[%s4087_s1 + $0x1] ss:$0 sm:$0xff]  ;;  %v3522_v43 = vld [vmem:[%s4087_s1 + $0x2] ss:$0 sm:$0xff]  ;;  %v2018_v28 = vld [vmem:[%s2589_s10 + $0x34] sm:$0xff] }
  0x77   : > { %2403 = vmatprep.mubr.msk.bf16.mxu0 %vm2522_vm0, %v4372_v32  ;;  %2424 = vmatpush3.bf16.msra.mxu1 %v2473_v15  ;;  %v317_v23 = vmul.f32 %v3515_v34, %v1988_v54  ;;  %v318_v38 = vmul.f32 %v3515_v34, %v1989_v49  ;;  %v351_v45 = vmul.f32 %v3522_v43, %v1998_v3  ;;  %v2019_v19 = vld [vmem:[%s2589_s10 + $0x3c] sm:$0xff]  ;;  %v4406_v54 = vld [vmem:[#allocation75_spill] sm:$0xff]  ;;  %v3548_v49 = vld [vmem:[%s4087_s1 + $0x4] ss:$0 sm:$0xff] }
  0x78   : > { %v868_v16 = vadd.f32 %v859_v4, %v834_v17  ;;  %v869_v24 = vadd.f32 %v860_v60, %v835_v46  ;;  %2425 = vmatprep.subr.bf16.mxu1 %v4372_v32  ;;  %v352_v13 = vmul.f32 %v3522_v43, %v1999_v42  ;;  %v995_v48 = vmul.f32 %v3160_v41, %v4402_v62  ;;  %v4403_v4 = vld [vmem:[#allocation72_spill] sm:$0xff]  ;;  %v3535_v17 = vld [vmem:[%s4087_s1 + $0x3] ss:$0 sm:$0xff]  ;;  %v4405_v47 = vld [vmem:[#allocation73_spill] sm:$0xff] }
  0x79   : > { %v996_v0 = vmul.f32 %v4403_v4, %v4402_v62  ;;  %v326_v60 = vadd.f32 %v317_v23, %v283_v40  ;;  %v327_v15 = vadd.f32 %v318_v38, %v284_v1  ;;  %v385_v46 = vmul.f32 %v3535_v17, %v2008_v11  ;;  %v4404_v41 = vld [vmem:[#allocation40_spill] sm:$0xff]  ;;  %v2029_v31 = vld [vmem:[%s2589_s10 + $0x3d] sm:$0xff]  ;;  %v2039_v1 = vld [vmem:[%s2589_s10 + $0x48] sm:$0xff] }
  0x7a   : > { %v902_v14 = vadd.f32 %v893_v26, %v868_v16  ;;  %v903_v10 = vadd.f32 %v894_v18, %v869_v24  ;;  %v386_v57 = vmul.f32 %v3535_v17, %v2009_v33  ;;  %v1029_v22 = vmul.f32 %v4405_v47, %v4404_v41  ;;  %v2028_v24 = vld [vmem:[%s2589_s10 + $0x35] sm:$0xff]  ;;  %v3560_v23 = vld [vmem:[%s4087_s1 + $0x5] ss:$0 sm:$0xff]  ;;  %v2049_v4 = vld [vmem:[%s2589_s10 + $0x49] sm:$0xff] }
  0x7b   : > { %v1030_v16 = vmul.f32 %v4406_v54, %v4404_v41  ;;  %v419_v3 = vmul.f32 %v3548_v49, %v2018_v28  ;;  %v420_v42 = vmul.f32 %v3548_v49, %v2019_v19  ;;  %v453_v38 = vmul.f32 %v3560_v23, %v2028_v24  ;;  %v3575_v19 = vld [vmem:[%s4087_s1 + $0x8] ss:$0 sm:$0xff]  ;;  %v3591_v24 = vld [vmem:[%s4087_s1 + $0x9] ss:$0 sm:$0xff] }
  0x7c   : > { %v936_v36 = vadd.f32 %v927_v30, %v902_v14  ;;  %v937_v12 = vadd.f32 %v928_v25, %v903_v10  ;;  %v360_v30 = vadd.f32 %v351_v45, %v326_v60  ;;  %v361_v25 = vadd.f32 %v352_v13, %v327_v15  ;;  %v4408_v14 = vld [vmem:[#allocation76_spill] sm:$0xff]  ;;  %v3585_v47 = vld [vmem:[%s2589_s10 + $0x41] sm:$0xff] }
  0x7d   : > { %v454_v45 = vmul.f32 %v3560_v23, %v2029_v31  ;;  %v488_v15 = vmul.f32 %v3575_v19, %v2039_v1  ;;  %v521_v31 = vmul.f32 %v3591_v24, %v3585_v47  ;;  %v3607_v1 = vld [vmem:[%s4087_s1 + $0xa] ss:$0 sm:$0xff] }
  0x7e   : > { %v970_v26 = vadd.f32 %v961_v44, %v936_v36  ;;  %v971_v18 = vadd.f32 %v962_v20, %v937_v12  ;;  %v4407_v20 = vld [vmem:[#allocation43_spill] sm:$0xff]  ;;  %v394_v11 = vadd.f32 %v385_v46, %v360_v30  ;;  %v395_v33 = vadd.f32 %v386_v57, %v361_v25  ;;  %v4409_v12 = vld [vmem:[#allocation46_spill] sm:$0xff] }
  0x7f   : > { %v1063_v10 = vmul.f32 %v4408_v14, %v4407_v20  ;;  %v1064_v40 = vmul.f32 %v4367_v52, %v4407_v20  ;;  %v1097_v62 = vmul.f32 %v3365_v29, %v4409_v12  ;;  %v1098_v52 = vmul.f32 %v3368_v39, %v4409_v12  ;;  %v3601_v20 = vld [vmem:[%s2589_s10 + $0x42] sm:$0xff]  ;;  %v2069_v14 = vld [vmem:[%s2589_s10 + $0x4b] sm:$0xff] }
  0x80   : > { %v1004_v59 = vadd.f32 %v995_v48, %v970_v26  ;;  %v1005_v44 = vadd.f32 %v996_v0, %v971_v18  ;;  %v3569_v48 = vld [vmem:[%s2589_s10 + $0x40] sm:$0xff]  ;;  %v428_v0 = vadd.f32 %v419_v3, %v394_v11  ;;  %v429_v28 = vadd.f32 %v420_v42, %v395_v33  ;;  %v4410_v26 = vld [vmem:[#allocation49_spill] sm:$0xff]  ;;  %v4411_v42 = vld [vmem:[#allocation52_spill] sm:$0xff] }
  0x81   : > { %v487_v60 = vmul.f32 %v3575_v19, %v3569_v48  ;;  %v1131_v18 = vmul.f32 %v3381_v8, %v4410_v26  ;;  %v1132_v41 = vmul.f32 %v3384_v35, %v4410_v26  ;;  %v522_v30 = vmul.f32 %v3591_v24, %v2049_v4  ;;  %v4414_v26 = vld [vmem:[#allocation59_spill] sm:$0xff] }
  0x82   : > { %v1038_v13 = vadd.f32 %v1029_v22, %v1004_v59  ;;  %v1039_v36 = vadd.f32 %v1030_v16, %v1005_v44  ;;  %v2059_v22 = vld [vmem:[%s2589_s10 + $0x4a] sm:$0xff]  ;;  %v462_v54 = vadd.f32 %v453_v38, %v428_v0  ;;  %v463_v16 = vadd.f32 %v454_v45, %v429_v28 }
  0x83   : > { %v1165_v59 = vmul.f32 %v3396_v27, %v4411_v42  ;;  %v1166_v44 = vmul.f32 %v3399_v37, %v4411_v42  ;;  %v555_v11 = vmul.f32 %v3607_v1, %v3601_v20  ;;  %v556_v33 = vmul.f32 %v3607_v1, %v2059_v22  ;;  %v3623_v28 = vld [vmem:[%s4087_s1 + $0xb] ss:$0 sm:$0xff] }
  0x84   : > { %v1072_v46 = vadd.f32 %v1063_v10, %v1038_v13  ;;  %v1073_v57 = vadd.f32 %v1064_v40, %v1039_v36  ;;  %v496_v10 = vadd.f32 %v487_v60, %v462_v54  ;;  %v497_v40 = vadd.f32 %v488_v15, %v463_v16  ;;  %v4412_v13 = vld [vmem:[#allocation56_spill] sm:$0xff]  ;;  %4413 = vst [vmem:[#allocation54_spill] sm:$0xff] %v3623_v28  ;;  %v3633_v22 = vld [vmem:[%s2589_s10 + $0x44] sm:$0xff] }
  0x85   : > { %v1199_v36 = vmul.f32 %v3413_v50, %v4412_v13  ;;  %v1200_v12 = vmul.f32 %v3416_v5, %v4412_v13  ;;  %v590_v15 = vmul.f32 %v3623_v28, %v2069_v14  ;;  %v2089_v54 = vld [vmem:[%s2589_s10 + $0x4d] sm:$0xff]  ;;  %v1268_v14 = vmul.f32 %v3448_v56, %v4344_v21 }
  0x86   : > { %v1106_v25 = vadd.f32 %v1097_v62, %v1072_v46  ;;  %v1107_v3 = vadd.f32 %v1098_v52, %v1073_v57  ;;  %v3617_v62 = vld [vmem:[%s2589_s10 + $0x43] sm:$0xff]  ;;  %v2079_v52 = vld [vmem:[%s2589_s10 + $0x4c] sm:$0xff]  ;;  %v530_v4 = vadd.f32 %v521_v31, %v496_v10  ;;  %v531_v0 = vadd.f32 %v522_v30, %v497_v40  ;;  %v2099_v40 = vld [vmem:[%s2589_s10 + $0x58] sm:$0xff] }
  0x87   : > { %v589_v60 = vmul.f32 %v3623_v28, %v3617_v62  ;;  %v3639_v30 = vld [vmem:[%s4087_s1 + $0xc] ss:$0 sm:$0xff]  ;;  %v3661_v13 = vld [vmem:[%s4087_s1 + $0xd] ss:$0 sm:$0xff] }
  0x88   : > { %v1140_v38 = vadd.f32 %v1131_v18, %v1106_v25  ;;  %v1141_v45 = vadd.f32 %v1132_v41, %v1107_v3  ;;  %v1233_v18 = vmul.f32 %v3430_v2, %v4414_v26  ;;  %v1234_v41 = vmul.f32 %v3433_v6, %v4414_v26  ;;  %4415 = vst [vmem:[#allocation47_spill] sm:$0xff] %v3639_v30  ;;  %v3649_v10 = vld [vmem:[%s2589_s10 + $0x45] sm:$0xff] }
  0x89   : > { %v564_v16 = vadd.f32 %v555_v11, %v530_v4  ;;  %v565_v31 = vadd.f32 %v556_v33, %v531_v0  ;;  %v623_v25 = vmul.f32 %v3639_v30, %v3633_v22  ;;  %v624_v3 = vmul.f32 %v3639_v30, %v2079_v52  ;;  %v3653_v11 = vld [vmem:[%s2589_s10 + $0x70] sm:$0xff]  ;;  %v3656_v33 = vld [vmem:[%s2589_s10 + $0x78] sm:$0xff]  ;;  %4416 = vst [vmem:[#allocation60_spill] sm:$0xff] %v3661_v13 }
  0x8a   : > { %v1174_v46 = vadd.f32 %v1165_v59, %v1140_v38  ;;  %v1175_v57 = vadd.f32 %v1166_v44, %v1141_v45  ;;  %v1267_v44 = vmul.f32 %v3445_v51, %v4344_v21  ;;  %v658_v21 = vmul.f32 %v3661_v13, %v2089_v54  ;;  %v3722_v30 = vld [vmem:[%s2589_s10 + $0x7b] sm:$0xff] }
  0x8b   : > { %v598_v38 = vadd.f32 %v589_v60, %v564_v16  ;;  %v599_v45 = vadd.f32 %v590_v15, %v565_v31  ;;  %v1301_v4 = vmul.f32 %v4373_v53, %v3653_v11  ;;  %v1302_v0 = vmul.f32 %v4373_v53, %v3656_v33  ;;  %v3671_v60 = vld [vmem:[%s2589_s10 + $0x50] sm:$0xff]  ;;  %v2109_v15 = vld [vmem:[%s2589_s10 + $0x59] sm:$0xff]  ;;  %4422 = vst [vmem:[#allocation2_spill] sm:$0xff] %v3722_v30 }
  0x8c   : > { %v1208_v42 = vadd.f32 %v1199_v36, %v1174_v46  ;;  %v1209_v59 = vadd.f32 %v1200_v12, %v1175_v57  ;;  %v657_v36 = vmul.f32 %v3661_v13, %v3649_v10  ;;  %v3675_v46 = vld [vmem:[%s2589_s10 + $0x71] sm:$0xff]  ;;  %v3678_v57 = vld [vmem:[%s2589_s10 + $0x79] sm:$0xff] }
  0x8d   : > { %v632_v26 = vadd.f32 %v623_v25, %v598_v38  ;;  %v1336_v25 = vmul.f32 %v4377_v55, %v3678_v57  ;;  %v3697_v38 = vld [vmem:[%s2589_s10 + $0x72] sm:$0xff] }
  0x8e   : > { %v1242_v12 = vadd.f32 %v1233_v18, %v1208_v42  ;;  %v1243_v52 = vadd.f32 %v1234_v41, %v1209_v59  ;;  %v633_v18 = vadd.f32 %v624_v3, %v599_v45  ;;  %v3683_v41 = vld [vmem:[%s4087_s1 + $0x10] ss:$0 sm:$0xff]  ;;  %v1335_v42 = vmul.f32 %v4377_v55, %v3675_v46  ;;  %v3693_v3 = vld [vmem:[%s2589_s10 + $0x51] sm:$0xff]  ;;  %v2119_v59 = vld [vmem:[%s2589_s10 + $0x5a] sm:$0xff]  ;;  %4418 = vst [vmem:[#allocation65_spill] sm:$0xff] %v3697_v38 }
  0x8f   : > { %4417 = vst [vmem:[#allocation63_spill] sm:$0xff] %v3683_v41  ;;  %v691_v54 = vmul.f32 %v3683_v41, %v3671_v60  ;;  %v692_v53 = vmul.f32 %v3683_v41, %v2099_v40  ;;  %v3700_v45 = vld [vmem:[%s2589_s10 + $0x7a] sm:$0xff]  ;;  %v666_v40 = vadd.f32 %v657_v36, %v632_v26  ;;  %v1369_v13 = vmul.f32 %v4380_v61, %v3697_v38 }
  0x90   : > { %v1276_v16 = vadd.f32 %v1267_v44, %v1242_v12  ;;  %v1277_v31 = vadd.f32 %v1268_v14, %v1243_v52  ;;  %4419 = vst [vmem:[#allocation62_spill] sm:$0xff] %v3700_v45  ;;  %v667_v44 = vadd.f32 %v658_v21, %v633_v18  ;;  %v3705_v14 = vld [vmem:[%s4087_s1 + $0x11] ss:$0 sm:$0xff]  ;;  %v1370_v36 = vmul.f32 %v4380_v61, %v3700_v45  ;;  %v3715_v21 = vld [vmem:[%s2589_s10 + $0x52] sm:$0xff]  ;;  %v2129_v26 = vld [vmem:[%s2589_s10 + $0x5b] sm:$0xff] }
  0x91   : > { %4420 = vst [vmem:[#allocation66_spill] sm:$0xff] %v3705_v14  ;;  %v725_v12 = vmul.f32 %v3705_v14, %v3693_v3  ;;  %v726_v55 = vmul.f32 %v3705_v14, %v2109_v15  ;;  %v3719_v18 = vld [vmem:[%s2589_s10 + $0x73] sm:$0xff]  ;;  %v700_v15 = vadd.f32 %v691_v54, %v666_v40  ;;  %v1404_v54 = vmul.f32 %v4384_v9, %v3722_v30  ;;  %v2139_v40 = vld [vmem:[%s2589_s10 + $0x5c] sm:$0xff] }
  0x92   : > { %v1310_v52 = vadd.f32 %v1301_v4, %v1276_v16  ;;  %v1311_v41 = vadd.f32 %v1302_v0, %v1277_v31  ;;  %4421 = vst [vmem:[#allocation61_spill] sm:$0xff] %v3719_v18  ;;  %v701_v4 = vadd.f32 %v692_v53, %v667_v44  ;;  %v3727_v0 = vld [vmem:[%s4087_s1 + $0x12] ss:$0 sm:$0xff]  ;;  %v1403_v28 = vmul.f32 %v4384_v9, %v3719_v18  ;;  %v3737_v53 = vld [vmem:[%s2589_s10 + $0x53] sm:$0xff]  ;;  %v3744_v45 = vld [vmem:[%s2589_s10 + $0x7c] sm:$0xff] }
  0x93   : > { %4423 = vst [vmem:[#allocation16_spill] sm:$0xff] %v3727_v0  ;;  %v759_v16 = vmul.f32 %v3727_v0, %v3715_v21  ;;  %v760_v61 = vmul.f32 %v3727_v0, %v2119_v59  ;;  %4424 = vst [vmem:[#allocation18_spill] sm:$0xff] %v3737_v53  ;;  %v3741_v44 = vld [vmem:[%s2589_s10 + $0x74] sm:$0xff]  ;;  %v734_v59 = vadd.f32 %v725_v12, %v700_v15  ;;  %v2149_v15 = vld [vmem:[%s2589_s10 + $0x5d] sm:$0xff] }
  0x94   : > { %v1344_v31 = vadd.f32 %v1335_v42, %v1310_v52  ;;  %v1345_v14 = vadd.f32 %v1336_v25, %v1311_v41  ;;  %v735_v42 = vadd.f32 %v726_v55, %v701_v4  ;;  %v3749_v41 = vld [vmem:[%s4087_s1 + $0x13] ss:$0 sm:$0xff]  ;;  %v1437_v30 = vmul.f32 %v4388_v58, %v3741_v44  ;;  %v3759_v55 = vld [vmem:[%s2589_s10 + $0x54] sm:$0xff]  ;;  %v3766_v18 = vld [vmem:[%s2589_s10 + $0x7d] sm:$0xff] }
  0x95   : > { %4425 = vst [vmem:[#allocation3_spill] sm:$0xff] %v3749_v41  ;;  %v793_v25 = vmul.f32 %v3749_v41, %v3737_v53  ;;  %v794_v9 = vmul.f32 %v3749_v41, %v2129_v26  ;;  %v1438_v12 = vmul.f32 %v4388_v58, %v3744_v45  ;;  %v3763_v4 = vld [vmem:[%s2589_s10 + $0x75] sm:$0xff]  ;;  %v768_v38 = vadd.f32 %v759_v16, %v734_v59 }
  0x96   : > { %v1378_v52 = vadd.f32 %v1369_v13, %v1344_v31  ;;  %v1379_v0 = vadd.f32 %v1370_v36, %v1345_v14  ;;  %v769_v53 = vadd.f32 %v760_v61, %v735_v42  ;;  %v3771_v13 = vld [vmem:[%s4087_s1 + $0x14] ss:$0 sm:$0xff]  ;;  %v1471_v31 = vmul.f32 %v4392_v7, %v3763_v4  ;;  %v3781_v16 = vld [vmem:[%s2589_s10 + $0x55] sm:$0xff] }
  0x97   : > { %4426 = vst [vmem:[#allocation19_spill] sm:$0xff] %v3771_v13  ;;  %v827_v14 = vmul.f32 %v3771_v13, %v3759_v55  ;;  %v828_v36 = vmul.f32 %v3771_v13, %v2139_v40  ;;  %v1472_v41 = vmul.f32 %v4392_v7, %v3766_v18  ;;  %v802_v61 = vadd.f32 %v793_v25, %v768_v38  ;;  %v3786_v42 = vld [vmem:[%s4087_s1 + $0x15] ss:$0 sm:$0xff]  ;;  %v3794_v7 = vld [vmem:[%s4087_s1 + $0x18] ss:$0 sm:$0xff] }
  0x98   : > { %v1412_v58 = vadd.f32 %v1403_v28, %v1378_v52  ;;  %v1413_v26 = vadd.f32 %v1404_v54, %v1379_v0  ;;  %v803_v59 = vadd.f32 %v794_v9, %v769_v53  ;;  %v861_v40 = vmul.f32 %v3786_v42, %v3781_v16 }
  0x99   : > { %v862_v28 = vmul.f32 %v3786_v42, %v2149_v15  ;;  %v836_v52 = vadd.f32 %v827_v14, %v802_v61  ;;  %v895_v38 = vmul.f32 %v3794_v7, %v3365_v29  ;;  %v896_v53 = vmul.f32 %v3794_v7, %v3368_v39 }
  0x9a   : > { %v1446_v0 = vadd.f32 %v1437_v30, %v1412_v58  ;;  %v1447_v54 = vadd.f32 %v1438_v12, %v1413_v26  ;;  %v837_v13 = vadd.f32 %v828_v36, %v803_v59  ;;  %v3803_v30 = vld [vmem:[%s4087_s1 + $0x19] ss:$0 sm:$0xff]  ;;  %v285_v58 = vmul.f32 %v3505_v63, %v3569_v48  ;;  %v3816_v26 = vld [vmem:[%s4087_s1 + $0x1a] ss:$0 sm:$0xff] }
  0x9b   : > { %v929_v12 = vmul.f32 %v3803_v30, %v3381_v8  ;;  %v930_v15 = vmul.f32 %v3803_v30, %v3384_v35  ;;  %v870_v14 = vadd.f32 %v861_v40, %v836_v52  ;;  %v319_v39 = vmul.f32 %v3515_v34, %v3585_v47  ;;  %v3829_v47 = vld [vmem:[%s4087_s1 + $0x1b] ss:$0 sm:$0xff] }
  0x9c   : > { %v1480_v25 = vadd.f32 %v1471_v31, %v1446_v0  ;;  %v1481_v9 = vadd.f32 %v1472_v41, %v1447_v54  ;;  %v871_v36 = vadd.f32 %v862_v28, %v837_v13  ;;  %v963_v31 = vmul.f32 %v3816_v26, %v3396_v27 }
  0x9d   : > { %v964_v35 = vmul.f32 %v3816_v26, %v3399_v37  ;;  %v353_v13 = vmul.f32 %v3522_v43, %v3601_v20  ;;  %v904_v61 = vadd.f32 %v895_v38, %v870_v14  ;;  %v328_v48 = vadd.f32 %v319_v39, %v285_v58 }
  0x9e   : > { %v1487_v41 = vpack.c.bf16 %v1481_v9, %v1480_v25  ;;  %v905_v63 = vadd.f32 %v896_v53, %v871_v36  ;;  %v387_v34 = vmul.f32 %v3535_v17, %v3617_v62  ;;  %v997_v59 = vmul.f32 %v3829_v47, %v3413_v50  ;;  %v3842_v62 = vld [vmem:[%s4087_s1 + $0x1c] ss:$0 sm:$0xff] }
  0x9f   : > { %v998_v37 = vmul.f32 %v3829_v47, %v3416_v5  ;;  %v938_v43 = vadd.f32 %v929_v12, %v904_v61  ;;  %v362_v40 = vadd.f32 %v353_v13, %v328_v48  ;;  %v421_v17 = vmul.f32 %v3548_v49, %v3633_v22  ;;  %v3853_v49 = vld [vmem:[%s4087_s1 + $0x1d] ss:$0 sm:$0xff]  ;;  %v4428_v61 = vld [vmem:[#allocation62_spill] sm:$0xff] }
  0xa0   : > { %2404 = vmatmul.mubr.bf16.gmra.mrb[8].mxu0 %v1487_v41  ;;  %v939_v20 = vadd.f32 %v930_v15, %v905_v63  ;;  %v1031_v28 = vmul.f32 %v3842_v62, %v3430_v2  ;;  %v1032_v5 = vmul.f32 %v3842_v62, %v3433_v6  ;;  %v455_v38 = vmul.f32 %v3560_v23, %v3649_v10  ;;  %v3864_v23 = vld [vmem:[%s4087_s1 + $0x20] ss:$0 sm:$0xff] }
  0xa1   : > { %2407 = vmatprep.mubr.msk.bf16.mxu0 %vm2522_vm0, %v4372_v32  ;;  %v972_v0 = vadd.f32 %v963_v31, %v938_v43  ;;  %v396_v52 = vadd.f32 %v387_v34, %v362_v40  ;;  %v1065_v22 = vmul.f32 %v3853_v49, %v3445_v51  ;;  %v1066_v53 = vmul.f32 %v3853_v49, %v3448_v56  ;;  %v4432_v40 = vld [vmem:[#allocation2_spill] sm:$0xff] }
  0xa2   : > { %v973_v54 = vadd.f32 %v964_v35, %v939_v20  ;;  %v489_v12 = vmul.f32 %v3575_v19, %v3671_v60  ;;  %v1099_v10 = vmul.f32 %v3864_v23, %v3653_v11  ;;  %v1100_v15 = vmul.f32 %v3864_v23, %v3656_v33  ;;  %v3875_v19 = vld [vmem:[%s4087_s1 + $0x21] ss:$0 sm:$0xff] }
  0xa3   : > { %v1006_v25 = vadd.f32 %v997_v59, %v972_v0  ;;  %v430_v6 = vadd.f32 %v421_v17, %v396_v52  ;;  %v523_v58 = vmul.f32 %v3591_v24, %v3693_v3  ;;  %v1133_v60 = vmul.f32 %v3875_v19, %v3675_v46  ;;  %v3886_v24 = vld [vmem:[%s4087_s1 + $0x22] ss:$0 sm:$0xff]  ;;  %v4427_v3 = vld [vmem:[#allocation65_spill] sm:$0xff] }
  0xa4   : > { %v1007_v9 = vadd.f32 %v998_v37, %v973_v54  ;;  %v1134_v39 = vmul.f32 %v3875_v19, %v3678_v57  ;;  %v557_v35 = vmul.f32 %v3607_v1, %v3715_v21  ;;  %v1167_v13 = vmul.f32 %v3886_v24, %v4427_v3  ;;  %v4429_v59 = vld [vmem:[#allocation18_spill] sm:$0xff]  ;;  %v4431_v21 = vld [vmem:[#allocation61_spill] sm:$0xff]  ;;  %v4433_v54 = vld [vmem:[#allocation47_spill] sm:$0xff] }
  0xa5   : > { %v1040_v14 = vadd.f32 %v1031_v28, %v1006_v25  ;;  %v464_v56 = vadd.f32 %v455_v38, %v430_v6  ;;  %v1168_v63 = vmul.f32 %v3886_v24, %v4428_v61  ;;  %v4430_v37 = vld [vmem:[#allocation54_spill] sm:$0xff]  ;;  %v625_v52 = vmul.f32 %v4433_v54, %v3759_v55  ;;  %v2279_v6 = vld [vmem:[%s2589_s10 + $0x88] sm:$0xff] }
  0xa6   : > { %v1041_v36 = vadd.f32 %v1032_v5, %v1007_v9  ;;  %v591_v43 = vmul.f32 %v4430_v37, %v4429_v59  ;;  %v3897_v1 = vld [vmem:[%s4087_s1 + $0x23] ss:$0 sm:$0xff]  ;;  %v3908_v38 = vld [vmem:[%s4087_s1 + $0x24] ss:$0 sm:$0xff]  ;;  %v3920_v55 = vld [vmem:[%s4087_s1 + $0x25] ss:$0 sm:$0xff] }
  0xa7   : > { %v1074_v41 = vadd.f32 %v1065_v22, %v1040_v14  ;;  %v498_v33 = vadd.f32 %v489_v12, %v464_v56  ;;  %v1201_v20 = vmul.f32 %v3897_v1, %v4431_v21  ;;  %v1202_v17 = vmul.f32 %v3897_v1, %v4432_v40  ;;  %v3941_v61 = vld [vmem:[%s2589_s10 + $0x81] sm:$0xff] }
  0xa8   : > { %v1075_v31 = vadd.f32 %v1066_v53, %v1041_v36  ;;  %v1235_v22 = vmul.f32 %v3908_v38, %v3741_v44  ;;  %v1236_v53 = vmul.f32 %v3908_v38, %v3744_v45  ;;  %v1269_v14 = vmul.f32 %v3920_v55, %v3763_v4  ;;  %v3955_v40 = vld [vmem:[%s2589_s10 + $0x82] sm:$0xff] }
  0xa9   : > { %v1108_v48 = vadd.f32 %v1099_v10, %v1074_v41  ;;  %v532_v34 = vadd.f32 %v523_v58, %v498_v33  ;;  %v4434_v10 = vld [vmem:[#allocation60_spill] sm:$0xff]  ;;  %v1270_v45 = vmul.f32 %v3920_v55, %v3766_v18  ;;  %v3927_v58 = vld [vmem:[%s2589_s10 + $0x80] sm:$0xff] }
  0xaa   : > { %v1109_v57 = vadd.f32 %v1100_v15, %v1075_v31  ;;  %v659_v15 = vmul.f32 %v4434_v10, %v3781_v16  ;;  %v4435_v16 = vld [vmem:[#allocation63_spill] sm:$0xff] }
  0xab   : > { %v1142_v28 = vadd.f32 %v1133_v60, %v1108_v48  ;;  %v566_v0 = vadd.f32 %v557_v35, %v532_v34  ;;  %v2289_v60 = vld [vmem:[%s2589_s10 + $0x89] sm:$0xff]  ;;  %v693_v41 = vmul.f32 %v4435_v16, %v3365_v29  ;;  %v3935_v31 = vld [vmem:[%s4087_s1 + $0x28] ss:$0 sm:$0xff] }
  0xac   : > { %v1143_v5 = vadd.f32 %v1134_v39, %v1109_v57  ;;  %v1303_v33 = vmul.f32 %v3935_v31, %v3927_v58  ;;  %v1304_v18 = vmul.f32 %v3935_v31, %v2279_v6  ;;  %v4436_v57 = vld [vmem:[#allocation66_spill] sm:$0xff]  ;;  %v3949_v34 = vld [vmem:[%s4087_s1 + $0x29] ss:$0 sm:$0xff] }
  0xad   : > { %v1176_v25 = vadd.f32 %v1167_v13, %v1142_v28  ;;  %v600_v12 = vadd.f32 %v591_v43, %v566_v0  ;;  %v727_v29 = vmul.f32 %v4436_v57, %v3381_v8  ;;  %v1337_v59 = vmul.f32 %v3949_v34, %v3941_v61  ;;  %v3963_v0 = vld [vmem:[%s4087_s1 + $0x2a] ss:$0 sm:$0xff] }
  0xae   : > { %v1177_v9 = vadd.f32 %v1168_v63, %v1143_v5  ;;  %v2299_v63 = vld [vmem:[%s2589_s10 + $0x8a] sm:$0xff]  ;;  %v1338_v37 = vmul.f32 %v3949_v34, %v2289_v60  ;;  %v1371_v54 = vmul.f32 %v3963_v0, %v3955_v40 }
  0xaf   : > { %v1210_v36 = vadd.f32 %v1201_v20, %v1176_v25  ;;  %v634_v39 = vadd.f32 %v625_v52, %v600_v12  ;;  %v4437_v5 = vld [vmem:[#allocation16_spill] sm:$0xff]  ;;  %v1372_v52 = vmul.f32 %v3963_v0, %v2299_v63  ;;  %v2308_v25 = vld [vmem:[%s2589_s10 + $0x83] sm:$0xff] }
  0xb0   : > { %v1211_v56 = vadd.f32 %v1202_v17, %v1177_v9  ;;  %v2309_v17 = vld [vmem:[%s2589_s10 + $0x8b] sm:$0xff]  ;;  %v761_v8 = vmul.f32 %v4437_v5, %v3396_v27  ;;  %v897_v5 = vmul.f32 %v3794_v7, %v3653_v11  ;;  %v999_v11 = vmul.f32 %v3829_v47, %v4431_v21 }
  0xb1   : > { %v1244_v35 = vadd.f32 %v1235_v22, %v1210_v36  ;;  %v668_v48 = vadd.f32 %v659_v15, %v634_v39  ;;  %v2319_v9 = vld [vmem:[%s2589_s10 + $0x8c] sm:$0xff]  ;;  %v3975_v27 = vld [vmem:[%s4087_s1 + $0x2b] ss:$0 sm:$0xff]  ;;  %v1135_v47 = vmul.f32 %v3875_v19, %v3941_v61 }
  0xb2   : > { %v1245_v13 = vadd.f32 %v1236_v53, %v1211_v56  ;;  %v4438_v12 = vld [vmem:[#allocation3_spill] sm:$0xff]  ;;  %v1405_v15 = vmul.f32 %v3975_v27, %v2308_v25 }
  0xb3   : > { %v1278_v43 = vadd.f32 %v1269_v14, %v1244_v35  ;;  %v702_v28 = vadd.f32 %v693_v41, %v668_v48  ;;  %v795_v10 = vmul.f32 %v4438_v12, %v3413_v50  ;;  %v1406_v14 = vmul.f32 %v3975_v27, %v2309_v17  ;;  %v2318_v56 = vld [vmem:[%s2589_s10 + $0x84] sm:$0xff]  ;;  %v2329_v60 = vld [vmem:[%s2589_s10 + $0x8d] sm:$0xff] }
  0xb4   : > { %v1279_v20 = vadd.f32 %v1270_v45, %v1245_v13  ;;  %v4439_v16 = vld [vmem:[#allocation19_spill] sm:$0xff] }
  0xb5   : > { %v1312_v22 = vadd.f32 %v1303_v33, %v1278_v43  ;;  %v736_v6 = vadd.f32 %v727_v29, %v702_v28  ;;  %v829_v41 = vmul.f32 %v4439_v16, %v3430_v2  ;;  %v2474_v50 = vld [vmem:[%s4091_s5 + $0x28] sm:$0xff]   ;;  %v863_v2 = vmul.f32 %v3786_v42, %v3445_v51  ;;  %v2475_v29 = vld [vmem:[%s4091_s5 + $0x30] sm:$0xff]  }
  0xb6   : > { %v1313_v53 = vadd.f32 %v1304_v18, %v1279_v20  ;;  %v3989_v33 = vld [vmem:[%s4087_s1 + $0x2c] ss:$0 sm:$0xff]  ;;  %2426 = vmatpush3.bf16.msra.mxu1 %v2474_v50  ;;  %v2310_v16 = vld [vmem:[%s2589_s10 + $0x93] sm:$0xff] }
  0xb7   : > { %v1346_v45 = vadd.f32 %v1337_v59, %v1312_v22  ;;  %v770_v39 = vadd.f32 %v761_v8, %v736_v6  ;;  %v1439_v18 = vmul.f32 %v3989_v33, %v2318_v56  ;;  %v1440_v35 = vmul.f32 %v3989_v33, %v2319_v9  ;;  %v2328_v48 = vld [vmem:[%s2589_s10 + $0x85] sm:$0xff]  ;;  %v2512_v59 = vld [vmem:[%s4087_s1 + $0x2d] ss:$0 sm:$0xff]  ;;  %2427 = vmatprep.subr.bf16.mxu1 %v4372_v32 }
  0xb8   : > { %v1347_v36 = vadd.f32 %v1338_v37, %v1313_v53  ;;  %v1473_v37 = vmul.f32 %v2512_v59, %v2328_v48  ;;  %v1474_v43 = vmul.f32 %v2512_v59, %v2329_v60  ;;  %v965_v9 = vmul.f32 %v3816_v26, %v4427_v3 }
  0xb9   : > { %v1380_v13 = vadd.f32 %v1371_v54, %v1346_v45  ;;  %v804_v57 = vadd.f32 %v795_v10, %v770_v39  ;;  %v931_v54 = vmul.f32 %v3803_v30, %v3675_v46  ;;  %v1033_v10 = vmul.f32 %v3842_v62, %v3741_v44  ;;  %v2476_v62 = vld [vmem:[%s4091_s5 + $0x38] sm:$0xff]  }
  0xba   : > { %v1381_v63 = vadd.f32 %v1372_v52, %v1347_v36  ;;  %2428 = vmatpush3.bf16.msra.mxu1 %v2475_v29  ;;  %v1067_v30 = vmul.f32 %v3853_v49, %v3763_v4  ;;  %v1101_v3 = vmul.f32 %v3864_v23, %v3927_v58  ;;  %v1169_v44 = vmul.f32 %v3886_v24, %v3955_v40  ;;  %v2290_v45 = vld [vmem:[%s2589_s10 + $0x91] sm:$0xff] }
  0xbb   : > { %v1414_v20 = vadd.f32 %v1405_v15, %v1380_v13  ;;  %v838_v28 = vadd.f32 %v829_v41, %v804_v57  ;;  %2429 = vmatprep.subr.bf16.mxu1 %v4372_v32  ;;  %v1203_v49 = vmul.f32 %v3897_v1, %v2308_v25  ;;  %v1237_v58 = vmul.f32 %v3908_v38, %v2318_v56  ;;  %v2300_v36 = vld [vmem:[%s2589_s10 + $0x92] sm:$0xff] }
  0xbc   : > { %v1415_v17 = vadd.f32 %v1406_v14, %v1381_v63  ;;  %v2280_v14 = vld [vmem:[%s2589_s10 + $0x90] sm:$0xff]  ;;  %v1271_v61 = vmul.f32 %v3920_v55, %v2328_v48  ;;  %v1339_v39 = vmul.f32 %v3949_v34, %v2290_v45  ;;  %v1373_v25 = vmul.f32 %v3963_v0, %v2300_v36  ;;  %v2340_v34 = vld [vmem:[%s4089_s3] ss:$0 sm:$0xff] }
  0xbd   : > { %v1448_v51 = vadd.f32 %v1439_v18, %v1414_v20  ;;  %v872_v8 = vadd.f32 %v863_v2, %v838_v28  ;;  %v1305_v40 = vmul.f32 %v3935_v31, %v2280_v14  ;;  %v2320_v41 = vld [vmem:[%s2589_s10 + $0x94] sm:$0xff]  ;;  %v1407_v38 = vmul.f32 %v3975_v27, %v2310_v16  ;;  %v2341_v0 = vld [vmem:[%s4090_s4] ss:$0 sm:$0xff] }
  0xbe   : > { %v1449_v42 = vadd.f32 %v1440_v35, %v1415_v17  ;;  %2430 = vmatpush3.bf16.msra.mxu1 %v2476_v62  ;;  %v2330_v56 = vld [vmem:[%s2589_s10 + $0x95] sm:$0xff]  ;;  %v1441_v55 = vmul.f32 %v3989_v33, %v2320_v41  ;;  %s254_s10 = smul.u32 9, %s1976_s25 }
  0xbf   : > { %v1482_v52 = vadd.f32 %v1473_v37, %v1448_v51  ;;  %v906_v53 = vadd.f32 %v897_v5, %v872_v8  ;;  %v1475_v13 = vmul.f32 %v2512_v59, %v2330_v56 }
  0xc0   : > { %v1483_v22 = vadd.f32 %v1474_v43, %v1449_v42  ;;  %p255_p3 = scmp.lt.s32.totalorder %s254_s10, 17 }
  0xc1   : > { %v940_v12 = vadd.f32 %v931_v54, %v906_v53 }
  0xc2   : > { %v1488_v6 = vpack.c.bf16 %v1483_v22, %v1482_v52  ;;  %s4441_s10 = smov (!%p255_p3, %s254_s10), 17 }
  0xc3   : > { %v974_v7 = vadd.f32 %v965_v9, %v940_v12  ;;  %s1980_s29 = sshll.u32 %s4441_s10, 3 }
  0xc4   : > { %2408 = vmatmul.mubr.bf16.gmra.mrb[12].mxu0 %v1488_v6  ;;  %s4063_s12 = scalar_lea.vmem %s4093_s7, %s1980_s29 }
  0xc5   : > { %2411 = vmatprep.mubr.msk.bf16.mxu0 %vm2522_vm0, %v4372_v32  ;;  %v1008_v46 = vadd.f32 %v999_v11, %v974_v7 }
  0xc7   : > { %v1042_v26 = vadd.f32 %v1033_v10, %v1008_v46 }
  0xc9   : > { %v1076_v15 = vadd.f32 %v1067_v30, %v1042_v26 }
  0xcb   : > { %v1110_v21 = vadd.f32 %v1101_v3, %v1076_v15 }
  0xcd   : > { %v1144_v4 = vadd.f32 %v1135_v47, %v1110_v21 }
  0xcf   : > { %v1178_v23 = vadd.f32 %v1169_v44, %v1144_v4 }
  0xd1   : > { %v1212_v19 = vadd.f32 %v1203_v49, %v1178_v23 }
  0xd3   : > { %v1246_v24 = vadd.f32 %v1237_v58, %v1212_v19 }
  0xd5   : > { %v1280_v60 = vadd.f32 %v1271_v61, %v1246_v24 }
  0xd7   : > { %v1314_v1 = vadd.f32 %v1305_v40, %v1280_v60 }
  0xd9   : > { %v1348_v50 = vadd.f32 %v1339_v39, %v1314_v1 }
  0xdb   : > { %v1382_v18 = vadd.f32 %v1373_v25, %v1348_v50 }
  0xdd   : > { %v1416_v35 = vadd.f32 %v1407_v38, %v1382_v18  ;;  %v2342_v38 = vld [vmem:[%s4092_s6] ss:$0 sm:$0xff] }
  0xdf   : > { %v1450_v63 = vadd.f32 %v1441_v55, %v1416_v35 }
  0xe1   : > { %v1484_v31 = vadd.f32 %v1475_v13, %v1450_v63 }
  0xe3   : > { %v1489_v48 = vpack.c.bf16 %v1484_v31, %v1484_v31 }
  0xe5   : > { %2412 = vmatmul.mubr.bf16.gmra.mrb[16].mxu0 %v1489_v48 }
 0x134   : > { %v1588_v57 = vpop.f32.mrb[0].mxu0 }
 0x135   : > { %v1633_v27 = vmul.f32 %v2340_v34, %v1588_v57  ;;  %v2397_v2 = vpop.f32.mrb[1].mxu0 }
 0x136   : > { %v1591_v29 = vpop.f32.mrb[2].mxu0 }
 0x137   : > { %v1649_v37 = vadd.f32 %v2341_v0, %v1633_v27  ;;  %v1634_v33 = vmul.f32 %v2340_v34, %v1591_v29  ;;  %v2398_v43 = vpop.f32.mrb[3].mxu0 }
 0x139   : > { %v1650_v59 = vadd.f32 %v2341_v0, %v1634_v33  ;;  %v1658_v20 = vmax.f32 %v1649_v37, 0.0 }
 0x13b   : > { %v1659_v17 = vmax.f32 %v1650_v59, 0.0 }
 0x13d   : > { %v1667_v28 = vpack.c.bf16 %v1659_v17, %v1658_v20 }
 0x13f   : > { %2432 = vmatmul.mubr.bf16.vlgmr.msra.gmra.mrb[0].mxu1 %v1667_v28 }
 0x140   : > { %2435 = vmatprep.mubr.msk.bf16.mxu1 %vm2522_vm0, %v4372_v32 }
 0x149   : > { %v1596_v5 = vpop.f32.mrb[4].mxu0 }
 0x14a   : > { %v1635_v51 = vmul.f32 %v2340_v34, %v1596_v5  ;;  %v2401_v42 = vpop.f32.mrb[5].mxu0 }
 0x14b   : > { %v1599_v8 = vpop.f32.mrb[6].mxu0 }
 0x14c   : > { %v1651_v54 = vadd.f32 %v2341_v0, %v1635_v51  ;;  %v1636_v52 = vmul.f32 %v2340_v34, %v1599_v8  ;;  %v2402_v22 = vpop.f32.mrb[7].mxu0 }
 0x14e   : > { %v1652_v53 = vadd.f32 %v2341_v0, %v1636_v52  ;;  %v1660_v9 = vmax.f32 %v1651_v54, 0.0 }
 0x150   : > { %v1661_v6 = vmax.f32 %v1652_v53, 0.0 }
 0x152   : > { %v1668_v12 = vpack.c.bf16 %v1661_v6, %v1660_v9 }
 0x154   : > { %2436 = vmatmul.mubr.bf16.gmra.mrb[4].mxu1 %v1668_v12 }
 0x155   : > { %2439 = vmatprep.mubr.msk.bf16.mxu1 %vm2522_vm0, %v4372_v32 }
 0x173   : > { %v1604_v11 = vpop.f32.mrb[8].mxu0 }
 0x174   : > { %v1637_v7 = vmul.f32 %v2340_v34, %v1604_v11  ;;  %v2405_v10 = vpop.f32.mrb[9].mxu0 }
 0x175   : > { %v1607_v46 = vpop.f32.mrb[10].mxu0 }
 0x176   : > { %v1653_v30 = vadd.f32 %v2341_v0, %v1637_v7  ;;  %v1638_v26 = vmul.f32 %v2340_v34, %v1607_v46  ;;  %v2406_v3 = vpop.f32.mrb[11].mxu0 }
 0x178   : > { %v1654_v15 = vadd.f32 %v2341_v0, %v1638_v26  ;;  %v1662_v47 = vmax.f32 %v1653_v30, 0.0 }
 0x17a   : > { %v1663_v21 = vmax.f32 %v1654_v15, 0.0 }
 0x17c   : > { %v1669_v44 = vpack.c.bf16 %v1663_v21, %v1662_v47 }
 0x17e   : > { %2440 = vmatmul.mubr.bf16.gmra.mrb[8].mxu1 %v1669_v44 }
 0x17f   : > { %2443 = vmatprep.mubr.msk.bf16.mxu1 %vm2522_vm0, %v4372_v32 }
 0x197   : > { %v1612_v62 = vpop.f32.mrb[12].mxu0 }
 0x198   : > { %v1639_v4 = vmul.f32 %v2340_v34, %v1612_v62  ;;  %v2409_v49 = vpop.f32.mrb[13].mxu0 }
 0x199   : > { %v1615_v23 = vpop.f32.mrb[14].mxu0 }
 0x19a   : > { %v1655_v58 = vadd.f32 %v2341_v0, %v1639_v4  ;;  %v1640_v14 = vmul.f32 %v2340_v34, %v1615_v23  ;;  %v2410_v19 = vpop.f32.mrb[15].mxu0 }
 0x19c   : > { %v1656_v61 = vadd.f32 %v2341_v0, %v1640_v14  ;;  %v1664_v45 = vmax.f32 %v1655_v58, 0.0 }
 0x19e   : > { %v1665_v24 = vmax.f32 %v1656_v61, 0.0 }
 0x1a0   : > { %v1670_v40 = vpack.c.bf16 %v1665_v24, %v1664_v45 }
 0x1a2   : > { %2444 = vmatmul.mubr.bf16.gmra.mrb[12].mxu1 %v1670_v40 }
 0x1a3   : > { %2447 = vmatprep.mubr.msk.bf16.mxu1 %vm2522_vm0, %v4372_v32 }
 0x1b8   : > { %v1620_v36 = vpop.f32.mrb[16].mxu0 }
 0x1b9   : > { %v1641_v60 = vmul.f32 %v2340_v34, %v1620_v36  ;;  %v2413_v39 = vpop.f32.mrb[17].mxu0 }
 0x1ba   : > { %v1623_v16 = vpop.f32.mrb[18].mxu0 }
 0x1bb   : > { %v1657_v1 = vadd.f32 %v2341_v0, %v1641_v60  ;;  %v2414_v25 = vpop.f32.mrb[19].mxu0 }
 0x1bd   : > { %v1666_v41 = vmax.f32 %v1657_v1, 0.0 }
 0x1bf   : > { %v1671_v50 = vpack.c.bf16 %v1666_v41, %v1666_v41 }
 0x1c1   : > { %2448 = vmatmul.mubr.bf16.gmra.mrb[16].mxu1 %v1671_v50 }
 0x212   : > { %v1777_v32 = vpop.f32.mrb[0].mxu1 }
 0x213   : > { %v1778_v56 = vadd.f32 %v2342_v38, %v1777_v32  ;;  %v2433_v18 = vpop.f32.mrb[1].mxu1 }
 0x214   : > { %v1780_v55 = vpop.f32.mrb[2].mxu1 }
 0x215   : > { %1816 = vst.msk [vmem:[%s4063_s12] sm:$0xff] %vm1815_vm1, %v1778_v56  ;;  %v1781_v35 = vadd.f32 %v2342_v38, %v1780_v55  ;;  %v2434_v13 = vpop.f32.mrb[3].mxu1 }
 0x217   : > { %1817 = vst.msk [vmem:[%s4063_s12 + $0x8] sm:$0xff] %vm1815_vm1, %v1781_v35 }
 0x227   : > { %v1785_v63 = vpop.f32.mrb[4].mxu1 }
 0x228   : > { %v1786_v31 = vadd.f32 %v2342_v38, %v1785_v63  ;;  %v2437_v48 = vpop.f32.mrb[5].mxu1 }
 0x229   : > { %v1788_v34 = vpop.f32.mrb[6].mxu1 }
 0x22a   : > { %1818 = vst.msk [vmem:[%s4063_s12 + $0x10] sm:$0xff] %vm1815_vm1, %v1786_v31  ;;  %v1789_v57 = vadd.f32 %v2342_v38, %v1788_v34  ;;  %v2438_v0 = vpop.f32.mrb[7].mxu1 }
 0x22c   : > { %1819 = vst.msk [vmem:[%s4063_s12 + $0x18] sm:$0xff] %vm1815_vm1, %v1789_v57 }
 0x251   : > { %v1793_v27 = vpop.f32.mrb[8].mxu1 }
 0x252   : > { %v1794_v2 = vadd.f32 %v2342_v38, %v1793_v27  ;;  %v2441_v29 = vpop.f32.mrb[9].mxu1 }
 0x253   : > { %v1796_v37 = vpop.f32.mrb[10].mxu1 }
 0x254   : > { %1820 = vst.msk [vmem:[%s4063_s12 + $0x20] sm:$0xff] %vm1815_vm1, %v1794_v2  ;;  %v1797_v33 = vadd.f32 %v2342_v38, %v1796_v37  ;;  %v2442_v43 = vpop.f32.mrb[11].mxu1 }
 0x256   : > { %1821 = vst.msk [vmem:[%s4063_s12 + $0x28] sm:$0xff] %vm1815_vm1, %v1797_v33 }
 0x275   : > { %v1801_v59 = vpop.f32.mrb[12].mxu1 }
 0x276   : > { %v1802_v20 = vadd.f32 %v2342_v38, %v1801_v59  ;;  %v2445_v17 = vpop.f32.mrb[13].mxu1 }
 0x277   : > { %v1804_v28 = vpop.f32.mrb[14].mxu1 }
 0x278   : > { %1822 = vst.msk [vmem:[%s4063_s12 + $0x30] sm:$0xff] %vm1815_vm1, %v1802_v20  ;;  %v1805_v5 = vadd.f32 %v2342_v38, %v1804_v28  ;;  %v2446_v51 = vpop.f32.mrb[15].mxu1 }
 0x27a   : > { %1823 = vst.msk [vmem:[%s4063_s12 + $0x38] sm:$0xff] %vm1815_vm1, %v1805_v5 }
 0x294   : > { %v1809_v42 = vpop.f32.mrb[16].mxu1 }
 0x295   : > { %v1810_v8 = vadd.f32 %v2342_v38, %v1809_v42  ;;  %v2449_v54 = vpop.f32.mrb[17].mxu1 }
 0x296   : > { %v1812_v52 = vpop.f32.mrb[18].mxu1 }
 0x297   : > { %1824 = vst.msk [vmem:[%s4063_s12 + $0x40] sm:$0xff] %vm1815_vm1, %v1810_v8  ;;  %v2450_v22 = vpop.f32.mrb[19].mxu1 }
 0x298 PF: > { %s17_s24 = sadd.s32 1, %s2519_s24  }
 0x299   : > { %p14_p4 = scmp.ge.s32.totalorder %s17_s24, 4  }
 0x29b   :  { %16 = sbr.rel (!%p14_p4) target bundleno = 1 (0x1), region = 111 }

</bundles_post_ra>
